<compile_context>
chip_gen: v5e
topology: v5e:2x2
jax: 0.10.0
libtpu: 0.0.40
codegen_flags: <defaults>
</compile_context>

<pallas_src>
import functools

import jax
import jax.numpy as jnp
from jax import lax
from jax.experimental import pallas as pl
from jax.experimental.pallas import tpu as pltpu

BN_EPS = 1e-5


def _basic_block_kernel(x_ref, w1_ref, b1_ref, w2_ref, b2_ref, out_ref,
                        pad_ref, col_ref):
    """One batch element per grid step.

    x_ref   : (1, H, W, C)      NHWC input (f32, unpadded)
    w1_ref  : (9*C, C)          conv1 weights, im2col layout, BN1 scale folded in
    b1_ref  : (1, C)            folded BN1 bias (f32)
    w2_ref  : (9*C, C)          conv2 weights, BN2 scale folded in
    b2_ref  : (1, C)            folded BN2 bias (f32)
    out_ref : (1, H, W, C)
    pad_ref : VMEM (H+2, W+2, C) shared zero-padded activation scratch (compute dtype)
    col_ref : VMEM (H*W, 9*C)    im2col scratch (compute dtype)
    """
    _, H, W, C = out_ref.shape
    cdt = pad_ref.dtype                       # compute (MXU) dtype: bf16 or f32

    x = x_ref[0]                              # (H, W, C) f32

    # Zero only the 1-pixel border of the padded scratch; the interior is fully
    # overwritten twice below (with x, then with h1), so no full-buffer memset.
    pad_ref[0:1, :, :] = jnp.zeros((1, W + 2, C), cdt)
    pad_ref[H + 1:H + 2, :, :] = jnp.zeros((1, W + 2, C), cdt)
    pad_ref[:, 0:1, :] = jnp.zeros((H + 2, 1, C), cdt)
    pad_ref[:, W + 1:W + 2, :] = jnp.zeros((H + 2, 1, C), cdt)

    def conv3x3(w_ref):
        # Build the im2col tile (H*W, 9*C) from 9 shifted views of the padded
        # activation, then do a single MXU matmul with K = 9*C.
        for t in range(9):
            dy, dx = t // 3, t % 3
            col_ref[:, t * C:(t + 1) * C] = (
                pad_ref[dy:dy + H, dx:dx + W, :].reshape(H * W, C))
        return jnp.dot(col_ref[...], w_ref[...],
                       preferred_element_type=jnp.float32)     # (H*W, C) f32

    # ---- conv1 (BN1 scale pre-folded) + bias + ReLU -----------------------
    pad_ref[1:H + 1, 1:W + 1, :] = x.astype(cdt)
    h1 = jnp.maximum(conv3x3(w1_ref) + b1_ref[...], 0.0)        # (H*W, C) f32

    # ---- conv2 (BN2 scale pre-folded) + bias + residual + ReLU ------------
    pad_ref[1:H + 1, 1:W + 1, :] = h1.reshape(H, W, C).astype(cdt)
    out = conv3x3(w2_ref) + b2_ref[...] + x.reshape(H * W, C)   # residual in f32
    out_ref[0] = jnp.maximum(out, 0.0).reshape(H, W, C).astype(out_ref.dtype)


def basic_block_pallas(x_nchw, params, eps=BN_EPS, compute_dtype=jnp.bfloat16):
    """Forward pass of BasicBlock(stride=1, downsample=None). Input/output NCHW."""
    N, Cin, H, W = x_nchw.shape
    Cout = params["w1"].shape[0]
    assert params["w1"].shape == (Cout, Cin, 3, 3)
    assert params["w2"].shape == (Cout, Cout, 3, 3)
    assert Cin == Cout, "downsample=None requires inplanes == planes"

    # NCHW -> NHWC (padding is done inside the kernel).
    x_nhwc = jnp.transpose(x_nchw, (0, 2, 3, 1)).astype(jnp.float32)

    # Fold eval-mode BN into per-channel scale/bias; fold the scale into the weights.
    def fold(g, b, m, v):
        s = (g / jnp.sqrt(v + eps)).astype(jnp.float32)                 # (C,)
        return s, (b - m * s).reshape(1, -1).astype(jnp.float32)        # (1, C)

    s1, b1 = fold(params["g1"], params["b1"], params["m1"], params["v1"])
    s2, b2 = fold(params["g2"], params["b2"], params["m2"], params["v2"])

    # OIHW -> ((ky*3+kx)*Cin + ci, o), matching the im2col column order; scale folded.
    def prep_w(w, s, ci):
        w_t = jnp.transpose(w, (2, 3, 1, 0)).reshape(9 * ci, -1).astype(jnp.float32)
        return (w_t * s[None, :]).astype(compute_dtype)

    w1_t = prep_w(params["w1"], s1, Cin)
    w2_t = prep_w(params["w2"], s2, Cout)

    # Explicit VMEM budget: double-buffered blocks + weights + scratches (+4x margin).
    isz = jnp.dtype(compute_dtype).itemsize
    footprint = (2 * H * W * Cin * 4                      # input blocks (f32, dbl-buf)
                 + 2 * H * W * Cout * 4                   # output blocks
                 + 4 * (9 * Cin * Cout + 9 * Cout * Cout) * isz   # weights (dbl-buf)
                 + 4 * 2 * Cout * 4                       # biases
                 + (H + 2) * (W + 2) * Cout * isz         # padded scratch
                 + H * W * 9 * Cout * isz)                # im2col scratch
    vmem_limit = int(min(48 * 2 ** 20, max(4 * 2 ** 20, 4 * footprint)))

    out_nhwc = pl.pallas_call(
        _basic_block_kernel,
        out_shape=jax.ShapeDtypeStruct((N, H, W, Cout), jnp.float32),
        grid_spec=pltpu.PrefetchScalarGridSpec(
            num_scalar_prefetch=0,
            grid=(N,),
            in_specs=[
                pl.BlockSpec((1, H, W, Cin), lambda n: (n, 0, 0, 0)),
                pl.BlockSpec((9 * Cin, Cout), lambda n: (0, 0)),
                pl.BlockSpec((1, Cout), lambda n: (0, 0)),
                pl.BlockSpec((9 * Cout, Cout), lambda n: (0, 0)),
                pl.BlockSpec((1, Cout), lambda n: (0, 0)),
            ],
            out_specs=pl.BlockSpec((1, H, W, Cout), lambda n: (n, 0, 0, 0)),
            scratch_shapes=[
                pltpu.VMEM((H + 2, W + 2, Cout), compute_dtype),
                pltpu.VMEM((H * W, 9 * Cout), compute_dtype),
            ],
        ),
        compiler_params=pltpu.CompilerParams(
            dimension_semantics=("parallel",),     # batch elements independent -> v7x megacore
            vmem_limit_bytes=vmem_limit,
        ),
    )(x_nhwc, w1_t, b1, w2_t, b2)

    return jnp.transpose(out_nhwc, (0, 3, 1, 2))  # back to NCHW


def basic_block_reference(x, p, eps=BN_EPS):
    """Pure-JAX reference (same eval-mode BN semantics), NCHW."""
    dn = ("NCHW", "OIHW", "NCHW")

    def conv(h, w):
        return lax.conv_general_dilated(h, w, window_strides=(1, 1),
                                        padding=((1, 1), (1, 1)),
                                        dimension_numbers=dn)

    def bn(h, g, b, m, v):
        sh = (1, -1, 1, 1)
        return (h - m.reshape(sh)) / jnp.sqrt(v.reshape(sh) + eps) * g.reshape(sh) + b.reshape(sh)

    out = jax.nn.relu(bn(conv(x, p["w1"]), p["g1"], p["b1"], p["m1"], p["v1"]))
    out = bn(conv(out, p["w2"]), p["g2"], p["b2"], p["m2"], p["v2"])
    return jax.nn.relu(out + x)


def make_params(key, inplanes, planes):
    ks = jax.random.split(key, 8)
    return {
        "w1": 0.1 * jax.random.normal(ks[0], (planes, inplanes, 3, 3), jnp.float32),
        "w2": 0.1 * jax.random.normal(ks[1], (planes, planes, 3, 3), jnp.float32),
        "g1": 1.0 + 0.1 * jax.random.normal(ks[2], (planes,), jnp.float32),
        "b1": 0.1 * jax.random.normal(ks[3], (planes,), jnp.float32),
        "m1": 0.05 * jax.random.normal(ks[4], (planes,), jnp.float32),
        "v1": 1.0 + 0.1 * jax.random.uniform(ks[5], (planes,), jnp.float32),
        "g2": 1.0 + 0.1 * jax.random.normal(ks[6], (planes,), jnp.float32),
        "b2": 0.1 * jax.random.normal(ks[7], (planes,), jnp.float32),
        "m2": jnp.zeros((planes,), jnp.float32),
        "v2": jnp.ones((planes,), jnp.float32),
    }


if __name__ == "__main__":
    key = jax.random.PRNGKey(0)
    k_x, k_p = jax.random.split(key)

    N, C, H, W = 2, 4, 16, 16          # inplanes == planes == 4, stride=1, downsample=None
    x = jax.random.normal(k_x, (N, C, H, W), jnp.float32)
    params = make_params(k_p, C, C)

    ref = basic_block_reference(x, params)

    # f32 compute path: tight check of the fused kernel logic.
    f32_fn = jax.jit(functools.partial(basic_block_pallas, compute_dtype=jnp.float32))
    out_f32 = jax.block_until_ready(f32_fn(x, params))
    assert out_f32.shape == ref.shape == (N, C, H, W)
    assert jnp.allclose(out_f32, ref, rtol=2e-3, atol=2e-3), (
        float(jnp.max(jnp.abs(out_f32 - ref))))

    # Default bf16 MXU path: looser tolerance (bf16 operands, f32 accumulation).
    out_bf16 = jax.block_until_ready(jax.jit(basic_block_pallas)(x, params))
    assert out_bf16.shape == ref.shape
    assert jnp.allclose(out_bf16, ref, rtol=5e-2, atol=5e-2), (
        float(jnp.max(jnp.abs(out_bf16 - ref))))

    print("KERNEL_OK")
</pallas_src>

<mosaic_0001>
module attributes {stable_mosaic.version = 11 : i64} {
  func.func @_basic_block_kernel(%arg0: i32, %arg1: memref<1x16x16x4xf32, #tpu.memory_space<vmem>>, %arg2: memref<36x4xf32, #tpu.memory_space<vmem>>, %arg3: memref<1x4xf32, #tpu.memory_space<vmem>>, %arg4: memref<36x4xf32, #tpu.memory_space<vmem>>, %arg5: memref<1x4xf32, #tpu.memory_space<vmem>>, %arg6: memref<1x16x16x4xf32, #tpu.memory_space<vmem>>, %arg7: memref<18x18x4xf32, #tpu.memory_space<vmem>>, %arg8: memref<256x36xf32, #tpu.memory_space<vmem>>) attributes {dimension_semantics = [#tpu.dimension_semantics<parallel>], iteration_bounds = array<i64: 2>, scalar_prefetch = 0 : i64, scratch_operands = 2 : i64, tpu.core_type = #tpu.core_type<tc>, window_params = [{transform_indices = @transform_0, window_bounds = array<i64: 1, 16, 16, 4>}, {pipeline_mode = #tpu.pipeline_mode<synchronous>, transform_indices = @transform_1, window_bounds = array<i64: 36, 4>}, {pipeline_mode = #tpu.pipeline_mode<synchronous>, transform_indices = @transform_2, window_bounds = array<i64: 1, 4>}, {pipeline_mode = #tpu.pipeline_mode<synchronous>, transform_indices = @transform_3, window_bounds = array<i64: 36, 4>}, {pipeline_mode = #tpu.pipeline_mode<synchronous>, transform_indices = @transform_4, window_bounds = array<i64: 1, 4>}, {transform_indices = @transform_5, window_bounds = array<i64: 1, 16, 16, 4>}]} {
    %c0 = arith.constant 0 : index
    %c0_0 = arith.constant 0 : index
    %c0_1 = arith.constant 0 : index
    %c0_2 = arith.constant 0 : index
    %0 = vector.load %arg1[%c0, %c0_0, %c0_1, %c0_2] : memref<1x16x16x4xf32, #tpu.memory_space<vmem>>, vector<1x16x16x4xf32>
    %1 = vector.shape_cast %0 : vector<1x16x16x4xf32> to vector<16x16x4xf32>
    %cst = arith.constant 0.000000e+00 : f32
    %2 = vector.broadcast %cst : f32 to vector<1x18x4xf32>
    %c0_3 = arith.constant 0 : index
    %c0_4 = arith.constant 0 : index
    %c0_5 = arith.constant 0 : index
    %3 = vector.load %arg7[%c0_3, %c0_4, %c0_5] : memref<18x18x4xf32, #tpu.memory_space<vmem>>, vector<1x18x4xf32>
    tpu.vector_store %arg7[%c0_3, %c0_4, %c0_5], %2 {strides = array<i32>} : memref<18x18x4xf32, #tpu.memory_space<vmem>>, vector<1x18x4xf32>,
    %cst_6 = arith.constant 0.000000e+00 : f32
    %4 = vector.broadcast %cst_6 : f32 to vector<1x18x4xf32>
    %c17 = arith.constant 17 : index
    %c0_7 = arith.constant 0 : index
    %c0_8 = arith.constant 0 : index
    %5 = vector.load %arg7[%c17, %c0_7, %c0_8] : memref<18x18x4xf32, #tpu.memory_space<vmem>>, vector<1x18x4xf32>
    tpu.vector_store %arg7[%c17, %c0_7, %c0_8], %4 {strides = array<i32>} : memref<18x18x4xf32, #tpu.memory_space<vmem>>, vector<1x18x4xf32>,
    %cst_9 = arith.constant 0.000000e+00 : f32
    %6 = vector.broadcast %cst_9 : f32 to vector<18x1x4xf32>
    %c0_10 = arith.constant 0 : index
    %c0_11 = arith.constant 0 : index
    %c0_12 = arith.constant 0 : index
    %7 = vector.load %arg7[%c0_10, %c0_11, %c0_12] : memref<18x18x4xf32, #tpu.memory_space<vmem>>, vector<18x1x4xf32>
    tpu.vector_store %arg7[%c0_10, %c0_11, %c0_12], %6 {strides = array<i32>} : memref<18x18x4xf32, #tpu.memory_space<vmem>>, vector<18x1x4xf32>,
    %cst_13 = arith.constant 0.000000e+00 : f32
    %8 = vector.broadcast %cst_13 : f32 to vector<18x1x4xf32>
    %c0_14 = arith.constant 0 : index
    %c17_15 = arith.constant 17 : index
    %c0_16 = arith.constant 0 : index
    %9 = vector.load %arg7[%c0_14, %c17_15, %c0_16] : memref<18x18x4xf32, #tpu.memory_space<vmem>>, vector<18x1x4xf32>
    tpu.vector_store %arg7[%c0_14, %c17_15, %c0_16], %8 {strides = array<i32>} : memref<18x18x4xf32, #tpu.memory_space<vmem>>, vector<18x1x4xf32>,
    %c1 = arith.constant 1 : index
    %c1_17 = arith.constant 1 : index
    %c0_18 = arith.constant 0 : index
    %10 = vector.load %arg7[%c1, %c1_17, %c0_18] : memref<18x18x4xf32, #tpu.memory_space<vmem>>, vector<16x16x4xf32>
    tpu.vector_store %arg7[%c1, %c1_17, %c0_18], %1 {strides = array<i32>} : memref<18x18x4xf32, #tpu.memory_space<vmem>>, vector<16x16x4xf32>,
    %c0_19 = arith.constant 0 : index
    %c0_20 = arith.constant 0 : index
    %c0_21 = arith.constant 0 : index
    %11 = vector.load %arg7[%c0_19, %c0_20, %c0_21] : memref<18x18x4xf32, #tpu.memory_space<vmem>>, vector<16x16x4xf32>
    %12 = vector.shape_cast %11 : vector<16x16x4xf32> to vector<256x4xf32>
    %c0_22 = arith.constant 0 : index
    %c0_23 = arith.constant 0 : index
    %13 = vector.load %arg8[%c0_22, %c0_23] : memref<256x36xf32, #tpu.memory_space<vmem>>, vector<256x4xf32>
    tpu.vector_store %arg8[%c0_22, %c0_23], %12 {strides = array<i32>} : memref<256x36xf32, #tpu.memory_space<vmem>>, vector<256x4xf32>,
    %c0_24 = arith.constant 0 : index
    %c1_25 = arith.constant 1 : index
    %c0_26 = arith.constant 0 : index
    %14 = vector.load %arg7[%c0_24, %c1_25, %c0_26] : memref<18x18x4xf32, #tpu.memory_space<vmem>>, vector<16x16x4xf32>
    %15 = vector.shape_cast %14 : vector<16x16x4xf32> to vector<256x4xf32>
    %c0_27 = arith.constant 0 : index
    %c4 = arith.constant 4 : index
    %16 = vector.load %arg8[%c0_27, %c4] : memref<256x36xf32, #tpu.memory_space<vmem>>, vector<256x4xf32>
    tpu.vector_store %arg8[%c0_27, %c4], %15 {strides = array<i32>} : memref<256x36xf32, #tpu.memory_space<vmem>>, vector<256x4xf32>,
    %c0_28 = arith.constant 0 : index
    %c2 = arith.constant 2 : index
    %c0_29 = arith.constant 0 : index
    %17 = vector.load %arg7[%c0_28, %c2, %c0_29] : memref<18x18x4xf32, #tpu.memory_space<vmem>>, vector<16x16x4xf32>
    %18 = vector.shape_cast %17 : vector<16x16x4xf32> to vector<256x4xf32>
    %c0_30 = arith.constant 0 : index
    %c8 = arith.constant 8 : index
    %19 = vector.load %arg8[%c0_30, %c8] : memref<256x36xf32, #tpu.memory_space<vmem>>, vector<256x4xf32>
    tpu.vector_store %arg8[%c0_30, %c8], %18 {strides = array<i32>} : memref<256x36xf32, #tpu.memory_space<vmem>>, vector<256x4xf32>,
    %c1_31 = arith.constant 1 : index
    %c0_32 = arith.constant 0 : index
    %c0_33 = arith.constant 0 : index
    %20 = vector.load %arg7[%c1_31, %c0_32, %c0_33] : memref<18x18x4xf32, #tpu.memory_space<vmem>>, vector<16x16x4xf32>
    %21 = vector.shape_cast %20 : vector<16x16x4xf32> to vector<256x4xf32>
    %c0_34 = arith.constant 0 : index
    %c12 = arith.constant 12 : index
    %22 = vector.load %arg8[%c0_34, %c12] : memref<256x36xf32, #tpu.memory_space<vmem>>, vector<256x4xf32>
    tpu.vector_store %arg8[%c0_34, %c12], %21 {strides = array<i32>} : memref<256x36xf32, #tpu.memory_space<vmem>>, vector<256x4xf32>,
    %c1_35 = arith.constant 1 : index
    %c1_36 = arith.constant 1 : index
    %c0_37 = arith.constant 0 : index
    %23 = vector.load %arg7[%c1_35, %c1_36, %c0_37] : memref<18x18x4xf32, #tpu.memory_space<vmem>>, vector<16x16x4xf32>
    %24 = vector.shape_cast %23 : vector<16x16x4xf32> to vector<256x4xf32>
    %c0_38 = arith.constant 0 : index
    %c16 = arith.constant 16 : index
    %25 = vector.load %arg8[%c0_38, %c16] : memref<256x36xf32, #tpu.memory_space<vmem>>, vector<256x4xf32>
    tpu.vector_store %arg8[%c0_38, %c16], %24 {strides = array<i32>} : memref<256x36xf32, #tpu.memory_space<vmem>>, vector<256x4xf32>,
    %c1_39 = arith.constant 1 : index
    %c2_40 = arith.constant 2 : index
    %c0_41 = arith.constant 0 : index
    %26 = vector.load %arg7[%c1_39, %c2_40, %c0_41] : memref<18x18x4xf32, #tpu.memory_space<vmem>>, vector<16x16x4xf32>
    %27 = vector.shape_cast %26 : vector<16x16x4xf32> to vector<256x4xf32>
    %c0_42 = arith.constant 0 : index
    %c20 = arith.constant 20 : index
    %28 = vector.load %arg8[%c0_42, %c20] : memref<256x36xf32, #tpu.memory_space<vmem>>, vector<256x4xf32>
    tpu.vector_store %arg8[%c0_42, %c20], %27 {strides = array<i32>} : memref<256x36xf32, #tpu.memory_space<vmem>>, vector<256x4xf32>,
    %c2_43 = arith.constant 2 : index
    %c0_44 = arith.constant 0 : index
    %c0_45 = arith.constant 0 : index
    %29 = vector.load %arg7[%c2_43, %c0_44, %c0_45] : memref<18x18x4xf32, #tpu.memory_space<vmem>>, vector<16x16x4xf32>
    %30 = vector.shape_cast %29 : vector<16x16x4xf32> to vector<256x4xf32>
    %c0_46 = arith.constant 0 : index
    %c24 = arith.constant 24 : index
    %31 = vector.load %arg8[%c0_46, %c24] : memref<256x36xf32, #tpu.memory_space<vmem>>, vector<256x4xf32>
    tpu.vector_store %arg8[%c0_46, %c24], %30 {strides = array<i32>} : memref<256x36xf32, #tpu.memory_space<vmem>>, vector<256x4xf32>,
    %c2_47 = arith.constant 2 : index
    %c1_48 = arith.constant 1 : index
    %c0_49 = arith.constant 0 : index
    %32 = vector.load %arg7[%c2_47, %c1_48, %c0_49] : memref<18x18x4xf32, #tpu.memory_space<vmem>>, vector<16x16x4xf32>
    %33 = vector.shape_cast %32 : vector<16x16x4xf32> to vector<256x4xf32>
    %c0_50 = arith.constant 0 : index
    %c28 = arith.constant 28 : index
    %34 = vector.load %arg8[%c0_50, %c28] : memref<256x36xf32, #tpu.memory_space<vmem>>, vector<256x4xf32>
    tpu.vector_store %arg8[%c0_50, %c28], %33 {strides = array<i32>} : memref<256x36xf32, #tpu.memory_space<vmem>>, vector<256x4xf32>,
    %c2_51 = arith.constant 2 : index
    %c2_52 = arith.constant 2 : index
    %c0_53 = arith.constant 0 : index
    %35 = vector.load %arg7[%c2_51, %c2_52, %c0_53] : memref<18x18x4xf32, #tpu.memory_space<vmem>>, vector<16x16x4xf32>
    %36 = vector.shape_cast %35 : vector<16x16x4xf32> to vector<256x4xf32>
    %c0_54 = arith.constant 0 : index
    %c32 = arith.constant 32 : index
    %37 = vector.load %arg8[%c0_54, %c32] : memref<256x36xf32, #tpu.memory_space<vmem>>, vector<256x4xf32>
    tpu.vector_store %arg8[%c0_54, %c32], %36 {strides = array<i32>} : memref<256x36xf32, #tpu.memory_space<vmem>>, vector<256x4xf32>,
    %c0_55 = arith.constant 0 : index
    %c0_56 = arith.constant 0 : index
    %38 = vector.load %arg8[%c0_55, %c0_56] : memref<256x36xf32, #tpu.memory_space<vmem>>, vector<256x36xf32>
    %c0_57 = arith.constant 0 : index
    %c0_58 = arith.constant 0 : index
    %39 = vector.load %arg2[%c0_57, %c0_58] : memref<36x4xf32, #tpu.memory_space<vmem>>, vector<36x4xf32>
    %cst_59 = arith.constant dense<0.000000e+00> : vector<256x4xf32>
    %40 = tpu.matmul %38, %39, %cst_59 {dimension_numbers = #tpu.dot_dimension_numbers<[1], [0], [0], [1], [0, 0, 1, 1], [], []>} : vector<256x36xf32>, vector<36x4xf32>, vector<256x4xf32> -> vector<256x4xf32>
    %c0_60 = arith.constant 0 : index
    %c0_61 = arith.constant 0 : index
    %41 = vector.load %arg3[%c0_60, %c0_61] : memref<1x4xf32, #tpu.memory_space<vmem>>, vector<1x4xf32>
    %42 = vector.broadcast %41 : vector<1x4xf32> to vector<256x4xf32>
    %43 = arith.addf %40, %42 : vector<256x4xf32>
    %cst_62 = arith.constant 0.000000e+00 : f32
    %44 = vector.broadcast %cst_62 : f32 to vector<256x4xf32>
    %45 = arith.maximumf %43, %44 : vector<256x4xf32>
    %46 = vector.shape_cast %45 : vector<256x4xf32> to vector<16x16x4xf32>
    %c1_63 = arith.constant 1 : index
    %c1_64 = arith.constant 1 : index
    %c0_65 = arith.constant 0 : index
    %47 = vector.load %arg7[%c1_63, %c1_64, %c0_65] : memref<18x18x4xf32, #tpu.memory_space<vmem>>, vector<16x16x4xf32>
    tpu.vector_store %arg7[%c1_63, %c1_64, %c0_65], %46 {strides = array<i32>} : memref<18x18x4xf32, #tpu.memory_space<vmem>>, vector<16x16x4xf32>,
    %c0_66 = arith.constant 0 : index
    %c0_67 = arith.constant 0 : index
    %c0_68 = arith.constant 0 : index
    %48 = vector.load %arg7[%c0_66, %c0_67, %c0_68] : memref<18x18x4xf32, #tpu.memory_space<vmem>>, vector<16x16x4xf32>
    %49 = vector.shape_cast %48 : vector<16x16x4xf32> to vector<256x4xf32>
    %c0_69 = arith.constant 0 : index
    %c0_70 = arith.constant 0 : index
    %50 = vector.load %arg8[%c0_69, %c0_70] : memref<256x36xf32, #tpu.memory_space<vmem>>, vector<256x4xf32>
    tpu.vector_store %arg8[%c0_69, %c0_70], %49 {strides = array<i32>} : memref<256x36xf32, #tpu.memory_space<vmem>>, vector<256x4xf32>,
    %c0_71 = arith.constant 0 : index
    %c1_72 = arith.constant 1 : index
    %c0_73 = arith.constant 0 : index
    %51 = vector.load %arg7[%c0_71, %c1_72, %c0_73] : memref<18x18x4xf32, #tpu.memory_space<vmem>>, vector<16x16x4xf32>
    %52 = vector.shape_cast %51 : vector<16x16x4xf32> to vector<256x4xf32>
    %c0_74 = arith.constant 0 : index
    %c4_75 = arith.constant 4 : index
    %53 = vector.load %arg8[%c0_74, %c4_75] : memref<256x36xf32, #tpu.memory_space<vmem>>, vector<256x4xf32>
    tpu.vector_store %arg8[%c0_74, %c4_75], %52 {strides = array<i32>} : memref<256x36xf32, #tpu.memory_space<vmem>>, vector<256x4xf32>,
    %c0_76 = arith.constant 0 : index
    %c2_77 = arith.constant 2 : index
    %c0_78 = arith.constant 0 : index
    %54 = vector.load %arg7[%c0_76, %c2_77, %c0_78] : memref<18x18x4xf32, #tpu.memory_space<vmem>>, vector<16x16x4xf32>
    %55 = vector.shape_cast %54 : vector<16x16x4xf32> to vector<256x4xf32>
    %c0_79 = arith.constant 0 : index
    %c8_80 = arith.constant 8 : index
    %56 = vector.load %arg8[%c0_79, %c8_80] : memref<256x36xf32, #tpu.memory_space<vmem>>, vector<256x4xf32>
    tpu.vector_store %arg8[%c0_79, %c8_80], %55 {strides = array<i32>} : memref<256x36xf32, #tpu.memory_space<vmem>>, vector<256x4xf32>,
    %c1_81 = arith.constant 1 : index
    %c0_82 = arith.constant 0 : index
    %c0_83 = arith.constant 0 : index
    %57 = vector.load %arg7[%c1_81, %c0_82, %c0_83] : memref<18x18x4xf32, #tpu.memory_space<vmem>>, vector<16x16x4xf32>
    %58 = vector.shape_cast %57 : vector<16x16x4xf32> to vector<256x4xf32>
    %c0_84 = arith.constant 0 : index
    %c12_85 = arith.constant 12 : index
    %59 = vector.load %arg8[%c0_84, %c12_85] : memref<256x36xf32, #tpu.memory_space<vmem>>, vector<256x4xf32>
    tpu.vector_store %arg8[%c0_84, %c12_85], %58 {strides = array<i32>} : memref<256x36xf32, #tpu.memory_space<vmem>>, vector<256x4xf32>,
    %c1_86 = arith.constant 1 : index
    %c1_87 = arith.constant 1 : index
    %c0_88 = arith.constant 0 : index
    %60 = vector.load %arg7[%c1_86, %c1_87, %c0_88] : memref<18x18x4xf32, #tpu.memory_space<vmem>>, vector<16x16x4xf32>
    %61 = vector.shape_cast %60 : vector<16x16x4xf32> to vector<256x4xf32>
    %c0_89 = arith.constant 0 : index
    %c16_90 = arith.constant 16 : index
    %62 = vector.load %arg8[%c0_89, %c16_90] : memref<256x36xf32, #tpu.memory_space<vmem>>, vector<256x4xf32>
    tpu.vector_store %arg8[%c0_89, %c16_90], %61 {strides = array<i32>} : memref<256x36xf32, #tpu.memory_space<vmem>>, vector<256x4xf32>,
    %c1_91 = arith.constant 1 : index
    %c2_92 = arith.constant 2 : index
    %c0_93 = arith.constant 0 : index
    %63 = vector.load %arg7[%c1_91, %c2_92, %c0_93] : memref<18x18x4xf32, #tpu.memory_space<vmem>>, vector<16x16x4xf32>
    %64 = vector.shape_cast %63 : vector<16x16x4xf32> to vector<256x4xf32>
    %c0_94 = arith.constant 0 : index
    %c20_95 = arith.constant 20 : index
    %65 = vector.load %arg8[%c0_94, %c20_95] : memref<256x36xf32, #tpu.memory_space<vmem>>, vector<256x4xf32>
    tpu.vector_store %arg8[%c0_94, %c20_95], %64 {strides = array<i32>} : memref<256x36xf32, #tpu.memory_space<vmem>>, vector<256x4xf32>,
    %c2_96 = arith.constant 2 : index
    %c0_97 = arith.constant 0 : index
    %c0_98 = arith.constant 0 : index
    %66 = vector.load %arg7[%c2_96, %c0_97, %c0_98] : memref<18x18x4xf32, #tpu.memory_space<vmem>>, vector<16x16x4xf32>
    %67 = vector.shape_cast %66 : vector<16x16x4xf32> to vector<256x4xf32>
    %c0_99 = arith.constant 0 : index
    %c24_100 = arith.constant 24 : index
    %68 = vector.load %arg8[%c0_99, %c24_100] : memref<256x36xf32, #tpu.memory_space<vmem>>, vector<256x4xf32>
    tpu.vector_store %arg8[%c0_99, %c24_100], %67 {strides = array<i32>} : memref<256x36xf32, #tpu.memory_space<vmem>>, vector<256x4xf32>,
    %c2_101 = arith.constant 2 : index
    %c1_102 = arith.constant 1 : index
    %c0_103 = arith.constant 0 : index
    %69 = vector.load %arg7[%c2_101, %c1_102, %c0_103] : memref<18x18x4xf32, #tpu.memory_space<vmem>>, vector<16x16x4xf32>
    %70 = vector.shape_cast %69 : vector<16x16x4xf32> to vector<256x4xf32>
    %c0_104 = arith.constant 0 : index
    %c28_105 = arith.constant 28 : index
    %71 = vector.load %arg8[%c0_104, %c28_105] : memref<256x36xf32, #tpu.memory_space<vmem>>, vector<256x4xf32>
    tpu.vector_store %arg8[%c0_104, %c28_105], %70 {strides = array<i32>} : memref<256x36xf32, #tpu.memory_space<vmem>>, vector<256x4xf32>,
    %c2_106 = arith.constant 2 : index
    %c2_107 = arith.constant 2 : index
    %c0_108 = arith.constant 0 : index
    %72 = vector.load %arg7[%c2_106, %c2_107, %c0_108] : memref<18x18x4xf32, #tpu.memory_space<vmem>>, vector<16x16x4xf32>
    %73 = vector.shape_cast %72 : vector<16x16x4xf32> to vector<256x4xf32>
    %c0_109 = arith.constant 0 : index
    %c32_110 = arith.constant 32 : index
    %74 = vector.load %arg8[%c0_109, %c32_110] : memref<256x36xf32, #tpu.memory_space<vmem>>, vector<256x4xf32>
    tpu.vector_store %arg8[%c0_109, %c32_110], %73 {strides = array<i32>} : memref<256x36xf32, #tpu.memory_space<vmem>>, vector<256x4xf32>,
    %c0_111 = arith.constant 0 : index
    %c0_112 = arith.constant 0 : index
    %75 = vector.load %arg8[%c0_111, %c0_112] : memref<256x36xf32, #tpu.memory_space<vmem>>, vector<256x36xf32>
    %c0_113 = arith.constant 0 : index
    %c0_114 = arith.constant 0 : index
    %76 = vector.load %arg4[%c0_113, %c0_114] : memref<36x4xf32, #tpu.memory_space<vmem>>, vector<36x4xf32>
    %cst_115 = arith.constant dense<0.000000e+00> : vector<256x4xf32>
    %77 = tpu.matmul %75, %76, %cst_115 {dimension_numbers = #tpu.dot_dimension_numbers<[1], [0], [0], [1], [0, 0, 1, 1], [], []>} : vector<256x36xf32>, vector<36x4xf32>, vector<256x4xf32> -> vector<256x4xf32>
    %c0_116 = arith.constant 0 : index
    %c0_117 = arith.constant 0 : index
    %78 = vector.load %arg5[%c0_116, %c0_117] : memref<1x4xf32, #tpu.memory_space<vmem>>, vector<1x4xf32>
    %79 = vector.broadcast %78 : vector<1x4xf32> to vector<256x4xf32>
    %80 = arith.addf %77, %79 : vector<256x4xf32>
    %81 = vector.shape_cast %1 : vector<16x16x4xf32> to vector<256x4xf32>
    %82 = arith.addf %80, %81 : vector<256x4xf32>
    %cst_118 = arith.constant 0.000000e+00 : f32
    %83 = vector.broadcast %cst_118 : f32 to vector<256x4xf32>
    %84 = arith.maximumf %82, %83 : vector<256x4xf32>
    %85 = vector.shape_cast %84 : vector<256x4xf32> to vector<16x16x4xf32>
    %c0_119 = arith.constant 0 : index
    %c0_120 = arith.constant 0 : index
    %c0_121 = arith.constant 0 : index
    %c0_122 = arith.constant 0 : index
    %86 = vector.load %arg6[%c0_119, %c0_120, %c0_121, %c0_122] : memref<1x16x16x4xf32, #tpu.memory_space<vmem>>, vector<1x16x16x4xf32>
    %87 = vector.shape_cast %86 : vector<1x16x16x4xf32> to vector<16x16x4xf32>
    %88 = vector.shape_cast %85 : vector<16x16x4xf32> to vector<1x16x16x4xf32>
    tpu.vector_store %arg6[%c0_119, %c0_120, %c0_121, %c0_122], %88 {strides = array<i32>} : memref<1x16x16x4xf32, #tpu.memory_space<vmem>>, vector<1x16x16x4xf32>,
    return
  }
  func.func @transform_0(%arg0: i32) -> (i32, i32, i32, i32) {
    %c0_i32 = arith.constant 0 : i32
    %c0_i32_0 = arith.constant 0 : i32
    %c0_i32_1 = arith.constant 0 : i32
    %c0_i32_2 = arith.constant 0 : i32
    return %arg0, %c0_i32, %c0_i32_0, %c0_i32_1 : i32, i32, i32, i32
  }
  func.func @transform_1(%arg0: i32) -> (i32, i32) {
    %c0_i32 = arith.constant 0 : i32
    %c0_i32_0 = arith.constant 0 : i32
    %c0_i32_1 = arith.constant 0 : i32
    return %c0_i32, %c0_i32_0 : i32, i32
  }
  func.func @transform_2(%arg0: i32) -> (i32, i32) {
    %c0_i32 = arith.constant 0 : i32
    %c0_i32_0 = arith.constant 0 : i32
    %c0_i32_1 = arith.constant 0 : i32
    return %c0_i32, %c0_i32_0 : i32, i32
  }
  func.func @transform_3(%arg0: i32) -> (i32, i32) {
    %c0_i32 = arith.constant 0 : i32
    %c0_i32_0 = arith.constant 0 : i32
    %c0_i32_1 = arith.constant 0 : i32
    return %c0_i32, %c0_i32_0 : i32, i32
  }
  func.func @transform_4(%arg0: i32) -> (i32, i32) {
    %c0_i32 = arith.constant 0 : i32
    %c0_i32_0 = arith.constant 0 : i32
    %c0_i32_1 = arith.constant 0 : i32
    return %c0_i32, %c0_i32_0 : i32, i32
  }
  func.func @transform_5(%arg0: i32) -> (i32, i32, i32, i32) {
    %c0_i32 = arith.constant 0 : i32
    %c0_i32_0 = arith.constant 0 : i32
    %c0_i32_1 = arith.constant 0 : i32
    %c0_i32_2 = arith.constant 0 : i32
    return %arg0, %c0_i32, %c0_i32_0, %c0_i32_1 : i32, i32, i32, i32
  }
}

</mosaic_0001>

<bundles_post_ra>
// kernel: basic_block_pallas.1
= control target key start
LH: loop header
LB: loop body
LE: loop exit
PB: predicated region body
PF: predicated region fallthrough
CT: control target
= control target key end

     0   :  { %s4423_s18 = smov 0   ;;  %s6845_s0 = inlined_call_operand.vmem [shape: f32[2,16,16,4], index: 0, kind: input, shape index: {}]   ;;  %s6846_s1 = inlined_call_operand.vmem [shape: f32[36,4], index: 1, kind: input, shape index: {}]   ;;  %s6847_s2 = inlined_call_operand.vmem [shape: f32[1,4], index: 2, kind: input, shape index: {}]   ;;  %s6848_s3 = inlined_call_operand.vmem [shape: f32[36,4], index: 3, kind: input, shape index: {}]   ;;  %s6849_s4 = inlined_call_operand.vmem [shape: f32[1,4], index: 4, kind: input, shape index: {}]   ;;  %s6850_s5 = inlined_call_operand.vmem [shape: f32[2,16,16,4], index: 5, kind: output, shape index: {}]  }
   0x1 LB: > { %s4268_s19 = sadd.s32 4294967295, %s4382_s18   ;;  %p4272_p0 = scmp.ge.s32.totalorder %s4382_s18, 1  ;;  %s4382_s18 = sphi %s4423_s18, %s15_s18  }
   0x2   : > { %p187_p1 = scmp.lt.s32.totalorder %s4382_s18, 3 }
   0x4   : > { %p188_p2 = pnand %p4272_p0, %p187_p1 }
   0x6   : > { %191 = sbr.rel (%p188_p2) target bundleno = 1895 (0x767), region = 40 }
   0xb   : > { %vm257_vm0 = vcmask 31744   ;;  %p215_p3 = scmp.lt.s32.totalorder %s4268_s19, 1  ;;  %v4384_v0 = vmov 0.0   ;;  %vm260_vm1 = vcmask 25600   ;;  %s4385_s24 = smov 4   ;;  %vm266_vm2 = vcmask 24576  }
   0xc   : > { %258 = vst.msk [vmem:[#allocation2] sm:$0xff] %vm257_vm0, %v4384_v0  ;;  %s4386_s25 = smov 8   ;;  %vm560_vm3 = vcmask 64544   ;;  %s4387_s26 = smov 12   ;;  %vm753_vm4 = vcmask 97344   ;;  %vm946_vm5 = vcmask 130144  }
   0xd   : > { %259 = vst.msk [vmem:[#allocation2 + $0x8] sm:$0xff] %vm257_vm0, %v4384_v0  ;;  %s7132_s19 = smov (!%p215_p3, %s4268_s19), 1  ;;  %s4388_s27 = smov 16   ;;  %vm1139_vm6 = vcmask 162944   ;;  %vm1332_vm7 = vcmask 195744   ;;  %vm1526_vm8 = vcmask 228544  }
   0xe   : > { %263 = vst.msk [vmem:[#allocation2 + $0x198] sm:$0xff] %vm257_vm0, %v4384_v0  ;;  %s4345_s20 = sshll.u32 %s7132_s19, 8  ;;  %s4389_s28 = smov 20   ;;  %vm1719_vm9 = vcmask 261344   ;;  %vm2083_vm10 = vcmask 1043456   ;;  %vm1912_vm11 = vcmask 294144  }
   0xf   : > { %264 = vst.msk [vmem:[#allocation2 + $0x1a0] sm:$0xff] %vm257_vm0, %v4384_v0  ;;  %s4448_s23 = scalar_lea.vmem %s6845_s0, %s4345_s20  ;;  %s4390_s29 = smov 24   ;;  %vm1986_vm12 = vcmask 293888  }
  0x10   : > { %261 = vst.msk [vmem:[#allocation2 + $0x10] sm:$0x3] %vm260_vm1, %v4384_v0  ;;  %v4452_v1 = vld [vmem:[%s4448_s23] sm:$0xff]  ;;  %v4458_v3 = vld [vmem:[%s4448_s23 + $0x8] sm:$0xff]  ;;  %v4463_v4 = vld [vmem:[%s4448_s23 + $0x38] sm:$0xff]  ;;  %s4391_s30 = smov 28   ;;  %s6651_s14 = scalar_lea.vmem %s6850_s5, %s4345_s20 }
  0x11   : > { %265 = vst.msk [vmem:[#allocation2 + $0x1a8] sm:$0x3] %vm260_vm1, %v4384_v0  ;;  %v4455_v2 = vld [vmem:[%s4448_s23 + $0x20] sm:$0xff]  ;;  %v4468_v5 = vld [vmem:[%s4448_s23 + $0x10] sm:$0xff]  ;;  %v4473_v7 = vld [vmem:[%s4448_s23 + $0x28] sm:$0xff]  ;;  %s4392_s6 = smov 32  }
  0x12   : > { %6947 = vst [vmem:[#allocation4_spill] sm:$0xff] %v4452_v1  ;;  %v4479_v8 = vld [vmem:[%s4448_s23 + $0x50] sm:$0xff]  ;;  %v4484_v9 = vld [vmem:[%s4448_s23 + $0x18] sm:$0xff]  ;;  %v4489_v10 = vld [vmem:[%s4448_s23 + $0x40] sm:$0xff] }
  0x13   : > { %6948 = vst [vmem:[#allocation5_spill] sm:$0xff] %v4455_v2  ;;  %v4494_v11 = vld [vmem:[%s4448_s23 + $0x68] sm:$0xff]  ;;  %v4501_v13 = vld [vmem:[%s4448_s23 + $0x30] sm:$0xff]  ;;  %v4508_v15 = vld [vmem:[%s4448_s23 + $0x58] sm:$0xff] }
  0x14   : > { %6949 = vst [vmem:[#allocation6_spill] sm:$0xff] %v4458_v3  ;;  %v400_v6 = vld [vmem:[#allocation2 + $0x1] sm:$0xff]  ;;  %v4526_v19 = vld [vmem:[%s4448_s23 + $0x70] sm:$0xff]  ;;  %v4545_v23 = vld [vmem:[%s4448_s23 + $0x98] sm:$0xff] }
  0x15   : > { %304 = vst.msk [vmem:[#allocation2 + $0x19] sm:$0xff] %vm257_vm0, %v4452_v1  ;;  %464 = vrot.lane.b32.xlu0 %v400_v6, %s4385_s24  ;;  %v4515_v16 = vld [vmem:[%s4448_s23 + $0x80] sm:$0xff]  ;;  %v4518_v17 = vld [vmem:[%s4448_s23 + $0x48] sm:$0xff]  ;;  %v4572_v29 = vld [vmem:[%s4448_s23 + $0xb0] sm:$0xff] }
  0x16   : > { %6950 = vst [vmem:[#allocation7_spill] sm:$0xff] %v4463_v4  ;;  %v4548_v24 = vld [vmem:[%s4448_s23 + $0x60] sm:$0xff]  ;;  %v4555_v25 = vld [vmem:[%s4448_s23 + $0x88] sm:$0xff]  ;;  %v4575_v30 = vld [vmem:[%s4448_s23 + $0x78] sm:$0xff] }
  0x17   : > { %308 = vst.msk [vmem:[#allocation2 + $0x49] sm:$0xff] %vm257_vm0, %v4455_v2  ;;  %v401_v14 = vld [vmem:[#allocation2 + $0x9] sm:$0xff]  ;;  %v4582_v31 = vld [vmem:[%s4448_s23 + $0xa0] sm:$0xff]  ;;  %v4609_v37 = vld [vmem:[%s4448_s23 + $0xb8] sm:$0xff] }
  0x18   : > { %6951 = vst [vmem:[#allocation8_spill] sm:$0xff] %v4468_v5  ;;  %v4599_v35 = vld [vmem:[%s4448_s23 + $0xc8] sm:$0xff]  ;;  %v4602_v36 = vld [vmem:[%s4448_s23 + $0x90] sm:$0xff]  ;;  %v4626_v41 = vld [vmem:[%s4448_s23 + $0xe0] sm:$0xff] }
  0x19   : > { %305 = vst.msk [vmem:[#allocation2 + $0x21] sm:$0xff] %vm257_vm0, %v4458_v3  ;;  %v4629_v42 = vld [vmem:[%s4448_s23 + $0xa8] sm:$0xff]  ;;  %v4636_v43 = vld [vmem:[%s4448_s23 + $0xd0] sm:$0xff]  ;;  %v4765_v57 = vld [vmem:[%s4448_s23 + $0xc0] sm:$0xff] }
  0x1a   : > { %6952 = vst [vmem:[#allocation9_spill] sm:$0xff] %v4473_v7  ;;  %v4770_v58 = vld [vmem:[%s4448_s23 + $0xe8] sm:$0xff]  ;;  %v4775_v59 = vld [vmem:[%s4448_s23 + $0xd8] sm:$0xff] }
  0x1b   : > { %311 = vst.msk [vmem:[#allocation2 + $0x69] sm:$0xff] %vm257_vm0, %v4463_v4 }
  0x1c   : > { %6953 = vst [vmem:[#allocation10_spill] sm:$0xff] %v4479_v8  ;;  %v4496_v12 = vld [vmem:[#allocation2 + $0x19] sm:$0xff] }
  0x1d   : > { %306 = vst.msk [vmem:[#allocation2 + $0x31] sm:$0xff] %vm257_vm0, %v4468_v5  ;;  %468 = vrot.lane.b32.xlu1 %v4496_v12, %s4385_s24  ;;  %466 = vrot.lane.b32.xlu0 %v401_v14, %s4385_s24  ;;  %v337_v14 = vld [vmem:[#allocation2 + $0x8] sm:$0xff] }
  0x1e   : > { %6954 = vst [vmem:[#allocation11_spill] sm:$0xff] %v4484_v9  ;;  %v4538_v21 = vld [vmem:[#allocation2 + $0x49] sm:$0xff] }
  0x1f   : > { %309 = vst.msk [vmem:[#allocation2 + $0x51] sm:$0xff] %vm257_vm0, %v4473_v7 }
  0x20   : > { %6955 = vst [vmem:[#allocation12_spill] sm:$0xff] %v4489_v10  ;;  %v4532_v20 = vld [vmem:[#allocation2 + $0x21] sm:$0xff] }
  0x21   : > { %314 = vst.msk [vmem:[#allocation2 + $0x91] sm:$0xff] %vm257_vm0, %v4479_v8 }
  0x22   : > { %6956 = vst [vmem:[#allocation13_spill] sm:$0xff] %v4494_v11  ;;  %v4565_v27 = vld [vmem:[#allocation2 + $0x69] sm:$0xff] }
  0x23   : > { %307 = vst.msk [vmem:[#allocation2 + $0x39] sm:$0xff] %vm257_vm0, %v4484_v9 }
  0x24   : > { %6957 = vst [vmem:[#allocation14_spill] sm:$0xff] %v4501_v13  ;;  %v4521_v18 = vld [vmem:[#allocation2 + $0x31] sm:$0xff] }
  0x25   : > { %312 = vst.msk [vmem:[#allocation2 + $0x79] sm:$0xff] %vm257_vm0, %v4489_v10  ;;  %472 = vrot.lane.b32.xlu2 %v4521_v18, %s4385_s24  ;;  %470 = vrot.lane.b32.xlu1 %v4532_v20, %s4385_s24 }
  0x26   : > { %6958 = vst [vmem:[#allocation15_spill] sm:$0xff] %v4508_v15  ;;  %476 = vrot.lane.b32.xlu0 %v4538_v21, %s4385_s24  ;;  %v4561_v26 = vld [vmem:[#allocation2 + $0x51] sm:$0xff] }
  0x27   : > { %317 = vst.msk [vmem:[#allocation2 + $0xb1] sm:$0xff] %vm257_vm0, %v4494_v11 }
  0x28   : > { %310 = vst.msk [vmem:[#allocation2 + $0x61] sm:$0xff] %vm257_vm0, %v4501_v13  ;;  %v4592_v33 = vld [vmem:[#allocation2 + $0x91] sm:$0xff] }
  0x29   : > { %6959 = vst [vmem:[#allocation16_spill] sm:$0xff] %v4515_v16 }
  0x2a   : > { %6960 = vst [vmem:[#allocation17_spill] sm:$0xff] %v4518_v17  ;;  %v4542_v22 = vld [vmem:[#allocation2 + $0x39] sm:$0xff] }
  0x2b   : > { %315 = vst.msk [vmem:[#allocation2 + $0x99] sm:$0xff] %vm257_vm0, %v4508_v15  ;;  %v4797_v6 = vld [vmem:[#allocation2 + $0x32] sm:$0xff] }
  0x2c   : > { %6961 = vst [vmem:[#allocation18_spill] sm:$0xff] %v4526_v19  ;;  %v4588_v32 = vld [vmem:[#allocation2 + $0x79] sm:$0xff] }
  0x2d   : > { %320 = vst.msk [vmem:[#allocation2 + $0xd9] sm:$0xff] %vm257_vm0, %v4515_v16  ;;  %474 = vrot.lane.b32.xlu2 %v4542_v22, %s4385_s24  ;;  %478 = vrot.lane.b32.xlu1 %v4561_v26, %s4385_s24 }
  0x2e   : > { %313 = vst.msk [vmem:[#allocation2 + $0x81] sm:$0xff] %vm257_vm0, %v4518_v17  ;;  %482 = vrot.lane.b32.xlu0 %v4565_v27, %s4385_s24  ;;  %v4619_v39 = vld [vmem:[#allocation2 + $0xb1] sm:$0xff] }
  0x2f   : > { %318 = vst.msk [vmem:[#allocation2 + $0xc1] sm:$0xff] %vm257_vm0, %v4526_v19  ;;  %v4569_v28 = vld [vmem:[#allocation2 + $0x61] sm:$0xff] }
  0x30   : > { %6962 = vst [vmem:[#allocation19_spill] sm:$0xff] %v4545_v23  ;;  %v4812_v19 = vld [vmem:[#allocation2 + $0x1a] sm:$0xff] }
  0x31   : > { %6963 = vst [vmem:[#allocation20_spill] sm:$0xff] %v4548_v24 }
  0x32   : > { %323 = vst.msk [vmem:[#allocation2 + $0xf9] sm:$0xff] %vm257_vm0, %v4545_v23  ;;  %v4615_v38 = vld [vmem:[#allocation2 + $0x99] sm:$0xff] }
  0x33   : > { %6964 = vst [vmem:[#allocation21_spill] sm:$0xff] %v4555_v25  ;;  %v4902_v23 = vld [vmem:[#allocation2 + $0x98] sm:$0xff] }
  0x34   : > { %316 = vst.msk [vmem:[#allocation2 + $0xa9] sm:$0xff] %vm257_vm0, %v4548_v24  ;;  %v4646_v45 = vld [vmem:[#allocation2 + $0xd9] sm:$0xff] }
  0x35   : > { %321 = vst.msk [vmem:[#allocation2 + $0xe1] sm:$0xff] %vm257_vm0, %v4555_v25  ;;  %480 = vrot.lane.b32.xlu2 %v4569_v28, %s4385_s24  ;;  %484 = vrot.lane.b32.xlu1 %v4588_v32, %s4385_s24  ;;  %v4596_v34 = vld [vmem:[#allocation2 + $0x81] sm:$0xff] }
  0x36   : > { %6965 = vst [vmem:[#allocation22_spill] sm:$0xff] %v4572_v29  ;;  %488 = vrot.lane.b32.xlu0 %v4592_v33, %s4385_s24  ;;  %v4642_v44 = vld [vmem:[#allocation2 + $0xc1] sm:$0xff] }
  0x37   : > { %6966 = vst [vmem:[#allocation23_spill] sm:$0xff] %v4575_v30  ;;  %v4838_v8 = vld [vmem:[#allocation2 + $0x7a] sm:$0xff] }
  0x38   : > { %326 = vst.msk [vmem:[#allocation2 + $0x121] sm:$0xff] %vm257_vm0, %v4572_v29  ;;  %v4845_v17 = vld [vmem:[#allocation2 + $0x80] sm:$0xff] }
  0x39   : > { %6967 = vst [vmem:[#allocation24_spill] sm:$0xff] %v4582_v31  ;;  %v4668_v48 = vld [vmem:[#allocation2 + $0xf9] sm:$0xff] }
  0x3a   : > { %319 = vst.msk [vmem:[#allocation2 + $0xc9] sm:$0xff] %vm257_vm0, %v4575_v30 }
  0x3b   : > { %324 = vst.msk [vmem:[#allocation2 + $0x109] sm:$0xff] %vm257_vm0, %v4582_v31  ;;  %v4623_v40 = vld [vmem:[#allocation2 + $0xa9] sm:$0xff] }
  0x3c   : > { %6968 = vst [vmem:[#allocation25_spill] sm:$0xff] %v4599_v35  ;;  %v4660_v47 = vld [vmem:[#allocation2 + $0xe1] sm:$0xff]  ;;  %v4896_v31 = vld [vmem:[#allocation2 + $0xb0] sm:$0xff] }
  0x3d   : > { %6969 = vst [vmem:[#allocation26_spill] sm:$0xff] %v4602_v36  ;;  %486 = vrot.lane.b32.xlu2 %v4596_v34, %s4385_s24  ;;  %490 = vrot.lane.b32.xlu1 %v4615_v38, %s4385_s24  ;;  %v4913_v5 = vld [vmem:[#allocation2 + $0xaa] sm:$0xff] }
  0x3e   : > { %329 = vst.msk [vmem:[#allocation2 + $0x141] sm:$0xff] %vm257_vm0, %v4599_v35  ;;  %494 = vrot.lane.b32.xlu0 %v4619_v39, %s4385_s24  ;;  %v4847_v35 = vld [vmem:[#allocation2 + $0x50] sm:$0xff] }
  0x3f   : > { %6970 = vst [vmem:[#allocation27_spill] sm:$0xff] %v4609_v37  ;;  %v4696_v51 = vld [vmem:[#allocation2 + $0x121] sm:$0xff] }
  0x40   : > { %322 = vst.msk [vmem:[#allocation2 + $0xf1] sm:$0xff] %vm257_vm0, %v4602_v36 }
  0x41   : > { %327 = vst.msk [vmem:[#allocation2 + $0x129] sm:$0xff] %vm257_vm0, %v4609_v37  ;;  %v4650_v46 = vld [vmem:[#allocation2 + $0xc9] sm:$0xff] }
  0x42   : > { %6971 = vst [vmem:[#allocation28_spill] sm:$0xff] %v4626_v41  ;;  %v4688_v50 = vld [vmem:[#allocation2 + $0x109] sm:$0xff] }
  0x43   : > { %6972 = vst [vmem:[#allocation29_spill] sm:$0xff] %v4629_v42  ;;  %v4898_v9 = vld [vmem:[#allocation2 + $0xc8] sm:$0xff] }
  0x44   : > { %332 = vst.msk [vmem:[#allocation2 + $0x169] sm:$0xff] %vm257_vm0, %v4626_v41  ;;  %v4825_v41 = vld [vmem:[#allocation2 + $0x20] sm:$0xff] }
  0x45   : > { %6973 = vst [vmem:[#allocation30_spill] sm:$0xff] %v4636_v43  ;;  %492 = vrot.lane.b32.xlu2 %v4623_v40, %s4385_s24  ;;  %496 = vrot.lane.b32.xlu1 %v4642_v44, %s4385_s24  ;;  %v4724_v54 = vld [vmem:[#allocation2 + $0x141] sm:$0xff] }
  0x46   : > { %325 = vst.msk [vmem:[#allocation2 + $0x111] sm:$0xff] %vm257_vm0, %v4629_v42  ;;  %500 = vrot.lane.b32.xlu0 %v4646_v45, %s4385_s24 }
  0x47   : > { %330 = vst.msk [vmem:[#allocation2 + $0x151] sm:$0xff] %vm257_vm0, %v4636_v43  ;;  %v4674_v49 = vld [vmem:[#allocation2 + $0xf1] sm:$0xff]  ;;  %v4843_v43 = vld [vmem:[#allocation2 + $0x68] sm:$0xff] }
  0x48   : > { %285 = vst.msk [vmem:[#allocation2 + $0x11] sm:$0x1] %vm266_vm2, %v4384_v0  ;;  %v4716_v53 = vld [vmem:[#allocation2 + $0x129] sm:$0xff] }
  0x49   : > { %267 = vst.msk [vmem:[#allocation2] sm:$0x1] %vm266_vm2, %v4384_v0 }
  0x4a   : > { %268 = vst.msk [vmem:[#allocation2 + $0x18] sm:$0x1] %vm266_vm2, %v4384_v0 }
  0x4b   : > { %269 = vst.msk [vmem:[#allocation2 + $0x30] sm:$0x1] %vm266_vm2, %v4384_v0  ;;  %v4748_v56 = vld [vmem:[#allocation2 + $0x169] sm:$0xff] }
  0x4c   : > { %270 = vst.msk [vmem:[#allocation2 + $0x48] sm:$0x1] %vm266_vm2, %v4384_v0 }
  0x4d   : > { %498 = vrot.lane.b32.xlu2 %v4650_v46, %s4385_s24  ;;  %502 = vrot.lane.b32.xlu1 %v4660_v47, %s4385_s24  ;;  %271 = vst.msk [vmem:[#allocation2 + $0x60] sm:$0x1] %vm266_vm2, %v4384_v0  ;;  %v4702_v52 = vld [vmem:[#allocation2 + $0x111] sm:$0xff] }
  0x4e   : > { %272 = vst.msk [vmem:[#allocation2 + $0x78] sm:$0x1] %vm266_vm2, %v4384_v0  ;;  %506 = vrot.lane.b32.xlu0 %v4668_v48, %s4385_s24  ;;  %v4740_v55 = vld [vmem:[#allocation2 + $0x151] sm:$0xff] }
  0x4f   : > { %273 = vst.msk [vmem:[#allocation2 + $0x90] sm:$0x1] %vm266_vm2, %v4384_v0  ;;  %v594_v60 = vld [vmem:[#allocation2 + $0xa] sm:$0xff] }
  0x50   : > { %274 = vst.msk [vmem:[#allocation2 + $0xa8] sm:$0x1] %vm266_vm2, %v4384_v0  ;;  %v336_v61 = vld [vmem:[#allocation2] sm:$0xff] }
  0x51   : > { %275 = vst.msk [vmem:[#allocation2 + $0xc0] sm:$0x1] %vm266_vm2, %v4384_v0 }
  0x52   : > { %276 = vst.msk [vmem:[#allocation2 + $0xd8] sm:$0x1] %vm266_vm2, %v4384_v0  ;;  %v4781_v62 = vld [vmem:[#allocation2 + $0x30] sm:$0xff] }
  0x53   : > { %277 = vst.msk [vmem:[#allocation2 + $0xf0] sm:$0x1] %vm266_vm2, %v4384_v0 }
  0x54   : > { %278 = vst.msk [vmem:[#allocation2 + $0x108] sm:$0x1] %vm266_vm2, %v4384_v0  ;;  %v4823_v24 = vld [vmem:[#allocation2 + $0x60] sm:$0xff] }
  0x55   : > { %504 = vrot.lane.b32.xlu2 %v4674_v49, %s4385_s24  ;;  %508 = vrot.lane.b32.xlu1 %v4688_v50, %s4385_s24  ;;  %279 = vst.msk [vmem:[#allocation2 + $0x120] sm:$0x1] %vm266_vm2, %v4384_v0  ;;  %v4875_v29 = vld [vmem:[#allocation2 + $0x78] sm:$0xff] }
  0x56   : > { %280 = vst.msk [vmem:[#allocation2 + $0x138] sm:$0x1] %vm266_vm2, %v4384_v0  ;;  %512 = vrot.lane.b32.xlu0 %v4696_v51, %s4385_s24  ;;  %v4869_v37 = vld [vmem:[#allocation2 + $0x90] sm:$0xff] }
  0x57   : > { %281 = vst.msk [vmem:[#allocation2 + $0x150] sm:$0x1] %vm266_vm2, %v4384_v0  ;;  %v4871_v13 = vld [vmem:[#allocation2 + $0xa8] sm:$0xff] }
  0x58   : > { %282 = vst.msk [vmem:[#allocation2 + $0x168] sm:$0x1] %vm266_vm2, %v4384_v0  ;;  %v4929_v16 = vld [vmem:[#allocation2 + $0xc0] sm:$0xff] }
  0x59   : > { %283 = vst.msk [vmem:[#allocation2 + $0x180] sm:$0x1] %vm266_vm2, %v4384_v0  ;;  %v4923_v25 = vld [vmem:[#allocation2 + $0xd8] sm:$0xff] }
  0x5a   : > { %284 = vst.msk [vmem:[#allocation2 + $0x198] sm:$0x1] %vm266_vm2, %v4384_v0  ;;  %v4925_v1 = vld [vmem:[#allocation2 + $0xf0] sm:$0xff] }
  0x5b   : > { %286 = vst.msk [vmem:[#allocation2 + $0x29] sm:$0x1] %vm266_vm2, %v4384_v0 }
  0x5c   : > { %287 = vst.msk [vmem:[#allocation2 + $0x41] sm:$0x1] %vm266_vm2, %v4384_v0 }
  0x5d   : > { %510 = vrot.lane.b32.xlu2 %v4702_v52, %s4385_s24  ;;  %514 = vrot.lane.b32.xlu1 %v4716_v53, %s4385_s24  ;;  %288 = vst.msk [vmem:[#allocation2 + $0x59] sm:$0x1] %vm266_vm2, %v4384_v0 }
  0x5e   : > { %289 = vst.msk [vmem:[#allocation2 + $0x71] sm:$0x1] %vm266_vm2, %v4384_v0  ;;  %518 = vrot.lane.b32.xlu0 %v4724_v54, %s4385_s24 }
  0x5f   : > { %290 = vst.msk [vmem:[#allocation2 + $0x89] sm:$0x1] %vm266_vm2, %v4384_v0 }
  0x60   : > { %291 = vst.msk [vmem:[#allocation2 + $0xa1] sm:$0x1] %vm266_vm2, %v4384_v0 }
  0x61   : > { %292 = vst.msk [vmem:[#allocation2 + $0xb9] sm:$0x1] %vm266_vm2, %v4384_v0 }
  0x62   : > { %6974 = vst [vmem:[#allocation31_spill] sm:$0xff] %v4740_v55 }
  0x63   : > { %293 = vst.msk [vmem:[#allocation2 + $0xd1] sm:$0x1] %vm266_vm2, %v4384_v0  ;;  %v4835_v15 = vld [vmem:[#allocation2 + $0x3a] sm:$0xff] }
  0x64   : > { %294 = vst.msk [vmem:[#allocation2 + $0xe9] sm:$0x1] %vm266_vm2, %v4384_v0 }
  0x65   : > { %295 = vst.msk [vmem:[#allocation2 + $0x101] sm:$0x1] %vm266_vm2, %v4384_v0  ;;  %520 = vrot.lane.b32.xlu1 %v4740_v55, %s4385_s24 }
  0x66   : > { %296 = vst.msk [vmem:[#allocation2 + $0x119] sm:$0x1] %vm266_vm2, %v4384_v0  ;;  %524 = vrot.lane.b32.xlu0 %v4748_v56, %s4385_s24  ;;  %v4886_v7 = vld [vmem:[#allocation2 + $0x82] sm:$0xff] }
  0x67   : > { %297 = vst.msk [vmem:[#allocation2 + $0x131] sm:$0x1] %vm266_vm2, %v4384_v0  ;;  %v4867_v4 = vld [vmem:[#allocation2 + $0x9a] sm:$0xff] }
  0x68   : > { %298 = vst.msk [vmem:[#allocation2 + $0x149] sm:$0x1] %vm266_vm2, %v4384_v0 }
  0x69   : > { %299 = vst.msk [vmem:[#allocation2 + $0x161] sm:$0x1] %vm266_vm2, %v4384_v0 }
  0x6a   : > { %300 = vst.msk [vmem:[#allocation2 + $0x179] sm:$0x1] %vm266_vm2, %v4384_v0 }
  0x6b   : > { %6975 = vst [vmem:[#allocation32_spill] sm:$0xff] %v4765_v57 }
  0x6c   : > { %301 = vst.msk [vmem:[#allocation2 + $0x191] sm:$0x1] %vm266_vm2, %v4384_v0 }
  0x6d   : > { %6976 = vst [vmem:[#allocation33_spill] sm:$0xff] %v4770_v58 }
  0x6e   : > { %302 = vst.msk [vmem:[#allocation2 + $0x1a9] sm:$0x1] %vm266_vm2, %v4384_v0  ;;  %659 = vrot.lane.b32.xlu0 %v594_v60, %s4386_s25  ;;  %v4802_v60 = vld [vmem:[#allocation2 + $0x18] sm:$0xff] }
  0x6f   : > { %6977 = vst [vmem:[#allocation34_spill] sm:$0xff] %v4775_v59 }
  0x70   : > { %328 = vst.msk [vmem:[#allocation2 + $0x139] sm:$0xff] %vm257_vm0, %v4765_v57 }
  0x71   : > { %333 = vst.msk [vmem:[#allocation2 + $0x171] sm:$0xff] %vm257_vm0, %v4770_v58  ;;  %v4821_v58 = vld [vmem:[#allocation2 + $0x48] sm:$0xff] }
  0x72   : > { %331 = vst.msk [vmem:[#allocation2 + $0x159] sm:$0xff] %vm257_vm0, %v4775_v59 }
  0x73   : > { %368 = vst.msk [vmem:[#allocation3] sm:$0xff] %vm257_vm0, %v336_v61  ;;  %v4799_v61 = vld [vmem:[#allocation2 + $0x38] sm:$0xff] }
  0x74   : > { %372 = vst.msk [vmem:[#allocation3 + $0x20] sm:$0xff] %vm257_vm0, %v4781_v62 }
  0x75   : > { %6979 = vst [vmem:[#allocation36_spill] sm:$0xff] %v4797_v6 }
  0x76   : > { %369 = vst.msk [vmem:[#allocation3 + $0x8] sm:$0xff] %vm257_vm0, %v337_v14  ;;  %665 = vrot.lane.b32.xlu0 %v4797_v6, %s4386_s25  ;;  %v4816_v14 = vld [vmem:[#allocation2 + $0x52] sm:$0xff]  ;;  %v5010_v6 = vld [vmem:[#allocation2 + $0x128] sm:$0xff] }
  0x77   : > { %v4789_v63 = vld [vmem:[#allocation2 + $0x139] sm:$0xff]  ;;  %373 = vst.msk [vmem:[#allocation3 + $0x28] sm:$0xff] %vm257_vm0, %v4799_v61 }
  0x78   : > { %516 = vrot.lane.b32.xlu2 %v4789_v63, %s4385_s24  ;;  %v4793_v0 = vld [vmem:[#allocation2 + $0x171] sm:$0xff]  ;;  %370 = vst.msk [vmem:[#allocation3 + $0x10] sm:$0xff] %vm257_vm0, %v4802_v60 }
  0x79   : > { %6978 = vst [vmem:[#allocation35_spill] sm:$0xff] %v4793_v0  ;;  %526 = vrot.lane.b32.xlu1 %v4793_v0, %s4385_s24  ;;  %v4810_v30 = vld [vmem:[#allocation2 + $0x159] sm:$0xff]  ;;  %v5050_v55 = vld [vmem:[#allocation2 + $0x170] sm:$0xff] }
  0x7a   : > { %6980 = vst [vmem:[#allocation37_spill] sm:$0xff] %v4812_v19  ;;  %v5028_v0 = vld [vmem:[#allocation2 + $0x172] sm:$0xff] }
  0x7b   : > { %6981 = vst [vmem:[#allocation38_spill] sm:$0xff] %v4816_v14 }
  0x7c   : > { %374 = vst.msk [vmem:[#allocation3 + $0x30] sm:$0xff] %vm257_vm0, %v4821_v58 }
  0x7d   : > { %376 = vst.msk [vmem:[#allocation3 + $0x40] sm:$0xff] %vm257_vm0, %v4823_v24 }
  0x7e   : > { %671 = vrot.lane.b32.xlu0 %v4816_v14, %s4386_s25  ;;  %371 = vst.msk [vmem:[#allocation3 + $0x18] sm:$0xff] %vm257_vm0, %v4825_v41  ;;  %v4983_v14 = vld [vmem:[#allocation2 + $0x108] sm:$0xff] }
  0x7f   : > { %v473_v11 = vpop.permute.xlu2 %472  ;;  %6982 = vst [vmem:[#allocation39_spill] sm:$0xff] %v4835_v15 }
  0x80   : > { %522 = vrot.lane.b32.xlu2 %v4810_v30, %s4385_s24  ;;  %565 = vst.msk [vmem:[#allocation3 + $0x20] sm:$0xff] %vm560_vm3, %v473_v11  ;;  %v593_v11 = vld [vmem:[#allocation2 + $0x2] sm:$0xff] }
  0x81   : > { %661 = vrot.lane.b32.xlu1 %v4812_v19, %s4386_s25  ;;  %6983 = vst [vmem:[#allocation40_spill] sm:$0xff] %v4838_v8 }
  0x82   : > { %377 = vst.msk [vmem:[#allocation3 + $0x48] sm:$0xff] %vm257_vm0, %v4843_v43 }
  0x83   : > { %379 = vst.msk [vmem:[#allocation3 + $0x58] sm:$0xff] %vm257_vm0, %v4845_v17 }
  0x84   : > { %375 = vst.msk [vmem:[#allocation3 + $0x38] sm:$0xff] %vm257_vm0, %v4847_v35 }
  0x85   : > { %6986 = vst [vmem:[#allocation43_spill] sm:$0xff] %v4867_v4 }
  0x86   : > { %677 = vrot.lane.b32.xlu0 %v4838_v8, %s4386_s25  ;;  %380 = vst.msk [vmem:[#allocation3 + $0x60] sm:$0xff] %vm257_vm0, %v4869_v37 }
  0x87   : > { %v475_v59 = vpop.permute.xlu2 %474  ;;  %v465_v10 = vpop.permute.xlu0 %464  ;;  %382 = vst.msk [vmem:[#allocation3 + $0x70] sm:$0xff] %vm257_vm0, %v4871_v13 }
  0x88   : > { %657 = vrot.lane.b32.xlu2 %v593_v11, %s4386_s25  ;;  %566 = vst.msk [vmem:[#allocation3 + $0x28] sm:$0xff] %vm560_vm3, %v475_v59  ;;  %v4857_v59 = vld [vmem:[#allocation2 + $0x22] sm:$0xff] }
  0x89   : > { %667 = vrot.lane.b32.xlu1 %v4835_v15, %s4386_s25  ;;  %6984 = vst [vmem:[#allocation41_spill] sm:$0xff] %v4857_v59  ;;  %v4859_v11 = vld [vmem:[#allocation2 + $0x62] sm:$0xff] }
  0x8a   : > { %6985 = vst [vmem:[#allocation42_spill] sm:$0xff] %v4859_v11 }
  0x8b   : > { %561 = vst.msk [vmem:[#allocation3] sm:$0xff] %vm560_vm3, %v465_v10 }
  0x8c   : > { %378 = vst.msk [vmem:[#allocation3 + $0x50] sm:$0xff] %vm257_vm0, %v4875_v29 }
  0x8d   : > { %6988 = vst [vmem:[#allocation45_spill] sm:$0xff] %v4886_v7 }
  0x8e   : > { %683 = vrot.lane.b32.xlu0 %v4867_v4, %s4386_s25  ;;  %383 = vst.msk [vmem:[#allocation3 + $0x78] sm:$0xff] %vm257_vm0, %v4896_v31  ;;  %v4952_v4 = vld [vmem:[#allocation2 + $0x110] sm:$0xff] }
  0x8f   : > { %v481_v57 = vpop.permute.xlu2 %480  ;;  %v469_v10 = vpop.permute.xlu1 %468  ;;  %385 = vst.msk [vmem:[#allocation3 + $0x88] sm:$0xff] %vm257_vm0, %v4898_v9 }
  0x90   : > { %663 = vrot.lane.b32.xlu2 %v4857_v59, %s4386_s25  ;;  %569 = vst.msk [vmem:[#allocation3 + $0x40] sm:$0xff] %vm560_vm3, %v481_v57  ;;  %v4882_v57 = vld [vmem:[#allocation2 + $0x4a] sm:$0xff]  ;;  %v467_v42 = vpop.permute.xlu0 %466 }
  0x91   : > { %673 = vrot.lane.b32.xlu1 %v4859_v11, %s4386_s25  ;;  %563 = vst.msk [vmem:[#allocation3 + $0x10] sm:$0xff] %vm560_vm3, %v469_v10  ;;  %v4894_v10 = vld [vmem:[#allocation2 + $0xc2] sm:$0xff] }
  0x92   : > { %6987 = vst [vmem:[#allocation44_spill] sm:$0xff] %v4882_v57  ;;  %v4956_v11 = vld [vmem:[#allocation2 + $0xe0] sm:$0xff] }
  0x93   : > { %562 = vst.msk [vmem:[#allocation3 + $0x8] sm:$0xff] %vm560_vm3, %v467_v42 }
  0x94   : > { %6989 = vst [vmem:[#allocation46_spill] sm:$0xff] %v4894_v10 }
  0x95   : > { %381 = vst.msk [vmem:[#allocation3 + $0x68] sm:$0xff] %vm257_vm0, %v4902_v23 }
  0x96   : > { %689 = vrot.lane.b32.xlu0 %v4894_v10, %s4386_s25  ;;  %6991 = vst [vmem:[#allocation48_spill] sm:$0xff] %v4913_v5 }
  0x97   : > { %v487_v2 = vpop.permute.xlu2 %486  ;;  %v471_v42 = vpop.permute.xlu1 %470  ;;  %386 = vst.msk [vmem:[#allocation3 + $0x90] sm:$0xff] %vm257_vm0, %v4923_v25 }
  0x98   : > { %669 = vrot.lane.b32.xlu2 %v4882_v57, %s4386_s25  ;;  %572 = vst.msk [vmem:[#allocation3 + $0x58] sm:$0xff] %vm560_vm3, %v487_v2  ;;  %v4909_v2 = vld [vmem:[#allocation2 + $0x6a] sm:$0xff]  ;;  %v477_v36 = vpop.permute.xlu0 %476 }
  0x99   : > { %679 = vrot.lane.b32.xlu1 %v4886_v7, %s4386_s25  ;;  %564 = vst.msk [vmem:[#allocation3 + $0x18] sm:$0xff] %vm560_vm3, %v471_v42  ;;  %v4921_v42 = vld [vmem:[#allocation2 + $0xe2] sm:$0xff] }
  0x9a   : > { %6990 = vst [vmem:[#allocation47_spill] sm:$0xff] %v4909_v2 }
  0x9b   : > { %567 = vst.msk [vmem:[#allocation3 + $0x30] sm:$0xff] %vm560_vm3, %v477_v36 }
  0x9c   : > { %6992 = vst [vmem:[#allocation49_spill] sm:$0xff] %v4921_v42 }
  0x9d   : > { %388 = vst.msk [vmem:[#allocation3 + $0xa0] sm:$0xff] %vm257_vm0, %v4925_v1 }
  0x9e   : > { %695 = vrot.lane.b32.xlu0 %v4921_v42, %s4386_s25  ;;  %384 = vst.msk [vmem:[#allocation3 + $0x80] sm:$0xff] %vm257_vm0, %v4929_v16  ;;  %v4950_v42 = vld [vmem:[#allocation2 + $0xf8] sm:$0xff] }
  0x9f   : > { %v493_v3 = vpop.permute.xlu2 %492  ;;  %v479_v36 = vpop.permute.xlu1 %478  ;;  %389 = vst.msk [vmem:[#allocation3 + $0xa8] sm:$0xff] %vm257_vm0, %v4950_v42 }
  0xa0   : > { %675 = vrot.lane.b32.xlu2 %v4909_v2, %s4386_s25  ;;  %575 = vst.msk [vmem:[#allocation3 + $0x70] sm:$0xff] %vm560_vm3, %v493_v3  ;;  %v4936_v3 = vld [vmem:[#allocation2 + $0x92] sm:$0xff]  ;;  %v483_v10 = vpop.permute.xlu0 %482 }
  0xa1   : > { %685 = vrot.lane.b32.xlu1 %v4913_v5, %s4386_s25  ;;  %568 = vst.msk [vmem:[#allocation3 + $0x38] sm:$0xff] %vm560_vm3, %v479_v36  ;;  %v4940_v5 = vld [vmem:[#allocation2 + $0xca] sm:$0xff]  ;;  %v5006_v2 = vld [vmem:[#allocation2 + $0x158] sm:$0xff] }
  0xa2   : > { %6993 = vst [vmem:[#allocation50_spill] sm:$0xff] %v4936_v3  ;;  %v4948_v36 = vld [vmem:[#allocation2 + $0x10a] sm:$0xff] }
  0xa3   : > { %6994 = vst [vmem:[#allocation51_spill] sm:$0xff] %v4940_v5 }
  0xa4   : > { %570 = vst.msk [vmem:[#allocation3 + $0x48] sm:$0xff] %vm560_vm3, %v483_v10 }
  0xa5   : > { %6995 = vst [vmem:[#allocation52_spill] sm:$0xff] %v4948_v36 }
  0xa6   : > { %391 = vst.msk [vmem:[#allocation3 + $0xb8] sm:$0xff] %vm257_vm0, %v4952_v4  ;;  %701 = vrot.lane.b32.xlu0 %v4948_v36, %s4386_s25  ;;  %v4977_v36 = vld [vmem:[#allocation2 + $0x120] sm:$0xff] }
  0xa7   : > { %v499_v7 = vpop.permute.xlu2 %498  ;;  %v485_v10 = vpop.permute.xlu1 %484  ;;  %387 = vst.msk [vmem:[#allocation3 + $0x98] sm:$0xff] %vm257_vm0, %v4956_v11 }
  0xa8   : > { %681 = vrot.lane.b32.xlu2 %v4936_v3, %s4386_s25  ;;  %578 = vst.msk [vmem:[#allocation3 + $0x88] sm:$0xff] %vm560_vm3, %v499_v7  ;;  %v4963_v7 = vld [vmem:[#allocation2 + $0xb2] sm:$0xff]  ;;  %v489_v8 = vpop.permute.xlu0 %488 }
  0xa9   : > { %691 = vrot.lane.b32.xlu1 %v4940_v5, %s4386_s25  ;;  %571 = vst.msk [vmem:[#allocation3 + $0x50] sm:$0xff] %vm560_vm3, %v485_v10  ;;  %v4967_v5 = vld [vmem:[#allocation2 + $0xf2] sm:$0xff]  ;;  %v4975_v10 = vld [vmem:[#allocation2 + $0x12a] sm:$0xff] }
  0xaa   : > { %6996 = vst [vmem:[#allocation53_spill] sm:$0xff] %v4963_v7  ;;  %v4979_v3 = vld [vmem:[#allocation2 + $0x138] sm:$0xff] }
  0xab   : > { %6997 = vst [vmem:[#allocation54_spill] sm:$0xff] %v4967_v5 }
  0xac   : > { %573 = vst.msk [vmem:[#allocation3 + $0x60] sm:$0xff] %vm560_vm3, %v489_v8 }
  0xad   : > { %6998 = vst [vmem:[#allocation55_spill] sm:$0xff] %v4975_v10 }
  0xae   : > { %392 = vst.msk [vmem:[#allocation3 + $0xc0] sm:$0xff] %vm257_vm0, %v4977_v36  ;;  %707 = vrot.lane.b32.xlu0 %v4975_v10, %s4386_s25  ;;  %v5004_v10 = vld [vmem:[#allocation2 + $0x140] sm:$0xff] }
  0xaf   : > { %v505_v15 = vpop.permute.xlu2 %504  ;;  %v491_v8 = vpop.permute.xlu1 %490  ;;  %394 = vst.msk [vmem:[#allocation3 + $0xd0] sm:$0xff] %vm257_vm0, %v4979_v3 }
  0xb0   : > { %687 = vrot.lane.b32.xlu2 %v4963_v7, %s4386_s25  ;;  %581 = vst.msk [vmem:[#allocation3 + $0xa0] sm:$0xff] %vm560_vm3, %v505_v15  ;;  %v4990_v15 = vld [vmem:[#allocation2 + $0xda] sm:$0xff]  ;;  %v495_v7 = vpop.permute.xlu0 %494 }
  0xb1   : > { %697 = vrot.lane.b32.xlu1 %v4967_v5, %s4386_s25  ;;  %574 = vst.msk [vmem:[#allocation3 + $0x68] sm:$0xff] %vm560_vm3, %v491_v8  ;;  %v4994_v5 = vld [vmem:[#allocation2 + $0x112] sm:$0xff] }
  0xb2   : > { %6999 = vst [vmem:[#allocation56_spill] sm:$0xff] %v4990_v15  ;;  %v5002_v8 = vld [vmem:[#allocation2 + $0x152] sm:$0xff] }
  0xb3   : > { %390 = vst.msk [vmem:[#allocation3 + $0xb0] sm:$0xff] %vm257_vm0, %v4983_v14 }
  0xb4   : > { %7000 = vst [vmem:[#allocation57_spill] sm:$0xff] %v4994_v5 }
  0xb5   : > { %576 = vst.msk [vmem:[#allocation3 + $0x78] sm:$0xff] %vm560_vm3, %v495_v7 }
  0xb6   : > { %7001 = vst [vmem:[#allocation58_spill] sm:$0xff] %v5002_v8  ;;  %713 = vrot.lane.b32.xlu0 %v5002_v8, %s4386_s25  ;;  %v5030_v8 = vld [vmem:[#allocation2 + $0x168] sm:$0xff] }
  0xb7   : > { %v511_v19 = vpop.permute.xlu2 %510  ;;  %395 = vst.msk [vmem:[#allocation3 + $0xd8] sm:$0xff] %vm257_vm0, %v5004_v10  ;;  %v497_v7 = vpop.permute.xlu1 %496 }
  0xb8   : > { %693 = vrot.lane.b32.xlu2 %v4990_v15, %s4386_s25  ;;  %584 = vst.msk [vmem:[#allocation3 + $0xb8] sm:$0xff] %vm560_vm3, %v511_v19  ;;  %v5017_v19 = vld [vmem:[#allocation2 + $0xfa] sm:$0xff]  ;;  %v501_v15 = vpop.permute.xlu0 %500 }
  0xb9   : > { %703 = vrot.lane.b32.xlu1 %v4994_v5, %s4386_s25  ;;  %397 = vst.msk [vmem:[#allocation3 + $0xe8] sm:$0xff] %vm257_vm0, %v5006_v2  ;;  %v5021_v5 = vld [vmem:[#allocation2 + $0x13a] sm:$0xff] }
  0xba   : > { %577 = vst.msk [vmem:[#allocation3 + $0x80] sm:$0xff] %vm560_vm3, %v497_v7  ;;  %v5034_v7 = vld [vmem:[#allocation2 + $0x150] sm:$0xff] }
  0xbb   : > { %7002 = vst [vmem:[#allocation59_spill] sm:$0xff] %v5017_v19 }
  0xbc   : > { %393 = vst.msk [vmem:[#allocation3 + $0xc8] sm:$0xff] %vm257_vm0, %v5010_v6 }
  0xbd   : > { %7003 = vst [vmem:[#allocation60_spill] sm:$0xff] %v5021_v5 }
  0xbe   : > { %579 = vst.msk [vmem:[#allocation3 + $0x90] sm:$0xff] %vm560_vm3, %v501_v15  ;;  %719 = vrot.lane.b32.xlu0 %v5028_v0, %s4386_s25  ;;  %v5041_v15 = vld [vmem:[#allocation2 + $0x122] sm:$0xff] }
  0xbf   : > { %7004 = vst [vmem:[#allocation61_spill] sm:$0xff] %v5028_v0  ;;  %v503_v57 = vpop.permute.xlu1 %502 }
  0xc0   : > { %699 = vrot.lane.b32.xlu2 %v5017_v19, %s4386_s25  ;;  %398 = vst.msk [vmem:[#allocation3 + $0xf0] sm:$0xff] %vm257_vm0, %v5030_v8  ;;  %v507_v19 = vpop.permute.xlu0 %506 }
  0xc1   : > { %709 = vrot.lane.b32.xlu1 %v5021_v5, %s4386_s25  ;;  %396 = vst.msk [vmem:[#allocation3 + $0xe0] sm:$0xff] %vm257_vm0, %v5034_v7  ;;  %v5043_v5 = vld [vmem:[#allocation2 + $0x15a] sm:$0xff] }
  0xc2   : > { %580 = vst.msk [vmem:[#allocation3 + $0x98] sm:$0xff] %vm560_vm3, %v503_v57  ;;  %v5057_v57 = vld [vmem:[#allocation2 + $0x142] sm:$0xff] }
  0xc3   : > { %7005 = vst [vmem:[#allocation62_spill] sm:$0xff] %v5043_v5 }
  0xc4   : > { %582 = vst.msk [vmem:[#allocation3 + $0xa8] sm:$0xff] %vm560_vm3, %v507_v19 }
  0xc5   : > { %399 = vst.msk [vmem:[#allocation3 + $0xf8] sm:$0xff] %vm257_vm0, %v5050_v55 }
  0xc6   : > { %854 = vrot.lane.b32.xlu0 %v4781_v62, %s4387_s26  ;;  %v5068_v62 = vld [vmem:[#allocation2 + $0x16a] sm:$0xff] }
  0xc7   : > { %v509_v59 = vpop.permute.xlu1 %508 }
  0xc8   : > { %705 = vrot.lane.b32.xlu2 %v5041_v15, %s4386_s25  ;;  %583 = vst.msk [vmem:[#allocation3 + $0xb0] sm:$0xff] %vm560_vm3, %v509_v59  ;;  %v513_v19 = vpop.permute.xlu0 %512 }
  0xc9   : > { %715 = vrot.lane.b32.xlu1 %v5043_v5, %s4386_s25  ;;  %585 = vst.msk [vmem:[#allocation3 + $0xc0] sm:$0xff] %vm560_vm3, %v513_v19 }
  0xce   : > { %860 = vrot.lane.b32.xlu0 %v4847_v35, %s4387_s26 }
  0xcf   : > { %v515_v0 = vpop.permute.xlu1 %514 }
  0xd0   : > { %711 = vrot.lane.b32.xlu2 %v5057_v57, %s4386_s25  ;;  %586 = vst.msk [vmem:[#allocation3 + $0xc8] sm:$0xff] %vm560_vm3, %v515_v0  ;;  %v519_v59 = vpop.permute.xlu0 %518 }
  0xd1   : > { %850 = vrot.lane.b32.xlu1 %v4802_v60, %s4387_s26  ;;  %588 = vst.msk [vmem:[#allocation3 + $0xd8] sm:$0xff] %vm560_vm3, %v519_v59 }
  0xd2   : > { %v517_v5 = vpop.permute.xlu2 %516 }
  0xd3   : > { %587 = vst.msk [vmem:[#allocation3 + $0xd0] sm:$0xff] %vm560_vm3, %v517_v5 }
  0xd6   : > { %866 = vrot.lane.b32.xlu0 %v4875_v29, %s4387_s26 }
  0xd7   : > { %v521_v5 = vpop.permute.xlu1 %520 }
  0xd8   : > { %717 = vrot.lane.b32.xlu2 %v5068_v62, %s4386_s25  ;;  %589 = vst.msk [vmem:[#allocation3 + $0xe0] sm:$0xff] %vm560_vm3, %v521_v5  ;;  %v525_v0 = vpop.permute.xlu0 %524  ;;  %v5109_v5 = vld [vmem:[%s4448_s23 + $0xf0] sm:$0xff] }
  0xd9   : > { %856 = vrot.lane.b32.xlu1 %v4799_v61, %s4387_s26  ;;  %591 = vst.msk [vmem:[#allocation3 + $0xf0] sm:$0xff] %vm560_vm3, %v525_v0 }
  0xda   : > { %v523_v60 = vpop.permute.xlu2 %522  ;;  %7006 = vst [vmem:[#allocation63_spill] sm:$0xff] %v5109_v5 }
  0xdb   : > { %590 = vst.msk [vmem:[#allocation3 + $0xe8] sm:$0xff] %vm560_vm3, %v523_v60 }
  0xdc   : > { %334 = vst.msk [vmem:[#allocation2 + $0x181] sm:$0xff] %vm257_vm0, %v5109_v5  ;;  %v2520_v5 = vld [vmem:[#allocation2 + $0x2] sm:$0xff] }
  0xde   : > { %872 = vrot.lane.b32.xlu0 %v4902_v23, %s4387_s26 }
  0xe0   : > { %852 = vrot.lane.b32.xlu2 %v4825_v41, %s4387_s26  ;;  %v660_v19 = vpop.permute.xlu0 %659 }
  0xe1   : > { %862 = vrot.lane.b32.xlu1 %v4823_v24, %s4387_s26  ;;  %755 = vst.msk [vmem:[#allocation3 + $0x8] sm:$0xff] %vm753_vm4, %v660_v19 }
  0xe2   : > { %v658_v61 = vpop.permute.xlu2 %657 }
  0xe3   : > { %754 = vst.msk [vmem:[#allocation3] sm:$0xff] %vm753_vm4, %v658_v61 }
  0xe6   : > { %878 = vrot.lane.b32.xlu0 %v4929_v16, %s4387_s26 }
  0xe8   : > { %858 = vrot.lane.b32.xlu2 %v4821_v58, %s4387_s26  ;;  %v666_v59 = vpop.permute.xlu0 %665 }
  0xe9   : > { %868 = vrot.lane.b32.xlu1 %v4845_v17, %s4387_s26  ;;  %758 = vst.msk [vmem:[#allocation3 + $0x20] sm:$0xff] %vm753_vm4, %v666_v59 }
  0xea   : > { %v664_v41 = vpop.permute.xlu2 %663 }
  0xeb   : > { %757 = vst.msk [vmem:[#allocation3 + $0x18] sm:$0xff] %vm753_vm4, %v664_v41  ;;  %v527_v24 = vpop.permute.xlu1 %526 }
  0xec   : > { %592 = vst.msk [vmem:[#allocation3 + $0xf8] sm:$0xff] %vm560_vm3, %v527_v24  ;;  %v5132_v24 = vld [vmem:[%s4448_s23 + $0xf8] sm:$0xff] }
  0xed   : > { %7007 = vst [vmem:[#allocation64_spill] sm:$0xff] %v5132_v24 }
  0xee   : > { %884 = vrot.lane.b32.xlu0 %v4956_v11, %s4387_s26  ;;  %335 = vst.msk [vmem:[#allocation2 + $0x189] sm:$0xff] %vm257_vm0, %v5132_v24 }
  0xf0   : > { %864 = vrot.lane.b32.xlu2 %v4843_v43, %s4387_s26  ;;  %v672_v60 = vpop.permute.xlu0 %671 }
  0xf1   : > { %874 = vrot.lane.b32.xlu1 %v4871_v13, %s4387_s26  ;;  %761 = vst.msk [vmem:[#allocation3 + $0x38] sm:$0xff] %vm753_vm4, %v672_v60 }
  0xf2   : > { %v670_v17 = vpop.permute.xlu2 %669 }
  0xf3   : > { %760 = vst.msk [vmem:[#allocation3 + $0x30] sm:$0xff] %vm753_vm4, %v670_v17  ;;  %v662_v58 = vpop.permute.xlu1 %661 }
  0xf4   : > { %756 = vst.msk [vmem:[#allocation3 + $0x10] sm:$0xff] %vm753_vm4, %v662_v58 }
  0xf6   : > { %890 = vrot.lane.b32.xlu0 %v4983_v14, %s4387_s26 }
  0xf8   : > { %870 = vrot.lane.b32.xlu2 %v4869_v37, %s4387_s26  ;;  %v678_v61 = vpop.permute.xlu0 %677 }
  0xf9   : > { %880 = vrot.lane.b32.xlu1 %v4898_v9, %s4387_s26  ;;  %764 = vst.msk [vmem:[#allocation3 + $0x50] sm:$0xff] %vm753_vm4, %v678_v61 }
  0xfa   : > { %v676_v13 = vpop.permute.xlu2 %675 }
  0xfb   : > { %763 = vst.msk [vmem:[#allocation3 + $0x48] sm:$0xff] %vm753_vm4, %v676_v13  ;;  %v668_v0 = vpop.permute.xlu1 %667 }
  0xfc   : > { %759 = vst.msk [vmem:[#allocation3 + $0x28] sm:$0xff] %vm753_vm4, %v668_v0  ;;  %v5160_v0 = vld [vmem:[#allocation2 + $0x180] sm:$0xff] }
  0xfe   : > { %896 = vrot.lane.b32.xlu0 %v5010_v6, %s4387_s26 }
 0x100   : > { %876 = vrot.lane.b32.xlu2 %v4896_v31, %s4387_s26  ;;  %v684_v41 = vpop.permute.xlu0 %683 }
 0x101   : > { %886 = vrot.lane.b32.xlu1 %v4925_v1, %s4387_s26  ;;  %767 = vst.msk [vmem:[#allocation3 + $0x68] sm:$0xff] %vm753_vm4, %v684_v41 }
 0x102   : > { %v682_v9 = vpop.permute.xlu2 %681 }
 0x103   : > { %766 = vst.msk [vmem:[#allocation3 + $0x60] sm:$0xff] %vm753_vm4, %v682_v9  ;;  %v674_v19 = vpop.permute.xlu1 %673 }
 0x104   : > { %762 = vst.msk [vmem:[#allocation3 + $0x40] sm:$0xff] %vm753_vm4, %v674_v19 }
 0x106   : > { %902 = vrot.lane.b32.xlu0 %v5034_v7, %s4387_s26 }
 0x108   : > { %882 = vrot.lane.b32.xlu2 %v4923_v25, %s4387_s26  ;;  %v690_v17 = vpop.permute.xlu0 %689 }
 0x109   : > { %892 = vrot.lane.b32.xlu1 %v4952_v4, %s4387_s26  ;;  %770 = vst.msk [vmem:[#allocation3 + $0x80] sm:$0xff] %vm753_vm4, %v690_v17 }
 0x10a   : > { %v688_v1 = vpop.permute.xlu2 %687 }
 0x10b   : > { %769 = vst.msk [vmem:[#allocation3 + $0x78] sm:$0xff] %vm753_vm4, %v688_v1  ;;  %v680_v59 = vpop.permute.xlu1 %679 }
 0x10c   : > { %765 = vst.msk [vmem:[#allocation3 + $0x58] sm:$0xff] %vm753_vm4, %v680_v59  ;;  %v5180_v59 = vld [vmem:[#allocation2 + $0x188] sm:$0xff] }
 0x10e   : > { %908 = vrot.lane.b32.xlu0 %v5050_v55, %s4387_s26 }
 0x110   : > { %888 = vrot.lane.b32.xlu2 %v4950_v42, %s4387_s26  ;;  %v696_v60 = vpop.permute.xlu0 %695 }
 0x111   : > { %898 = vrot.lane.b32.xlu1 %v4979_v3, %s4387_s26  ;;  %773 = vst.msk [vmem:[#allocation3 + $0x98] sm:$0xff] %vm753_vm4, %v696_v60  ;;  %v7008_v60 = vld [vmem:[#allocation41_spill] sm:$0xff] }
 0x112   : > { %v694_v4 = vpop.permute.xlu2 %693 }
 0x113   : > { %772 = vst.msk [vmem:[#allocation3 + $0x90] sm:$0xff] %vm753_vm4, %v694_v4  ;;  %v686_v58 = vpop.permute.xlu1 %685 }
 0x114   : > { %768 = vst.msk [vmem:[#allocation3 + $0x70] sm:$0xff] %vm753_vm4, %v686_v58 }
 0x116   : > { %1043 = vrot.lane.b32.xlu0 %v4496_v12, %s4388_s27 }
 0x118   : > { %894 = vrot.lane.b32.xlu2 %v4977_v36, %s4387_s26  ;;  %v702_v61 = vpop.permute.xlu0 %701 }
 0x119   : > { %904 = vrot.lane.b32.xlu1 %v5006_v2, %s4387_s26  ;;  %776 = vst.msk [vmem:[#allocation3 + $0xb0] sm:$0xff] %vm753_vm4, %v702_v61 }
 0x11a   : > { %v700_v13 = vpop.permute.xlu2 %699 }
 0x11b   : > { %775 = vst.msk [vmem:[#allocation3 + $0xa8] sm:$0xff] %vm753_vm4, %v700_v13  ;;  %v692_v3 = vpop.permute.xlu1 %691  ;;  %v5265_v13 = vld [vmem:[#allocation2 + $0x189] sm:$0xff] }
 0x11c   : > { %771 = vst.msk [vmem:[#allocation3 + $0x88] sm:$0xff] %vm753_vm4, %v692_v3 }
 0x11e   : > { %1049 = vrot.lane.b32.xlu0 %v4542_v22, %s4388_s27 }
 0x120   : > { %900 = vrot.lane.b32.xlu2 %v5004_v10, %s4387_s26  ;;  %v708_v12 = vpop.permute.xlu0 %707 }
 0x121   : > { %910 = vrot.lane.b32.xlu1 %v5160_v0, %s4387_s26  ;;  %779 = vst.msk [vmem:[#allocation3 + $0xc8] sm:$0xff] %vm753_vm4, %v708_v12  ;;  %v7011_v12 = vld [vmem:[#allocation35_spill] sm:$0xff] }
 0x122   : > { %v706_v9 = vpop.permute.xlu2 %705 }
 0x123   : > { %778 = vst.msk [vmem:[#allocation3 + $0xc0] sm:$0xff] %vm753_vm4, %v706_v9  ;;  %v698_v19 = vpop.permute.xlu1 %697  ;;  %v7010_v9 = vld [vmem:[#allocation44_spill] sm:$0xff] }
 0x124   : > { %774 = vst.msk [vmem:[#allocation3 + $0xa0] sm:$0xff] %vm753_vm4, %v698_v19 }
 0x126   : > { %1055 = vrot.lane.b32.xlu0 %v4569_v28, %s4388_s27 }
 0x128   : > { %906 = vrot.lane.b32.xlu2 %v5030_v8, %s4387_s26  ;;  %v714_v22 = vpop.permute.xlu0 %713 }
 0x129   : > { %1045 = vrot.lane.b32.xlu1 %v4532_v20, %s4388_s27  ;;  %782 = vst.msk [vmem:[#allocation3 + $0xe0] sm:$0xff] %vm753_vm4, %v714_v22 }
 0x12a   : > { %v712_v41 = vpop.permute.xlu2 %711 }
 0x12b   : > { %781 = vst.msk [vmem:[#allocation3 + $0xd8] sm:$0xff] %vm753_vm4, %v712_v41  ;;  %v704_v1 = vpop.permute.xlu1 %703  ;;  %v7012_v41 = vld [vmem:[#allocation36_spill] sm:$0xff] }
 0x12c   : > { %777 = vst.msk [vmem:[#allocation3 + $0xb8] sm:$0xff] %vm753_vm4, %v704_v1 }
 0x12e   : > { %1061 = vrot.lane.b32.xlu0 %v4596_v34, %s4388_s27 }
 0x130   : > { %912 = vrot.lane.b32.xlu2 %v5180_v59, %s4387_s26  ;;  %v720_v28 = vpop.permute.xlu0 %719 }
 0x131   : > { %1051 = vrot.lane.b32.xlu1 %v4538_v21, %s4388_s27  ;;  %785 = vst.msk [vmem:[#allocation3 + $0xf8] sm:$0xff] %vm753_vm4, %v720_v28  ;;  %v7014_v28 = vld [vmem:[#allocation37_spill] sm:$0xff] }
 0x132   : > { %v718_v20 = vpop.permute.xlu2 %717 }
 0x133   : > { %784 = vst.msk [vmem:[#allocation3 + $0xf0] sm:$0xff] %vm753_vm4, %v718_v20  ;;  %v710_v17 = vpop.permute.xlu1 %709  ;;  %v7013_v20 = vld [vmem:[#allocation47_spill] sm:$0xff] }
 0x134   : > { %780 = vst.msk [vmem:[#allocation3 + $0xd0] sm:$0xff] %vm753_vm4, %v710_v17 }
 0x136   : > { %1067 = vrot.lane.b32.xlu0 %v4623_v40, %s4388_s27 }
 0x138   : > { %1047 = vrot.lane.b32.xlu2 %v4521_v18, %s4388_s27  ;;  %v855_v34 = vpop.permute.xlu0 %854 }
 0x139   : > { %1057 = vrot.lane.b32.xlu1 %v4565_v27, %s4388_s27  ;;  %949 = vst.msk [vmem:[#allocation3 + $0x10] sm:$0xff] %vm946_vm5, %v855_v34 }
 0x13a   : > { %v853_v21 = vpop.permute.xlu2 %852 }
 0x13b   : > { %948 = vst.msk [vmem:[#allocation3 + $0x8] sm:$0xff] %vm946_vm5, %v853_v21  ;;  %v716_v4 = vpop.permute.xlu1 %715  ;;  %v7015_v21 = vld [vmem:[#allocation38_spill] sm:$0xff] }
 0x13c   : > { %783 = vst.msk [vmem:[#allocation3 + $0xe8] sm:$0xff] %vm753_vm4, %v716_v4 }
 0x13e   : > { %1073 = vrot.lane.b32.xlu0 %v4650_v46, %s4388_s27 }
 0x140   : > { %1053 = vrot.lane.b32.xlu2 %v4561_v26, %s4388_s27  ;;  %v861_v58 = vpop.permute.xlu0 %860 }
 0x141   : > { %1063 = vrot.lane.b32.xlu1 %v4592_v33, %s4388_s27  ;;  %952 = vst.msk [vmem:[#allocation3 + $0x28] sm:$0xff] %vm946_vm5, %v861_v58  ;;  %v7017_v58 = vld [vmem:[#allocation39_spill] sm:$0xff] }
 0x142   : > { %v859_v18 = vpop.permute.xlu2 %858 }
 0x143   : > { %951 = vst.msk [vmem:[#allocation3 + $0x20] sm:$0xff] %vm946_vm5, %v859_v18  ;;  %v851_v27 = vpop.permute.xlu1 %850  ;;  %v7016_v18 = vld [vmem:[#allocation50_spill] sm:$0xff] }
 0x144   : > { %947 = vst.msk [vmem:[#allocation3] sm:$0xff] %vm946_vm5, %v851_v27 }
 0x146   : > { %1079 = vrot.lane.b32.xlu0 %v4674_v49, %s4388_s27 }
 0x148   : > { %1059 = vrot.lane.b32.xlu2 %v4588_v32, %s4388_s27  ;;  %v867_v40 = vpop.permute.xlu0 %866 }
 0x149   : > { %1069 = vrot.lane.b32.xlu1 %v4619_v39, %s4388_s27  ;;  %955 = vst.msk [vmem:[#allocation3 + $0x40] sm:$0xff] %vm946_vm5, %v867_v40 }
 0x14a   : > { %v865_v26 = vpop.permute.xlu2 %864 }
 0x14b   : > { %954 = vst.msk [vmem:[#allocation3 + $0x38] sm:$0xff] %vm946_vm5, %v865_v26  ;;  %v857_v33 = vpop.permute.xlu1 %856  ;;  %v7018_v26 = vld [vmem:[#allocation40_spill] sm:$0xff] }
 0x14c   : > { %950 = vst.msk [vmem:[#allocation3 + $0x18] sm:$0xff] %vm946_vm5, %v857_v33 }
 0x14e   : > { %1085 = vrot.lane.b32.xlu0 %v4702_v52, %s4388_s27 }
 0x150   : > { %1065 = vrot.lane.b32.xlu2 %v4615_v38, %s4388_s27  ;;  %v873_v46 = vpop.permute.xlu0 %872 }
 0x151   : > { %1075 = vrot.lane.b32.xlu1 %v4646_v45, %s4388_s27  ;;  %958 = vst.msk [vmem:[#allocation3 + $0x58] sm:$0xff] %vm946_vm5, %v873_v46  ;;  %v7020_v46 = vld [vmem:[#allocation42_spill] sm:$0xff] }
 0x152   : > { %v871_v32 = vpop.permute.xlu2 %870 }
 0x153   : > { %957 = vst.msk [vmem:[#allocation3 + $0x50] sm:$0xff] %vm946_vm5, %v871_v32  ;;  %v863_v39 = vpop.permute.xlu1 %862  ;;  %v7019_v32 = vld [vmem:[#allocation53_spill] sm:$0xff] }
 0x154   : > { %953 = vst.msk [vmem:[#allocation3 + $0x30] sm:$0xff] %vm946_vm5, %v863_v39 }
 0x156   : > { %1091 = vrot.lane.b32.xlu0 %v4789_v63, %s4388_s27 }
 0x158   : > { %1071 = vrot.lane.b32.xlu2 %v4642_v44, %s4388_s27  ;;  %v879_v49 = vpop.permute.xlu0 %878 }
 0x159   : > { %1081 = vrot.lane.b32.xlu1 %v4668_v48, %s4388_s27  ;;  %961 = vst.msk [vmem:[#allocation3 + $0x70] sm:$0xff] %vm946_vm5, %v879_v49 }
 0x15a   : > { %v877_v38 = vpop.permute.xlu2 %876 }
 0x15b   : > { %960 = vst.msk [vmem:[#allocation3 + $0x68] sm:$0xff] %vm946_vm5, %v877_v38  ;;  %v869_v45 = vpop.permute.xlu1 %868  ;;  %v7021_v38 = vld [vmem:[#allocation43_spill] sm:$0xff] }
 0x15c   : > { %956 = vst.msk [vmem:[#allocation3 + $0x48] sm:$0xff] %vm946_vm5, %v869_v45 }
 0x15e   : > { %1097 = vrot.lane.b32.xlu0 %v4810_v30, %s4388_s27 }
 0x160   : > { %1077 = vrot.lane.b32.xlu2 %v4660_v47, %s4388_s27  ;;  %v885_v52 = vpop.permute.xlu0 %884  ;;  %v5250_v47 = vld [vmem:[#allocation2 + $0x181] sm:$0xff] }
 0x161   : > { %1087 = vrot.lane.b32.xlu1 %v4696_v51, %s4388_s27  ;;  %964 = vst.msk [vmem:[#allocation3 + $0x88] sm:$0xff] %vm946_vm5, %v885_v52  ;;  %v7023_v52 = vld [vmem:[#allocation45_spill] sm:$0xff] }
 0x162   : > { %v883_v44 = vpop.permute.xlu2 %882 }
 0x163   : > { %963 = vst.msk [vmem:[#allocation3 + $0x80] sm:$0xff] %vm946_vm5, %v883_v44  ;;  %v875_v48 = vpop.permute.xlu1 %874  ;;  %v7022_v44 = vld [vmem:[#allocation56_spill] sm:$0xff] }
 0x164   : > { %959 = vst.msk [vmem:[#allocation3 + $0x60] sm:$0xff] %vm946_vm5, %v875_v48 }
 0x166   : > { %1103 = vrot.lane.b32.xlu0 %v5250_v47, %s4388_s27 }
 0x168   : > { %1083 = vrot.lane.b32.xlu2 %v4688_v50, %s4388_s27  ;;  %v891_v30 = vpop.permute.xlu0 %890 }
 0x169   : > { %1093 = vrot.lane.b32.xlu1 %v4724_v54, %s4388_s27  ;;  %967 = vst.msk [vmem:[#allocation3 + $0xa0] sm:$0xff] %vm946_vm5, %v891_v30 }
 0x16a   : > { %v889_v51 = vpop.permute.xlu2 %888 }
 0x16b   : > { %966 = vst.msk [vmem:[#allocation3 + $0x98] sm:$0xff] %vm946_vm5, %v889_v51  ;;  %v881_v63 = vpop.permute.xlu1 %880  ;;  %v7024_v51 = vld [vmem:[#allocation46_spill] sm:$0xff] }
 0x16c   : > { %962 = vst.msk [vmem:[#allocation3 + $0x78] sm:$0xff] %vm946_vm5, %v881_v63 }
 0x16e   : > { %1238 = vrot.lane.b32.xlu0 %v7008_v60, %s4389_s28  ;;  %v7026_v60 = vld [vmem:[#allocation48_spill] sm:$0xff] }
 0x170   : > { %1089 = vrot.lane.b32.xlu2 %v4716_v53, %s4388_s27  ;;  %v897_v3 = vpop.permute.xlu0 %896  ;;  %v7009_v53 = vld [vmem:[#allocation31_spill] sm:$0xff] }
 0x171   : > { %1099 = vrot.lane.b32.xlu1 %v4748_v56, %s4388_s27  ;;  %970 = vst.msk [vmem:[#allocation3 + $0xb8] sm:$0xff] %vm946_vm5, %v897_v3  ;;  %v7027_v3 = vld [vmem:[#allocation49_spill] sm:$0xff] }
 0x172   : > { %v895_v50 = vpop.permute.xlu2 %894 }
 0x173   : > { %969 = vst.msk [vmem:[#allocation3 + $0xb0] sm:$0xff] %vm946_vm5, %v895_v50  ;;  %v887_v54 = vpop.permute.xlu1 %886  ;;  %v7025_v50 = vld [vmem:[#allocation59_spill] sm:$0xff] }
 0x174   : > { %965 = vst.msk [vmem:[#allocation3 + $0x90] sm:$0xff] %vm946_vm5, %v887_v54 }
 0x176   : > { %1244 = vrot.lane.b32.xlu0 %v7010_v9, %s4389_s28  ;;  %v7028_v9 = vld [vmem:[#allocation51_spill] sm:$0xff] }
 0x178   : > { %1095 = vrot.lane.b32.xlu2 %v7009_v53, %s4388_s27  ;;  %v903_v19 = vpop.permute.xlu0 %902 }
 0x179   : > { %1105 = vrot.lane.b32.xlu1 %v5265_v13, %s4388_s27  ;;  %973 = vst.msk [vmem:[#allocation3 + $0xd0] sm:$0xff] %vm946_vm5, %v903_v19  ;;  %v7029_v19 = vld [vmem:[#allocation52_spill] sm:$0xff] }
 0x17a   : > { %v901_v56 = vpop.permute.xlu2 %900 }
 0x17b   : > { %972 = vst.msk [vmem:[#allocation3 + $0xc8] sm:$0xff] %vm946_vm5, %v901_v56  ;;  %v893_v61 = vpop.permute.xlu1 %892 }
 0x17c   : > { %968 = vst.msk [vmem:[#allocation3 + $0xa8] sm:$0xff] %vm946_vm5, %v893_v61 }
 0x17e   : > { %1250 = vrot.lane.b32.xlu0 %v7013_v20, %s4389_s28 }
 0x180   : > { %1101 = vrot.lane.b32.xlu2 %v7011_v12, %s4388_s27  ;;  %v909_v17 = vpop.permute.xlu0 %908 }
 0x181   : > { %1240 = vrot.lane.b32.xlu1 %v7012_v41, %s4389_s28  ;;  %976 = vst.msk [vmem:[#allocation3 + $0xe8] sm:$0xff] %vm946_vm5, %v909_v17 }
 0x182   : > { %v907_v1 = vpop.permute.xlu2 %906 }
 0x183   : > { %975 = vst.msk [vmem:[#allocation3 + $0xe0] sm:$0xff] %vm946_vm5, %v907_v1  ;;  %v899_v22 = vpop.permute.xlu1 %898 }
 0x184   : > { %971 = vst.msk [vmem:[#allocation3 + $0xc0] sm:$0xff] %vm946_vm5, %v899_v22  ;;  %v7031_v22 = vld [vmem:[#allocation55_spill] sm:$0xff] }
 0x186   : > { %1256 = vrot.lane.b32.xlu0 %v7016_v18, %s4389_s28 }
 0x188   : > { %1236 = vrot.lane.b32.xlu2 %v7014_v28, %s4389_s28  ;;  %v1044_v27 = vpop.permute.xlu0 %1043 }
 0x189   : > { %1246 = vrot.lane.b32.xlu1 %v7015_v21, %s4389_s28  ;;  %1140 = vst.msk [vmem:[#allocation3] sm:$0xff] %vm1139_vm6, %v1044_v27  ;;  %v7033_v21 = vld [vmem:[#allocation58_spill] sm:$0xff]  ;;  %v7034_v27 = vld [vmem:[#allocation60_spill] sm:$0xff] }
 0x18a   : > { %v913_v4 = vpop.permute.xlu2 %912 }
 0x18b   : > { %978 = vst.msk [vmem:[#allocation3 + $0xf8] sm:$0xff] %vm946_vm5, %v913_v4  ;;  %v905_v34 = vpop.permute.xlu1 %904  ;;  %v5353_v4 = vld [vmem:[#allocation2 + $0x18a] sm:$0xff] }
 0x18c   : > { %974 = vst.msk [vmem:[#allocation3 + $0xd8] sm:$0xff] %vm946_vm5, %v905_v34 }
 0x18e   : > { %1262 = vrot.lane.b32.xlu0 %v7019_v32, %s4389_s28  ;;  %v1366_v32 = vld [vmem:[#allocation2 + $0x30] sm:$0xff] }
 0x190   : > { %1242 = vrot.lane.b32.xlu2 %v7017_v58, %s4389_s28  ;;  %v1050_v39 = vpop.permute.xlu0 %1049  ;;  %v7035_v58 = vld [vmem:[#allocation61_spill] sm:$0xff] }
 0x191   : > { %1252 = vrot.lane.b32.xlu1 %v7018_v26, %s4389_s28  ;;  %1143 = vst.msk [vmem:[#allocation3 + $0x18] sm:$0xff] %vm1139_vm6, %v1050_v39  ;;  %v1368_v26 = vld [vmem:[#allocation2 + $0x48] sm:$0xff] }
 0x192   : > { %v1048_v33 = vpop.permute.xlu2 %1047 }
 0x193   : > { %1142 = vst.msk [vmem:[#allocation3 + $0x10] sm:$0xff] %vm1139_vm6, %v1048_v33  ;;  %v911_v40 = vpop.permute.xlu1 %910 }
 0x194   : > { %977 = vst.msk [vmem:[#allocation3 + $0xf0] sm:$0xff] %vm946_vm5, %v911_v40 }
 0x196   : > { %1268 = vrot.lane.b32.xlu0 %v7022_v44, %s4389_s28 }
 0x198   : > { %1248 = vrot.lane.b32.xlu2 %v7020_v46, %s4389_s28  ;;  %v1056_v48 = vpop.permute.xlu0 %1055  ;;  %v7036_v46 = vld [vmem:[#allocation62_spill] sm:$0xff] }
 0x199   : > { %1258 = vrot.lane.b32.xlu1 %v7021_v38, %s4389_s28  ;;  %1146 = vst.msk [vmem:[#allocation3 + $0x30] sm:$0xff] %vm1139_vm6, %v1056_v48 }
 0x19a   : > { %v1054_v45 = vpop.permute.xlu2 %1053 }
 0x19b   : > { %1145 = vst.msk [vmem:[#allocation3 + $0x28] sm:$0xff] %vm1139_vm6, %v1054_v45  ;;  %v1046_v49 = vpop.permute.xlu1 %1045 }
 0x19c   : > { %1141 = vst.msk [vmem:[#allocation3 + $0x8] sm:$0xff] %vm1139_vm6, %v1046_v49  ;;  %v5375_v49 = vld [vmem:[#allocation2 + $0x182] sm:$0xff] }
 0x19e   : > { %1274 = vrot.lane.b32.xlu0 %v7025_v50, %s4389_s28 }
 0x1a0   : > { %1254 = vrot.lane.b32.xlu2 %v7023_v52, %s4389_s28  ;;  %v1062_v54 = vpop.permute.xlu0 %1061 }
 0x1a1   : > { %1264 = vrot.lane.b32.xlu1 %v7024_v51, %s4389_s28  ;;  %1149 = vst.msk [vmem:[#allocation3 + $0x48] sm:$0xff] %vm1139_vm6, %v1062_v54  ;;  %v1373_v54 = vld [vmem:[#allocation2 + $0x80] sm:$0xff] }
 0x1a2   : > { %v1060_v63 = vpop.permute.xlu2 %1059 }
 0x1a3   : > { %1148 = vst.msk [vmem:[#allocation3 + $0x40] sm:$0xff] %vm1139_vm6, %v1060_v63  ;;  %v1052_v30 = vpop.permute.xlu1 %1051 }
 0x1a4   : > { %1144 = vst.msk [vmem:[#allocation3 + $0x20] sm:$0xff] %vm1139_vm6, %v1052_v30 }
 0x1a6   : > { %1280 = vrot.lane.b32.xlu0 %v5041_v15, %s4389_s28  ;;  %v7030_v15 = vld [vmem:[#allocation54_spill] sm:$0xff] }
 0x1a8   : > { %1260 = vrot.lane.b32.xlu2 %v7026_v60, %s4389_s28  ;;  %v1068_v61 = vpop.permute.xlu0 %1067 }
 0x1a9   : > { %1270 = vrot.lane.b32.xlu1 %v7027_v3, %s4389_s28  ;;  %1152 = vst.msk [vmem:[#allocation3 + $0x60] sm:$0xff] %vm1139_vm6, %v1068_v61  ;;  %v1376_v3 = vld [vmem:[#allocation2 + $0xa8] sm:$0xff] }
 0x1aa   : > { %v1066_v53 = vpop.permute.xlu2 %1065 }
 0x1ab   : > { %1151 = vst.msk [vmem:[#allocation3 + $0x58] sm:$0xff] %vm1139_vm6, %v1066_v53  ;;  %v1058_v56 = vpop.permute.xlu1 %1057 }
 0x1ac   : > { %1147 = vst.msk [vmem:[#allocation3 + $0x38] sm:$0xff] %vm1139_vm6, %v1058_v56  ;;  %v1379_v56 = vld [vmem:[#allocation2 + $0xc8] sm:$0xff] }
 0x1ae   : > { %1286 = vrot.lane.b32.xlu0 %v5057_v57, %s4389_s28  ;;  %v7032_v57 = vld [vmem:[#allocation57_spill] sm:$0xff] }
 0x1b0   : > { %1266 = vrot.lane.b32.xlu2 %v7028_v9, %s4389_s28  ;;  %v1074_v1 = vpop.permute.xlu0 %1073  ;;  %v1382_v9 = vld [vmem:[#allocation2 + $0xf0] sm:$0xff] }
 0x1b1   : > { %1276 = vrot.lane.b32.xlu1 %v7029_v19, %s4389_s28  ;;  %1155 = vst.msk [vmem:[#allocation3 + $0x78] sm:$0xff] %vm1139_vm6, %v1074_v1  ;;  %v1388_v1 = vld [vmem:[#allocation2 + $0x138] sm:$0xff] }
 0x1b2   : > { %v1072_v12 = vpop.permute.xlu2 %1071 }
 0x1b3   : > { %1154 = vst.msk [vmem:[#allocation3 + $0x70] sm:$0xff] %vm1139_vm6, %v1072_v12  ;;  %v1064_v41 = vpop.permute.xlu1 %1063  ;;  %v1385_v12 = vld [vmem:[#allocation2 + $0x110] sm:$0xff] }
 0x1b4   : > { %1150 = vst.msk [vmem:[#allocation3 + $0x50] sm:$0xff] %vm1139_vm6, %v1064_v41 }
 0x1b6   : > { %1292 = vrot.lane.b32.xlu0 %v5068_v62, %s4389_s28 }
 0x1b8   : > { %1272 = vrot.lane.b32.xlu2 %v7030_v15, %s4389_s28  ;;  %v1080_v28 = vpop.permute.xlu0 %1079  ;;  %v1559_v15 = vld [vmem:[#allocation2 + $0x31] sm:$0xff] }
 0x1b9   : > { %1282 = vrot.lane.b32.xlu1 %v7031_v22, %s4389_s28  ;;  %1158 = vst.msk [vmem:[#allocation3 + $0x90] sm:$0xff] %vm1139_vm6, %v1080_v28 }
 0x1ba   : > { %v1078_v20 = vpop.permute.xlu2 %1077 }
 0x1bb   : > { %1157 = vst.msk [vmem:[#allocation3 + $0x88] sm:$0xff] %vm1139_vm6, %v1078_v20  ;;  %v1070_v17 = vpop.permute.xlu1 %1069 }
 0x1bc   : > { %1153 = vst.msk [vmem:[#allocation3 + $0x68] sm:$0xff] %vm1139_vm6, %v1070_v17 }
 0x1be   : > { %1298 = vrot.lane.b32.xlu0 %v5353_v4, %s4389_s28 }
 0x1c0   : > { %1278 = vrot.lane.b32.xlu2 %v7032_v57, %s4389_s28  ;;  %v1086_v62 = vpop.permute.xlu0 %1085  ;;  %v1560_v57 = vld [vmem:[#allocation2 + $0x39] sm:$0xff] }
 0x1c1   : > { %1288 = vrot.lane.b32.xlu1 %v7033_v21, %s4389_s28  ;;  %1161 = vst.msk [vmem:[#allocation3 + $0xa8] sm:$0xff] %vm1139_vm6, %v1086_v62  ;;  %v1397_v62 = vld [vmem:[#allocation2 + $0x1a0] sm:$0xff] }
 0x1c2   : > { %v1084_v34 = vpop.permute.xlu2 %1083 }
 0x1c3   : > { %1160 = vst.msk [vmem:[#allocation3 + $0xa0] sm:$0xff] %vm1139_vm6, %v1084_v34  ;;  %v1076_v18 = vpop.permute.xlu1 %1075 }
 0x1c4   : > { %1156 = vst.msk [vmem:[#allocation3 + $0x80] sm:$0xff] %vm1139_vm6, %v1076_v18 }
 0x1c6   : > { %1434 = vrot.lane.b32.xlu0 %v1368_v26, %s4390_s29 }
 0x1c8   : > { %1284 = vrot.lane.b32.xlu2 %v7034_v27, %s4389_s28  ;;  %v1092_v39 = vpop.permute.xlu0 %1091  ;;  %v1563_v27 = vld [vmem:[#allocation2 + $0x61] sm:$0xff] }
 0x1c9   : > { %1294 = vrot.lane.b32.xlu1 %v7035_v58, %s4389_s28  ;;  %1164 = vst.msk [vmem:[#allocation3 + $0xc0] sm:$0xff] %vm1139_vm6, %v1092_v39 }
 0x1ca   : > { %v1090_v33 = vpop.permute.xlu2 %1089 }
 0x1cb   : > { %1163 = vst.msk [vmem:[#allocation3 + $0xb8] sm:$0xff] %vm1139_vm6, %v1090_v33  ;;  %v1082_v40 = vpop.permute.xlu1 %1081 }
 0x1cc   : > { %1159 = vst.msk [vmem:[#allocation3 + $0x98] sm:$0xff] %vm1139_vm6, %v1082_v40  ;;  %v1561_v40 = vld [vmem:[#allocation2 + $0x49] sm:$0xff] }
 0x1ce   : > { %1440 = vrot.lane.b32.xlu0 %v4843_v43, %s4390_s29  ;;  %v1367_v43 = vld [vmem:[#allocation2 + $0x38] sm:$0xff] }
 0x1d0   : > { %1290 = vrot.lane.b32.xlu2 %v7036_v46, %s4389_s28  ;;  %v1098_v44 = vpop.permute.xlu0 %1097  ;;  %v1571_v46 = vld [vmem:[#allocation2 + $0xc1] sm:$0xff] }
 0x1d1   : > { %1430 = vrot.lane.b32.xlu1 %v1366_v32, %s4390_s29  ;;  %1167 = vst.msk [vmem:[#allocation3 + $0xd8] sm:$0xff] %vm1139_vm6, %v1098_v44  ;;  %v1566_v32 = vld [vmem:[#allocation2 + $0x81] sm:$0xff]  ;;  %v1564_v44 = vld [vmem:[#allocation2 + $0x69] sm:$0xff] }
 0x1d2   : > { %v1096_v38 = vpop.permute.xlu2 %1095 }
 0x1d3   : > { %1166 = vst.msk [vmem:[#allocation3 + $0xd0] sm:$0xff] %vm1139_vm6, %v1096_v38  ;;  %v1088_v45 = vpop.permute.xlu1 %1087 }
 0x1d4   : > { %1162 = vst.msk [vmem:[#allocation3 + $0xb0] sm:$0xff] %vm1139_vm6, %v1088_v45 }
 0x1d6   : > { %1446 = vrot.lane.b32.xlu0 %v4869_v37, %s4390_s29  ;;  %v1370_v37 = vld [vmem:[#allocation2 + $0x60] sm:$0xff] }
 0x1d8   : > { %1296 = vrot.lane.b32.xlu2 %v5375_v49, %s4389_s28  ;;  %v1104_v51 = vpop.permute.xlu0 %1103 }
 0x1d9   : > { %1436 = vrot.lane.b32.xlu1 %v4847_v35, %s4390_s29  ;;  %1170 = vst.msk [vmem:[#allocation3 + $0xf0] sm:$0xff] %vm1139_vm6, %v1104_v51 }
 0x1da   : > { %v1102_v48 = vpop.permute.xlu2 %1101 }
 0x1db   : > { %1169 = vst.msk [vmem:[#allocation3 + $0xe8] sm:$0xff] %vm1139_vm6, %v1102_v48  ;;  %v1094_v52 = vpop.permute.xlu1 %1093  ;;  %v1569_v48 = vld [vmem:[#allocation2 + $0xa9] sm:$0xff] }
 0x1dc   : > { %1165 = vst.msk [vmem:[#allocation3 + $0xc8] sm:$0xff] %vm1139_vm6, %v1094_v52 }
 0x1de   : > { %1452 = vrot.lane.b32.xlu0 %v4896_v31, %s4390_s29 }
 0x1e0   : > { %1432 = vrot.lane.b32.xlu2 %v1367_v43, %s4390_s29  ;;  %v1239_v30 = vpop.permute.xlu0 %1238  ;;  %v1574_v43 = vld [vmem:[#allocation2 + $0xe1] sm:$0xff] }
 0x1e1   : > { %1442 = vrot.lane.b32.xlu1 %v4875_v29, %s4390_s29  ;;  %1334 = vst.msk [vmem:[#allocation3 + $0x8] sm:$0xff] %vm1332_vm7, %v1239_v30 }
 0x1e2   : > { %v1237_v35 = vpop.permute.xlu2 %1236 }
 0x1e3   : > { %1333 = vst.msk [vmem:[#allocation3] sm:$0xff] %vm1332_vm7, %v1237_v35  ;;  %v1100_v63 = vpop.permute.xlu1 %1099 }
 0x1e4   : > { %1168 = vst.msk [vmem:[#allocation3 + $0xe0] sm:$0xff] %vm1139_vm6, %v1100_v63  ;;  %v1567_v63 = vld [vmem:[#allocation2 + $0x91] sm:$0xff] }
 0x1e6   : > { %1458 = vrot.lane.b32.xlu0 %v4923_v25, %s4390_s29 }
 0x1e8   : > { %1438 = vrot.lane.b32.xlu2 %v1370_v37, %s4390_s29  ;;  %v1245_v31 = vpop.permute.xlu0 %1244  ;;  %v1572_v37 = vld [vmem:[#allocation2 + $0xc9] sm:$0xff] }
 0x1e9   : > { %1448 = vrot.lane.b32.xlu1 %v4902_v23, %s4390_s29  ;;  %1337 = vst.msk [vmem:[#allocation3 + $0x20] sm:$0xff] %vm1332_vm7, %v1245_v31  ;;  %v1570_v31 = vld [vmem:[#allocation2 + $0xb1] sm:$0xff] }
 0x1ea   : > { %v1243_v50 = vpop.permute.xlu2 %1242 }
 0x1eb   : > { %1336 = vst.msk [vmem:[#allocation3 + $0x18] sm:$0xff] %vm1332_vm7, %v1243_v50  ;;  %v1106_v29 = vpop.permute.xlu1 %1105  ;;  %v1577_v50 = vld [vmem:[#allocation2 + $0x109] sm:$0xff] }
 0x1ec   : > { %1171 = vst.msk [vmem:[#allocation3 + $0xf8] sm:$0xff] %vm1139_vm6, %v1106_v29 }
 0x1ee   : > { %1464 = vrot.lane.b32.xlu0 %v4950_v42, %s4390_s29 }
 0x1f0   : > { %1444 = vrot.lane.b32.xlu2 %v1373_v54, %s4390_s29  ;;  %v1251_v25 = vpop.permute.xlu0 %1250 }
 0x1f1   : > { %1454 = vrot.lane.b32.xlu1 %v4929_v16, %s4390_s29  ;;  %1340 = vst.msk [vmem:[#allocation3 + $0x38] sm:$0xff] %vm1332_vm7, %v1251_v25 }
 0x1f2   : > { %v1249_v60 = vpop.permute.xlu2 %1248 }
 0x1f3   : > { %1339 = vst.msk [vmem:[#allocation3 + $0x30] sm:$0xff] %vm1332_vm7, %v1249_v60  ;;  %v1241_v23 = vpop.permute.xlu1 %1240  ;;  %v1575_v60 = vld [vmem:[#allocation2 + $0xf1] sm:$0xff] }
 0x1f4   : > { %1335 = vst.msk [vmem:[#allocation3 + $0x10] sm:$0xff] %vm1332_vm7, %v1241_v23 }
 0x1f6   : > { %1470 = vrot.lane.b32.xlu0 %v4977_v36, %s4390_s29 }
 0x1f8   : > { %1450 = vrot.lane.b32.xlu2 %v1376_v3, %s4390_s29  ;;  %v1257_v42 = vpop.permute.xlu0 %1256  ;;  %v1580_v3 = vld [vmem:[#allocation2 + $0x129] sm:$0xff] }
 0x1f9   : > { %1460 = vrot.lane.b32.xlu1 %v4956_v11, %s4390_s29  ;;  %1343 = vst.msk [vmem:[#allocation3 + $0x50] sm:$0xff] %vm1332_vm7, %v1257_v42 }
 0x1fa   : > { %v1255_v53 = vpop.permute.xlu2 %1254 }
 0x1fb   : > { %1342 = vst.msk [vmem:[#allocation3 + $0x48] sm:$0xff] %vm1332_vm7, %v1255_v53  ;;  %v1247_v16 = vpop.permute.xlu1 %1246 }
 0x1fc   : > { %1338 = vst.msk [vmem:[#allocation3 + $0x28] sm:$0xff] %vm1332_vm7, %v1247_v16  ;;  %v1573_v16 = vld [vmem:[#allocation2 + $0xd9] sm:$0xff] }
 0x1fe   : > { %1476 = vrot.lane.b32.xlu0 %v5004_v10, %s4390_s29 }
 0x200   : > { %1456 = vrot.lane.b32.xlu2 %v1379_v56, %s4390_s29  ;;  %v1263_v36 = vpop.permute.xlu0 %1262  ;;  %v1578_v56 = vld [vmem:[#allocation2 + $0x111] sm:$0xff] }
 0x201   : > { %1466 = vrot.lane.b32.xlu1 %v4983_v14, %s4390_s29  ;;  %1346 = vst.msk [vmem:[#allocation3 + $0x68] sm:$0xff] %vm1332_vm7, %v1263_v36  ;;  %v1576_v36 = vld [vmem:[#allocation2 + $0xf9] sm:$0xff] }
 0x202   : > { %v1261_v61 = vpop.permute.xlu2 %1260 }
 0x203   : > { %1345 = vst.msk [vmem:[#allocation3 + $0x60] sm:$0xff] %vm1332_vm7, %v1261_v61  ;;  %v1253_v11 = vpop.permute.xlu1 %1252  ;;  %v1583_v61 = vld [vmem:[#allocation2 + $0x151] sm:$0xff] }
 0x204   : > { %1341 = vst.msk [vmem:[#allocation3 + $0x40] sm:$0xff] %vm1332_vm7, %v1253_v11 }
 0x206   : > { %1482 = vrot.lane.b32.xlu0 %v5030_v8, %s4390_s29 }
 0x208   : > { %1462 = vrot.lane.b32.xlu2 %v1382_v9, %s4390_s29  ;;  %v1269_v10 = vpop.permute.xlu0 %1268 }
 0x209   : > { %1472 = vrot.lane.b32.xlu1 %v5010_v6, %s4390_s29  ;;  %1349 = vst.msk [vmem:[#allocation3 + $0x80] sm:$0xff] %vm1332_vm7, %v1269_v10 }
 0x20a   : > { %v1267_v19 = vpop.permute.xlu2 %1266 }
 0x20b   : > { %1348 = vst.msk [vmem:[#allocation3 + $0x78] sm:$0xff] %vm1332_vm7, %v1267_v19  ;;  %v1259_v14 = vpop.permute.xlu1 %1258  ;;  %v1581_v19 = vld [vmem:[#allocation2 + $0x139] sm:$0xff] }
 0x20c   : > { %1344 = vst.msk [vmem:[#allocation3 + $0x58] sm:$0xff] %vm1332_vm7, %v1259_v14 }
 0x20e   : > { %1488 = vrot.lane.b32.xlu0 %v5180_v59, %s4390_s29  ;;  %v1396_v59 = vld [vmem:[#allocation2 + $0x198] sm:$0xff] }
 0x210   : > { %1468 = vrot.lane.b32.xlu2 %v1385_v12, %s4390_s29  ;;  %v1275_v8 = vpop.permute.xlu0 %1274  ;;  %v1586_v12 = vld [vmem:[#allocation2 + $0x171] sm:$0xff] }
 0x211   : > { %1478 = vrot.lane.b32.xlu1 %v5034_v7, %s4390_s29  ;;  %1352 = vst.msk [vmem:[#allocation3 + $0x98] sm:$0xff] %vm1332_vm7, %v1275_v8 }
 0x212   : > { %v1273_v41 = vpop.permute.xlu2 %1272 }
 0x213   : > { %1351 = vst.msk [vmem:[#allocation3 + $0x90] sm:$0xff] %vm1332_vm7, %v1273_v41  ;;  %v1265_v6 = vpop.permute.xlu1 %1264 }
 0x214   : > { %1347 = vst.msk [vmem:[#allocation3 + $0x70] sm:$0xff] %vm1332_vm7, %v1265_v6  ;;  %v1579_v6 = vld [vmem:[#allocation2 + $0x121] sm:$0xff] }
 0x216   : > { %1623 = vrot.lane.b32.xlu0 %v1559_v15, %s4391_s30  ;;  %v1589_v15 = vld [vmem:[#allocation2 + $0x199] sm:$0xff] }
 0x218   : > { %1474 = vrot.lane.b32.xlu2 %v1388_v1, %s4390_s29  ;;  %v1281_v20 = vpop.permute.xlu0 %1280  ;;  %v1584_v1 = vld [vmem:[#allocation2 + $0x159] sm:$0xff] }
 0x219   : > { %1484 = vrot.lane.b32.xlu1 %v5050_v55, %s4390_s29  ;;  %1355 = vst.msk [vmem:[#allocation3 + $0xb0] sm:$0xff] %vm1332_vm7, %v1281_v20  ;;  %v1562_v55 = vld [vmem:[#allocation2 + $0x51] sm:$0xff] }
 0x21a   : > { %v1279_v7 = vpop.permute.xlu2 %1278 }
 0x21b   : > { %1354 = vst.msk [vmem:[#allocation3 + $0xa8] sm:$0xff] %vm1332_vm7, %v1279_v7  ;;  %v1271_v22 = vpop.permute.xlu1 %1270 }
 0x21c   : > { %1350 = vst.msk [vmem:[#allocation3 + $0x88] sm:$0xff] %vm1332_vm7, %v1271_v22 }
 0x21e   : > { %1629 = vrot.lane.b32.xlu0 %v1562_v55, %s4391_s30  ;;  %v1753_v55 = vld [vmem:[#allocation2 + $0x3a] sm:$0xff] }
 0x220   : > { %1480 = vrot.lane.b32.xlu2 %v5006_v2, %s4390_s29  ;;  %v1287_v21 = vpop.permute.xlu0 %1286  ;;  %v1565_v2 = vld [vmem:[#allocation2 + $0x79] sm:$0xff] }
 0x221   : > { %1490 = vrot.lane.b32.xlu1 %v1396_v59, %s4390_s29  ;;  %1358 = vst.msk [vmem:[#allocation3 + $0xc8] sm:$0xff] %vm1332_vm7, %v1287_v21  ;;  %v1582_v59 = vld [vmem:[#allocation2 + $0x141] sm:$0xff] }
 0x222   : > { %v1285_v17 = vpop.permute.xlu2 %1284  ;;  %v1590_v21 = vld [vmem:[#allocation2 + $0x1a1] sm:$0xff] }
 0x223   : > { %1357 = vst.msk [vmem:[#allocation3 + $0xc0] sm:$0xff] %vm1332_vm7, %v1285_v17  ;;  %v1277_v28 = vpop.permute.xlu1 %1276 }
 0x224   : > { %1353 = vst.msk [vmem:[#allocation3 + $0xa0] sm:$0xff] %vm1332_vm7, %v1277_v28 }
 0x226   : > { %1635 = vrot.lane.b32.xlu0 %v1565_v2, %s4391_s30 }
 0x228   : > { %1486 = vrot.lane.b32.xlu2 %v5160_v0, %s4390_s29  ;;  %v1293_v58 = vpop.permute.xlu0 %1292  ;;  %v1568_v0 = vld [vmem:[#allocation2 + $0x99] sm:$0xff] }
 0x229   : > { %1625 = vrot.lane.b32.xlu1 %v1560_v57, %s4391_s30  ;;  %1361 = vst.msk [vmem:[#allocation3 + $0xe0] sm:$0xff] %vm1332_vm7, %v1293_v58  ;;  %v1585_v57 = vld [vmem:[#allocation2 + $0x169] sm:$0xff] }
 0x22a   : > { %v1291_v34 = vpop.permute.xlu2 %1290  ;;  %v1759_v58 = vld [vmem:[#allocation2 + $0x82] sm:$0xff] }
 0x22b   : > { %1360 = vst.msk [vmem:[#allocation3 + $0xd8] sm:$0xff] %vm1332_vm7, %v1291_v34  ;;  %v1283_v18 = vpop.permute.xlu1 %1282 }
 0x22c   : > { %1356 = vst.msk [vmem:[#allocation3 + $0xb8] sm:$0xff] %vm1332_vm7, %v1283_v18 }
 0x22e   : > { %1641 = vrot.lane.b32.xlu0 %v1568_v0, %s4391_s30 }
 0x230   : > { %1492 = vrot.lane.b32.xlu2 %v1397_v62, %s4390_s29  ;;  %v1299_v39 = vpop.permute.xlu0 %1298  ;;  %v1754_v62 = vld [vmem:[#allocation2 + $0x4a] sm:$0xff] }
 0x231   : > { %1631 = vrot.lane.b32.xlu1 %v1563_v27, %s4391_s30  ;;  %1364 = vst.msk [vmem:[#allocation3 + $0xf8] sm:$0xff] %vm1332_vm7, %v1299_v39 }
 0x232   : > { %v1297_v26 = vpop.permute.xlu2 %1296 }
 0x233   : > { %1363 = vst.msk [vmem:[#allocation3 + $0xf0] sm:$0xff] %vm1332_vm7, %v1297_v26  ;;  %v1289_v33 = vpop.permute.xlu1 %1288 }
 0x234   : > { %1359 = vst.msk [vmem:[#allocation3 + $0xd0] sm:$0xff] %vm1332_vm7, %v1289_v33  ;;  %v1752_v33 = vld [vmem:[#allocation2 + $0x32] sm:$0xff] }
 0x236   : > { %1647 = vrot.lane.b32.xlu0 %v1571_v46, %s4391_s30 }
 0x238   : > { %1627 = vrot.lane.b32.xlu2 %v1561_v40, %s4391_s30  ;;  %v1435_v52 = vpop.permute.xlu0 %1434  ;;  %v1757_v40 = vld [vmem:[#allocation2 + $0x6a] sm:$0xff] }
 0x239   : > { %1637 = vrot.lane.b32.xlu1 %v1566_v32, %s4391_s30  ;;  %1529 = vst.msk [vmem:[#allocation3 + $0x10] sm:$0xff] %vm1526_vm8, %v1435_v52 }
 0x23a   : > { %v1433_v38 = vpop.permute.xlu2 %1432 }
 0x23b   : > { %1528 = vst.msk [vmem:[#allocation3 + $0x8] sm:$0xff] %vm1526_vm8, %v1433_v38  ;;  %v1295_v45 = vpop.permute.xlu1 %1294  ;;  %v1755_v38 = vld [vmem:[#allocation2 + $0x52] sm:$0xff] }
 0x23c   : > { %1362 = vst.msk [vmem:[#allocation3 + $0xe8] sm:$0xff] %vm1332_vm7, %v1295_v45  ;;  %v1760_v45 = vld [vmem:[#allocation2 + $0x92] sm:$0xff] }
 0x23e   : > { %1653 = vrot.lane.b32.xlu0 %v1574_v43, %s4391_s30 }
 0x240   : > { %1633 = vrot.lane.b32.xlu2 %v1564_v44, %s4391_s30  ;;  %v1441_v30 = vpop.permute.xlu0 %1440 }
 0x241   : > { %1643 = vrot.lane.b32.xlu1 %v1569_v48, %s4391_s30  ;;  %1532 = vst.msk [vmem:[#allocation3 + $0x28] sm:$0xff] %vm1526_vm8, %v1441_v30  ;;  %v1765_v48 = vld [vmem:[#allocation2 + $0xca] sm:$0xff] }
 0x242   : > { %v1439_v51 = vpop.permute.xlu2 %1438 }
 0x243   : > { %1531 = vst.msk [vmem:[#allocation3 + $0x20] sm:$0xff] %vm1526_vm8, %v1439_v51  ;;  %v1431_v35 = vpop.permute.xlu1 %1430  ;;  %v1758_v51 = vld [vmem:[#allocation2 + $0x7a] sm:$0xff] }
 0x244   : > { %1527 = vst.msk [vmem:[#allocation3] sm:$0xff] %vm1526_vm8, %v1431_v35  ;;  %v1763_v35 = vld [vmem:[#allocation2 + $0xb2] sm:$0xff] }
 0x246   : > { %1659 = vrot.lane.b32.xlu0 %v1577_v50, %s4391_s30 }
 0x248   : > { %1639 = vrot.lane.b32.xlu2 %v1567_v63, %s4391_s30  ;;  %v1447_v23 = vpop.permute.xlu0 %1446 }
 0x249   : > { %1649 = vrot.lane.b32.xlu1 %v1572_v37, %s4391_s30  ;;  %1535 = vst.msk [vmem:[#allocation3 + $0x40] sm:$0xff] %vm1526_vm8, %v1447_v23  ;;  %v1768_v37 = vld [vmem:[#allocation2 + $0xf2] sm:$0xff] }
 0x24a   : > { %v1445_v29 = vpop.permute.xlu2 %1444 }
 0x24b   : > { %1534 = vst.msk [vmem:[#allocation3 + $0x38] sm:$0xff] %vm1526_vm8, %v1445_v29  ;;  %v1437_v54 = vpop.permute.xlu1 %1436  ;;  %v1761_v29 = vld [vmem:[#allocation2 + $0x9a] sm:$0xff] }
 0x24c   : > { %1530 = vst.msk [vmem:[#allocation3 + $0x18] sm:$0xff] %vm1526_vm8, %v1437_v54  ;;  %v1766_v54 = vld [vmem:[#allocation2 + $0xda] sm:$0xff] }
 0x24e   : > { %1665 = vrot.lane.b32.xlu0 %v1580_v3, %s4391_s30 }
 0x250   : > { %1645 = vrot.lane.b32.xlu2 %v1570_v31, %s4391_s30  ;;  %v1453_v42 = vpop.permute.xlu0 %1452 }
 0x251   : > { %1655 = vrot.lane.b32.xlu1 %v1575_v60, %s4391_s30  ;;  %1538 = vst.msk [vmem:[#allocation3 + $0x58] sm:$0xff] %vm1526_vm8, %v1453_v42  ;;  %v1771_v60 = vld [vmem:[#allocation2 + $0x112] sm:$0xff] }
 0x252   : > { %v1451_v25 = vpop.permute.xlu2 %1450 }
 0x253   : > { %1537 = vst.msk [vmem:[#allocation3 + $0x50] sm:$0xff] %vm1526_vm8, %v1451_v25  ;;  %v1443_v53 = vpop.permute.xlu1 %1442  ;;  %v1764_v25 = vld [vmem:[#allocation2 + $0xc2] sm:$0xff] }
 0x254   : > { %1533 = vst.msk [vmem:[#allocation3 + $0x30] sm:$0xff] %vm1526_vm8, %v1443_v53  ;;  %v1769_v53 = vld [vmem:[#allocation2 + $0xfa] sm:$0xff] }
 0x256   : > { %1671 = vrot.lane.b32.xlu0 %v1583_v61, %s4391_s30  ;;  %v1774_v61 = vld [vmem:[#allocation2 + $0x13a] sm:$0xff] }
 0x258   : > { %1651 = vrot.lane.b32.xlu2 %v1573_v16, %s4391_s30  ;;  %v1459_v14 = vpop.permute.xlu0 %1458 }
 0x259   : > { %1661 = vrot.lane.b32.xlu1 %v1578_v56, %s4391_s30  ;;  %1541 = vst.msk [vmem:[#allocation3 + $0x70] sm:$0xff] %vm1526_vm8, %v1459_v14 }
 0x25a   : > { %v1457_v11 = vpop.permute.xlu2 %1456 }
 0x25b   : > { %1540 = vst.msk [vmem:[#allocation3 + $0x68] sm:$0xff] %vm1526_vm8, %v1457_v11  ;;  %v1449_v9 = vpop.permute.xlu1 %1448  ;;  %v1767_v11 = vld [vmem:[#allocation2 + $0xe2] sm:$0xff] }
 0x25c   : > { %1536 = vst.msk [vmem:[#allocation3 + $0x48] sm:$0xff] %vm1526_vm8, %v1449_v9 }
 0x25e   : > { %1677 = vrot.lane.b32.xlu0 %v1586_v12, %s4391_s30  ;;  %v1770_v12 = vld [vmem:[#allocation2 + $0x10a] sm:$0xff] }
 0x260   : > { %1657 = vrot.lane.b32.xlu2 %v1576_v36, %s4391_s30  ;;  %v1465_v8 = vpop.permute.xlu0 %1464  ;;  %v1772_v36 = vld [vmem:[#allocation2 + $0x122] sm:$0xff] }
 0x261   : > { %1667 = vrot.lane.b32.xlu1 %v1581_v19, %s4391_s30  ;;  %1544 = vst.msk [vmem:[#allocation3 + $0x88] sm:$0xff] %vm1526_vm8, %v1465_v8  ;;  %v1981_v8 = vld [vmem:[%s6846_s1 + $0x20] sm:$0xf] }
 0x262   : > { %v1463_v10 = vpop.permute.xlu2 %1462  ;;  %4277 = vmatpush.msk.msra.mxu0 %vm2083_vm10, %v1981_v8  ;;  %4347 = vmatpush.msk.msra.mxu2 %vm2083_vm10, %v1981_v8 }
 0x263   : > { %1543 = vst.msk [vmem:[#allocation3 + $0x80] sm:$0xff] %vm1526_vm8, %v1463_v10  ;;  %v1455_v41 = vpop.permute.xlu1 %1454 }
 0x264   : > { %1539 = vst.msk [vmem:[#allocation3 + $0x60] sm:$0xff] %vm1526_vm8, %v1455_v41  ;;  %v1775_v41 = vld [vmem:[#allocation2 + $0x142] sm:$0xff] }
 0x266   : > { %1683 = vrot.lane.b32.xlu0 %v1589_v15, %s4391_s30  ;;  %v1773_v15 = vld [vmem:[#allocation2 + $0x12a] sm:$0xff] }
 0x268   : > { %1663 = vrot.lane.b32.xlu2 %v1579_v6, %s4391_s30  ;;  %v1471_v20 = vpop.permute.xlu0 %1470 }
 0x269   : > { %1673 = vrot.lane.b32.xlu1 %v1584_v1, %s4391_s30  ;;  %1547 = vst.msk [vmem:[#allocation3 + $0xa0] sm:$0xff] %vm1526_vm8, %v1471_v20  ;;  %v1980_v20 = vld [vmem:[%s6846_s1 + $0x18] sm:$0xff] }
 0x26a   : > { %v1469_v7 = vpop.permute.xlu2 %1468  ;;  %2099 = vmatpush.msra.mxu0 %v1980_v20  ;;  %4348 = vmatpush.msra.mxu2 %v1980_v20 }
 0x26b   : > { %1546 = vst.msk [vmem:[#allocation3 + $0x98] sm:$0xff] %vm1526_vm8, %v1469_v7  ;;  %v1461_v22 = vpop.permute.xlu1 %1460 }
 0x26c   : > { %1542 = vst.msk [vmem:[#allocation3 + $0x78] sm:$0xff] %vm1526_vm8, %v1461_v22 }
 0x26e   : > { %1818 = vrot.lane.b32.xlu0 %v1753_v55, %s4392_s6  ;;  %v1979_v55 = vld [vmem:[%s6846_s1 + $0x10] sm:$0xff] }
 0x26f   : > { %2100 = vmatpush.msra.mxu0 %v1979_v55  ;;  %4349 = vmatpush.msra.mxu2 %v1979_v55 }
 0x270   : > { %1669 = vrot.lane.b32.xlu2 %v1582_v59, %s4391_s30  ;;  %v1477_v2 = vpop.permute.xlu0 %1476 }
 0x271   : > { %1679 = vrot.lane.b32.xlu1 %v5250_v47, %s4391_s30  ;;  %1550 = vst.msk [vmem:[#allocation3 + $0xb8] sm:$0xff] %vm1526_vm8, %v1477_v2  ;;  %v1756_v47 = vld [vmem:[#allocation2 + $0x62] sm:$0xff] }
 0x272   : > { %v1475_v17 = vpop.permute.xlu2 %1474 }
 0x273   : > { %1549 = vst.msk [vmem:[#allocation3 + $0xb0] sm:$0xff] %vm1526_vm8, %v1475_v17  ;;  %v1467_v28 = vpop.permute.xlu1 %1466  ;;  %v1777_v17 = vld [vmem:[#allocation2 + $0x15a] sm:$0xff] }
 0x274   : > { %1545 = vst.msk [vmem:[#allocation3 + $0x90] sm:$0xff] %vm1526_vm8, %v1467_v28 }
 0x276   : > { %1824 = vrot.lane.b32.xlu0 %v1756_v47, %s4392_s6 }
 0x278   : > { %1675 = vrot.lane.b32.xlu2 %v1585_v57, %s4391_s30  ;;  %v1483_v27 = vpop.permute.xlu0 %1482  ;;  %v1978_v57 = vld [vmem:[%s6846_s1 + $0x8] sm:$0xff] }
 0x279   : > { %1685 = vrot.lane.b32.xlu1 %v1590_v21, %s4391_s30  ;;  %1553 = vst.msk [vmem:[#allocation3 + $0xd0] sm:$0xff] %vm1526_vm8, %v1483_v27  ;;  %v1977_v21 = vld [vmem:[%s6846_s1] sm:$0xff]  ;;  %2101 = vmatpush.msra.mxu0 %v1978_v57 }
 0x27a   : > { %v1481_v34 = vpop.permute.xlu2 %1480  ;;  %4350 = vmatpush.msra.mxu2 %v1978_v57 }
 0x27b   : > { %1552 = vst.msk [vmem:[#allocation3 + $0xc8] sm:$0xff] %vm1526_vm8, %v1481_v34  ;;  %v1473_v18 = vpop.permute.xlu1 %1472  ;;  %2102 = vmatpush.msra.mxu0 %v1977_v21  ;;  %v1778_v34 = vld [vmem:[#allocation2 + $0x16a] sm:$0xff] }
 0x27c   : > { %1548 = vst.msk [vmem:[#allocation3 + $0xa8] sm:$0xff] %vm1526_vm8, %v1473_v18  ;;  %4351 = vmatpush.msra.mxu2 %v1977_v21 }
 0x27e   : > { %1830 = vrot.lane.b32.xlu0 %v1759_v58, %s4392_s6  ;;  %v1776_v58 = vld [vmem:[#allocation2 + $0x152] sm:$0xff] }
 0x280   : > { %1681 = vrot.lane.b32.xlu2 %v5265_v13, %s4391_s30  ;;  %v1489_v32 = vpop.permute.xlu0 %1488  ;;  %v1762_v13 = vld [vmem:[#allocation2 + $0xaa] sm:$0xff] }
 0x281   : > { %1820 = vrot.lane.b32.xlu1 %v1754_v62, %s4392_s6  ;;  %1556 = vst.msk [vmem:[#allocation3 + $0xe8] sm:$0xff] %vm1526_vm8, %v1489_v32 }
 0x282   : > { %v1487_v0 = vpop.permute.xlu2 %1486 }
 0x283   : > { %1555 = vst.msk [vmem:[#allocation3 + $0xe0] sm:$0xff] %vm1526_vm8, %v1487_v0  ;;  %v1479_v26 = vpop.permute.xlu1 %1478 }
 0x284   : > { %1551 = vst.msk [vmem:[#allocation3 + $0xc0] sm:$0xff] %vm1526_vm8, %v1479_v26 }
 0x286   : > { %1836 = vrot.lane.b32.xlu0 %v1762_v13, %s4392_s6 }
 0x288   : > { %1816 = vrot.lane.b32.xlu2 %v1752_v33, %s4392_s6  ;;  %v1624_v44 = vpop.permute.xlu0 %1623 }
 0x289   : > { %1826 = vrot.lane.b32.xlu1 %v1757_v40, %s4392_s6  ;;  %1720 = vst.msk [vmem:[#allocation3] sm:$0xff] %vm1719_vm9, %v1624_v44 }
 0x28a   : > { %v1493_v39 = vpop.permute.xlu2 %1492 }
 0x28b   : > { %1558 = vst.msk [vmem:[#allocation3 + $0xf8] sm:$0xff] %vm1526_vm8, %v1493_v39  ;;  %v1485_v46 = vpop.permute.xlu1 %1484 }
 0x28c   : > { %1554 = vst.msk [vmem:[#allocation3 + $0xd8] sm:$0xff] %vm1526_vm8, %v1485_v46 }
 0x28e   : > { %1842 = vrot.lane.b32.xlu0 %v1765_v48, %s4392_s6 }
 0x290   : > { %1822 = vrot.lane.b32.xlu2 %v1755_v38, %s4392_s6  ;;  %v1630_v63 = vpop.permute.xlu0 %1629  ;;  %v1779_v38 = vld [vmem:[#allocation2 + $0x172] sm:$0xff] }
 0x291   : > { %1832 = vrot.lane.b32.xlu1 %v1760_v45, %s4392_s6  ;;  %1723 = vst.msk [vmem:[#allocation3 + $0x18] sm:$0xff] %vm1719_vm9, %v1630_v63 }
 0x292   : > { %v1628_v52 = vpop.permute.xlu2 %1627 }
 0x293   : > { %1722 = vst.msk [vmem:[#allocation3 + $0x10] sm:$0xff] %vm1719_vm9, %v1628_v52  ;;  %v1491_v43 = vpop.permute.xlu1 %1490 }
 0x294   : > { %1557 = vst.msk [vmem:[#allocation3 + $0xf0] sm:$0xff] %vm1526_vm8, %v1491_v43 }
 0x296   : > { %1848 = vrot.lane.b32.xlu0 %v1768_v37, %s4392_s6 }
 0x298   : > { %1828 = vrot.lane.b32.xlu2 %v1758_v51, %s4392_s6  ;;  %v1636_v31 = vpop.permute.xlu0 %1635 }
 0x299   : > { %1838 = vrot.lane.b32.xlu1 %v1763_v35, %s4392_s6  ;;  %1726 = vst.msk [vmem:[#allocation3 + $0x30] sm:$0xff] %vm1719_vm9, %v1636_v31 }
 0x29a   : > { %v1634_v30 = vpop.permute.xlu2 %1633 }
 0x29b   : > { %1725 = vst.msk [vmem:[#allocation3 + $0x28] sm:$0xff] %vm1719_vm9, %v1634_v30  ;;  %v1626_v50 = vpop.permute.xlu1 %1625 }
 0x29c   : > { %1721 = vst.msk [vmem:[#allocation3 + $0x8] sm:$0xff] %vm1719_vm9, %v1626_v50 }
 0x29e   : > { %1854 = vrot.lane.b32.xlu0 %v1771_v60, %s4392_s6 }
 0x2a0   : > { %1834 = vrot.lane.b32.xlu2 %v1761_v29, %s4392_s6  ;;  %v1642_v16 = vpop.permute.xlu0 %1641 }
 0x2a1   : > { %1844 = vrot.lane.b32.xlu1 %v1766_v54, %s4392_s6  ;;  %1729 = vst.msk [vmem:[#allocation3 + $0x48] sm:$0xff] %vm1719_vm9, %v1642_v16 }
 0x2a2   : > { %v1640_v23 = vpop.permute.xlu2 %1639 }
 0x2a3   : > { %1728 = vst.msk [vmem:[#allocation3 + $0x40] sm:$0xff] %vm1719_vm9, %v1640_v23  ;;  %v1632_v3 = vpop.permute.xlu1 %1631 }
 0x2a4   : > { %1724 = vst.msk [vmem:[#allocation3 + $0x20] sm:$0xff] %vm1719_vm9, %v1632_v3 }
 0x2a6   : > { %1860 = vrot.lane.b32.xlu0 %v1774_v61, %s4392_s6 }
 0x2a8   : > { %1840 = vrot.lane.b32.xlu2 %v1764_v25, %s4392_s6  ;;  %v1648_v9 = vpop.permute.xlu0 %1647 }
 0x2a9   : > { %1850 = vrot.lane.b32.xlu1 %v1769_v53, %s4392_s6  ;;  %1732 = vst.msk [vmem:[#allocation3 + $0x60] sm:$0xff] %vm1719_vm9, %v1648_v9 }
 0x2aa   : > { %v1646_v56 = vpop.permute.xlu2 %1645 }
 0x2ab   : > { %1731 = vst.msk [vmem:[#allocation3 + $0x58] sm:$0xff] %vm1719_vm9, %v1646_v56  ;;  %v1638_v42 = vpop.permute.xlu1 %1637 }
 0x2ac   : > { %1727 = vst.msk [vmem:[#allocation3 + $0x38] sm:$0xff] %vm1719_vm9, %v1638_v42 }
 0x2ae   : > { %1866 = vrot.lane.b32.xlu0 %v1777_v17, %s4392_s6 }
 0x2b0   : > { %1846 = vrot.lane.b32.xlu2 %v1767_v11, %s4392_s6  ;;  %v1654_v10 = vpop.permute.xlu0 %1653 }
 0x2b1   : > { %1856 = vrot.lane.b32.xlu1 %v1772_v36, %s4392_s6  ;;  %1735 = vst.msk [vmem:[#allocation3 + $0x78] sm:$0xff] %vm1719_vm9, %v1654_v10 }
 0x2b2   : > { %v1652_v19 = vpop.permute.xlu2 %1651 }
 0x2b3   : > { %1734 = vst.msk [vmem:[#allocation3 + $0x70] sm:$0xff] %vm1719_vm9, %v1652_v19  ;;  %v1644_v14 = vpop.permute.xlu1 %1643 }
 0x2b4   : > { %1730 = vst.msk [vmem:[#allocation3 + $0x50] sm:$0xff] %vm1719_vm9, %v1644_v14 }
 0x2b6   : > { %1872 = vrot.lane.b32.xlu0 %v5375_v49, %s4392_s6 }
 0x2b8   : > { %1852 = vrot.lane.b32.xlu2 %v1770_v12, %s4392_s6  ;;  %v1660_v7 = vpop.permute.xlu0 %1659 }
 0x2b9   : > { %1862 = vrot.lane.b32.xlu1 %v1775_v41, %s4392_s6  ;;  %1738 = vst.msk [vmem:[#allocation3 + $0x90] sm:$0xff] %vm1719_vm9, %v1660_v7 }
 0x2ba   : > { %v1658_v6 = vpop.permute.xlu2 %1657 }
 0x2bb   : > { %1737 = vst.msk [vmem:[#allocation3 + $0x88] sm:$0xff] %vm1719_vm9, %v1658_v6  ;;  %v1650_v1 = vpop.permute.xlu1 %1649 }
 0x2bc   : > { %1733 = vst.msk [vmem:[#allocation3 + $0x68] sm:$0xff] %vm1719_vm9, %v1650_v1 }
 0x2c0   : > { %1858 = vrot.lane.b32.xlu2 %v1773_v15, %s4392_s6  ;;  %v1666_v28 = vpop.permute.xlu0 %1665 }
 0x2c1   : > { %1741 = vst.msk [vmem:[#allocation3 + $0xa8] sm:$0xff] %vm1719_vm9, %v1666_v28  ;;  %1868 = vrot.lane.b32.xlu1 %v1778_v34, %s4392_s6 }
 0x2c2   : > { %v1664_v22 = vpop.permute.xlu2 %1663 }
 0x2c3   : > { %1740 = vst.msk [vmem:[#allocation3 + $0xa0] sm:$0xff] %vm1719_vm9, %v1664_v22  ;;  %v1656_v59 = vpop.permute.xlu1 %1655 }
 0x2c4   : > { %1736 = vst.msk [vmem:[#allocation3 + $0x80] sm:$0xff] %vm1719_vm9, %v1656_v59 }
 0x2c8   : > { %v1672_v18 = vpop.permute.xlu0 %1671  ;;  %1864 = vrot.lane.b32.xlu2 %v1776_v58, %s4392_s6 }
 0x2c9   : > { %1744 = vst.msk [vmem:[#allocation3 + $0xc0] sm:$0xff] %vm1719_vm9, %v1672_v18  ;;  %1874 = vrot.lane.b32.xlu1 %v5353_v4, %s4392_s6 }
 0x2ca   : > { %v1670_v2 = vpop.permute.xlu2 %1669 }
 0x2cb   : > { %1743 = vst.msk [vmem:[#allocation3 + $0xb8] sm:$0xff] %vm1719_vm9, %v1670_v2  ;;  %v1662_v47 = vpop.permute.xlu1 %1661  ;;  %v1783_v2 = vld [vmem:[#allocation2 + $0x1a2] sm:$0xff] }
 0x2cc   : > { %1739 = vst.msk [vmem:[#allocation3 + $0x98] sm:$0xff] %vm1719_vm9, %v1662_v47  ;;  %1878 = vrot.lane.b32.xlu0 %v1783_v2, %s4392_s6 }
 0x2d0   : > { %v1678_v0 = vpop.permute.xlu0 %1677  ;;  %1870 = vrot.lane.b32.xlu2 %v1779_v38, %s4392_s6 }
 0x2d1   : > { %1747 = vst.msk [vmem:[#allocation3 + $0xd8] sm:$0xff] %vm1719_vm9, %v1678_v0 }
 0x2d2   : > { %v1676_v62 = vpop.permute.xlu2 %1675 }
 0x2d3   : > { %1746 = vst.msk [vmem:[#allocation3 + $0xd0] sm:$0xff] %vm1719_vm9, %v1676_v62  ;;  %v1668_v27 = vpop.permute.xlu1 %1667  ;;  %v1782_v62 = vld [vmem:[#allocation2 + $0x19a] sm:$0xff] }
 0x2d4   : > { %1742 = vst.msk [vmem:[#allocation3 + $0xb0] sm:$0xff] %vm1719_vm9, %v1668_v27  ;;  %v2328_v27 = vld [vmem:[#allocation2 + $0x1] sm:$0xff] }
 0x2d5   : > { %2392 = vrot.lane.b32.xlu1 %v2328_v27, %s4385_s24 }
 0x2d8   : > { %v1684_v33 = vpop.permute.xlu0 %1683  ;;  %1876 = vrot.lane.b32.xlu2 %v1782_v62, %s4392_s6 }
 0x2d9   : > { %1750 = vst.msk [vmem:[#allocation3 + $0xf0] sm:$0xff] %vm1719_vm9, %v1684_v33 }
 0x2da   : > { %v1682_v26 = vpop.permute.xlu2 %1681 }
 0x2db   : > { %1749 = vst.msk [vmem:[#allocation3 + $0xe8] sm:$0xff] %vm1719_vm9, %v1682_v26  ;;  %v1674_v49 = vpop.permute.xlu1 %1673 }
 0x2dc   : > { %1745 = vst.msk [vmem:[#allocation3 + $0xc8] sm:$0xff] %vm1719_vm9, %v1674_v49  ;;  %v2329_v49 = vld [vmem:[#allocation2 + $0x9] sm:$0xff] }
 0x2e0   : > { %v1819_v4 = vpop.permute.xlu0 %1818  ;;  %2394 = vrot.lane.b32.xlu2 %v2329_v49, %s4385_s24 }
 0x2e1   : > { %1914 = vst.msk [vmem:[#allocation3 + $0x8] sm:$0xff] %vm1912_vm11, %v1819_v4 }
 0x2e2   : > { %v1817_v40 = vpop.permute.xlu2 %1816 }
 0x2e3   : > { %1913 = vst.msk [vmem:[#allocation3] sm:$0xff] %vm1912_vm11, %v1817_v40  ;;  %v1680_v32 = vpop.permute.xlu1 %1679 }
 0x2e4   : > { %1748 = vst.msk [vmem:[#allocation3 + $0xe0] sm:$0xff] %vm1719_vm9, %v1680_v32  ;;  %v5675_v32 = vld [vmem:[%s6847_s2] ss:$0 sm:$0xff] }
 0x2e8   : > { %v1825_v45 = vpop.permute.xlu0 %1824  ;;  %v1946_v44 = vld [vmem:[#allocation3 + $0x8] sm:$0xff] }
 0x2e9   : > { %1917 = vst.msk [vmem:[#allocation3 + $0x20] sm:$0xff] %vm1912_vm11, %v1825_v45 }
 0x2ea   : > { %v1945_v13 = vld [vmem:[#allocation3] sm:$0xff]  ;;  %v1823_v39 = vpop.permute.xlu2 %1822 }
 0x2eb   : > { %v1686_v46 = vpop.permute.xlu1 %1685  ;;  %4278 = vmatmul.msk.f32.vlgmr.msra.gmra.mxu0 %vm1986_vm12, %v1945_v13  ;;  %1916 = vst.msk [vmem:[#allocation3 + $0x18] sm:$0xff] %vm1912_vm11, %v1823_v39 }
 0x2ec   : > { %1751 = vst.msk [vmem:[#allocation3 + $0xf8] sm:$0xff] %vm1719_vm9, %v1686_v46 }
 0x2f0   : > { %v1831_v43 = vpop.permute.xlu0 %1830  ;;  %v1949_v23 = vld [vmem:[#allocation3 + $0x20] sm:$0xff] }
 0x2f1   : > { %1920 = vst.msk [vmem:[#allocation3 + $0x38] sm:$0xff] %vm1912_vm11, %v1831_v43 }
 0x2f2   : > { %v1829_v48 = vpop.permute.xlu2 %1828  ;;  %v1948_v30 = vld [vmem:[#allocation3 + $0x18] sm:$0xff] }
 0x2f3   : > { %v1821_v52 = vpop.permute.xlu1 %1820  ;;  %4279 = vmatmul.msk.f32.gmra.mxu0 %vm1986_vm12, %v1946_v44  ;;  %1919 = vst.msk [vmem:[#allocation3 + $0x30] sm:$0xff] %vm1912_vm11, %v1829_v48 }
 0x2f4   : > { %1915 = vst.msk [vmem:[#allocation3 + $0x10] sm:$0xff] %vm1912_vm11, %v1821_v52 }
 0x2f8   : > { %v1837_v37 = vpop.permute.xlu0 %1836  ;;  %v1952_v19 = vld [vmem:[#allocation3 + $0x38] sm:$0xff] }
 0x2f9   : > { %1923 = vst.msk [vmem:[#allocation3 + $0x50] sm:$0xff] %vm1912_vm11, %v1837_v37 }
 0x2fa   : > { %v1835_v51 = vpop.permute.xlu2 %1834  ;;  %v1951_v9 = vld [vmem:[#allocation3 + $0x30] sm:$0xff] }
 0x2fb   : > { %v1827_v35 = vpop.permute.xlu1 %1826  ;;  %v1947_v63 = vld [vmem:[#allocation3 + $0x10] sm:$0xff]  ;;  %1922 = vst.msk [vmem:[#allocation3 + $0x48] sm:$0xff] %vm1912_vm11, %v1835_v51 }
 0x2fc   : > { %1918 = vst.msk [vmem:[#allocation3 + $0x28] sm:$0xff] %vm1912_vm11, %v1827_v35  ;;  %4280 = vmatmul.msk.f32.gmra.mxu0 %vm1986_vm12, %v1947_v63 }
 0x300   : > { %v1843_v54 = vpop.permute.xlu0 %1842  ;;  %v1955_v59 = vld [vmem:[#allocation3 + $0x50] sm:$0xff] }
 0x301   : > { %1926 = vst.msk [vmem:[#allocation3 + $0x68] sm:$0xff] %vm1912_vm11, %v1843_v54 }
 0x302   : > { %v1841_v50 = vpop.permute.xlu2 %1840  ;;  %v1954_v15 = vld [vmem:[#allocation3 + $0x48] sm:$0xff] }
 0x303   : > { %v1833_v29 = vpop.permute.xlu1 %1832  ;;  %1925 = vst.msk [vmem:[#allocation3 + $0x60] sm:$0xff] %vm1912_vm11, %v1841_v50  ;;  %v1950_v16 = vld [vmem:[#allocation3 + $0x28] sm:$0xff] }
 0x304   : > { %1921 = vst.msk [vmem:[#allocation3 + $0x40] sm:$0xff] %vm1912_vm11, %v1833_v29  ;;  %4281 = vmatmul.msk.f32.gmra.mxu0 %vm1986_vm12, %v1948_v30 }
 0x308   : > { %v1849_v3 = vpop.permute.xlu0 %1848  ;;  %v1958_v34 = vld [vmem:[#allocation3 + $0x68] sm:$0xff] }
 0x309   : > { %1929 = vst.msk [vmem:[#allocation3 + $0x80] sm:$0xff] %vm1912_vm11, %v1849_v3 }
 0x30a   : > { %v1847_v31 = vpop.permute.xlu2 %1846  ;;  %v1957_v57 = vld [vmem:[#allocation3 + $0x60] sm:$0xff] }
 0x30b   : > { %v1839_v60 = vpop.permute.xlu1 %1838  ;;  %1928 = vst.msk [vmem:[#allocation3 + $0x78] sm:$0xff] %vm1912_vm11, %v1847_v31  ;;  %v1953_v41 = vld [vmem:[#allocation3 + $0x40] sm:$0xff] }
 0x30c   : > { %1924 = vst.msk [vmem:[#allocation3 + $0x58] sm:$0xff] %vm1912_vm11, %v1839_v60  ;;  %4282 = vmatmul.msk.f32.gmra.mxu0 %vm1986_vm12, %v1949_v23 }
 0x310   : > { %v1961_v56 = vld [vmem:[#allocation3 + $0x80] sm:$0xff]  ;;  %v1855_v42 = vpop.permute.xlu0 %1854 }
 0x311   : > { %4294 = vmatmul.msk.f32.vlgmr.msra.gmra.mxu2 %vm1986_vm12, %v1961_v56  ;;  %1932 = vst.msk [vmem:[#allocation3 + $0x98] sm:$0xff] %vm1912_vm11, %v1855_v42 }
 0x312   : > { %v1853_v25 = vpop.permute.xlu2 %1852  ;;  %v1960_v40 = vld [vmem:[#allocation3 + $0x78] sm:$0xff] }
 0x313   : > { %v1845_v53 = vpop.permute.xlu1 %1844  ;;  %1931 = vst.msk [vmem:[#allocation3 + $0x90] sm:$0xff] %vm1912_vm11, %v1853_v25  ;;  %v1956_v17 = vld [vmem:[#allocation3 + $0x58] sm:$0xff] }
 0x314   : > { %1927 = vst.msk [vmem:[#allocation3 + $0x70] sm:$0xff] %vm1912_vm11, %v1845_v53  ;;  %4283 = vmatmul.msk.f32.gmra.mxu0 %vm1986_vm12, %v1950_v16 }
 0x318   : > { %v1861_v36 = vpop.permute.xlu0 %1860  ;;  %v1964_v8 = vld [vmem:[#allocation3 + $0x98] sm:$0xff] }
 0x319   : > { %1935 = vst.msk [vmem:[#allocation3 + $0xb0] sm:$0xff] %vm1912_vm11, %v1861_v36 }
 0x31a   : > { %v1859_v61 = vpop.permute.xlu2 %1858  ;;  %v1963_v10 = vld [vmem:[#allocation3 + $0x90] sm:$0xff] }
 0x31b   : > { %v1851_v11 = vpop.permute.xlu1 %1850  ;;  %1934 = vst.msk [vmem:[#allocation3 + $0xa8] sm:$0xff] %vm1912_vm11, %v1859_v61  ;;  %v1959_v0 = vld [vmem:[#allocation3 + $0x70] sm:$0xff] }
 0x31c   : > { %1930 = vst.msk [vmem:[#allocation3 + $0x88] sm:$0xff] %vm1912_vm11, %v1851_v11  ;;  %4284 = vmatmul.msk.f32.gmra.mxu0 %vm1986_vm12, %v1951_v9 }
 0x320   : > { %v1867_v7 = vpop.permute.xlu0 %1866  ;;  %v1967_v28 = vld [vmem:[#allocation3 + $0xb0] sm:$0xff] }
 0x321   : > { %1938 = vst.msk [vmem:[#allocation3 + $0xc8] sm:$0xff] %vm1912_vm11, %v1867_v7 }
 0x322   : > { %v1865_v1 = vpop.permute.xlu2 %1864  ;;  %v1966_v55 = vld [vmem:[#allocation3 + $0xa8] sm:$0xff] }
 0x323   : > { %v1962_v14 = vld [vmem:[#allocation3 + $0x88] sm:$0xff]  ;;  %v1857_v12 = vpop.permute.xlu1 %1856  ;;  %1937 = vst.msk [vmem:[#allocation3 + $0xc0] sm:$0xff] %vm1912_vm11, %v1865_v1 }
 0x324   : > { %4285 = vmatmul.msk.f32.gmra.mxu0 %vm1986_vm12, %v1952_v19  ;;  %4295 = vmatmul.msk.f32.gmra.mxu2 %vm1986_vm12, %v1962_v14  ;;  %1933 = vst.msk [vmem:[#allocation3 + $0xa0] sm:$0xff] %vm1912_vm11, %v1857_v12 }
 0x328   : > { %v1873_v18 = vpop.permute.xlu0 %1872  ;;  %v1970_v33 = vld [vmem:[#allocation3 + $0xc8] sm:$0xff] }
 0x329   : > { %1941 = vst.msk [vmem:[#allocation3 + $0xe0] sm:$0xff] %vm1912_vm11, %v1873_v18 }
 0x32a   : > { %v1871_v21 = vpop.permute.xlu2 %1870  ;;  %v1969_v58 = vld [vmem:[#allocation3 + $0xc0] sm:$0xff] }
 0x32b   : > { %v1863_v6 = vpop.permute.xlu1 %1862  ;;  %v1965_v22 = vld [vmem:[#allocation3 + $0xa0] sm:$0xff]  ;;  %1940 = vst.msk [vmem:[#allocation3 + $0xd8] sm:$0xff] %vm1912_vm11, %v1871_v21 }
 0x32c   : > { %4286 = vmatmul.msk.f32.gmra.mxu0 %vm1986_vm12, %v1953_v41  ;;  %4296 = vmatmul.msk.f32.gmra.mxu2 %vm1986_vm12, %v1963_v10  ;;  %1936 = vst.msk [vmem:[#allocation3 + $0xb8] sm:$0xff] %vm1912_vm11, %v1863_v6 }
 0x330   : > { %v1973_v35 = vld [vmem:[#allocation3 + $0xe0] sm:$0xff] }
 0x332   : > { %v1972_v44 = vld [vmem:[#allocation3 + $0xd8] sm:$0xff] }
 0x333   : > { %v1869_v20 = vpop.permute.xlu1 %1868  ;;  %v1968_v47 = vld [vmem:[#allocation3 + $0xb8] sm:$0xff] }
 0x334   : > { %4287 = vmatmul.msk.f32.gmra.mxu0 %vm1986_vm12, %v1954_v15  ;;  %4297 = vmatmul.msk.f32.gmra.mxu2 %vm1986_vm12, %v1964_v8  ;;  %1939 = vst.msk [vmem:[#allocation3 + $0xd0] sm:$0xff] %vm1912_vm11, %v1869_v20 }
 0x33b   : > { %v1875_v26 = vpop.permute.xlu1 %1874  ;;  %v1971_v39 = vld [vmem:[#allocation3 + $0xd0] sm:$0xff] }
 0x33c   : > { %4288 = vmatmul.msk.f32.gmra.mxu0 %vm1986_vm12, %v1955_v59  ;;  %4298 = vmatmul.msk.f32.gmra.mxu2 %vm1986_vm12, %v1965_v22  ;;  %1942 = vst.msk [vmem:[#allocation3 + $0xe8] sm:$0xff] %vm1912_vm11, %v1875_v26 }
 0x343   : > { %v1974_v54 = vld [vmem:[#allocation3 + $0xe8] sm:$0xff] }
 0x344   : > { %4289 = vmatmul.msk.f32.gmra.mxu0 %vm1986_vm12, %v1956_v17  ;;  %4299 = vmatmul.msk.f32.gmra.mxu2 %vm1986_vm12, %v1966_v55 }
 0x34c   : > { %4290 = vmatmul.msk.f32.gmra.mxu0 %vm1986_vm12, %v1957_v57  ;;  %4300 = vmatmul.msk.f32.gmra.mxu2 %vm1986_vm12, %v1967_v28 }
 0x354   : > { %4291 = vmatmul.msk.f32.gmra.mxu0 %vm1986_vm12, %v1958_v34  ;;  %4301 = vmatmul.msk.f32.gmra.mxu2 %vm1986_vm12, %v1968_v47 }
 0x35c   : > { %4292 = vmatmul.msk.f32.gmra.mxu0 %vm1986_vm12, %v1959_v0  ;;  %4302 = vmatmul.msk.f32.gmra.mxu2 %vm1986_vm12, %v1969_v58  ;;  %v1877_v0 = vpop.permute.xlu2 %1876 }
 0x35d   : > { %1943 = vst.msk [vmem:[#allocation3 + $0xf0] sm:$0xff] %vm1912_vm11, %v1877_v0 }
 0x364   : > { %4293 = vmatmul.msk.f32.gmra.mxu0 %vm1986_vm12, %v1960_v40  ;;  %4303 = vmatmul.msk.f32.gmra.mxu2 %vm1986_vm12, %v1970_v33 }
 0x368   : > { %v2104_v4 = vpop.f32.mrf.mxu0 }
 0x369   : > { %v2105_v13 = vadd.f32 %v5675_v32, %v2104_v4 }
 0x36b   : > { %v2200_v46 = vmax.f32 %v2105_v13, 0.0 }
 0x36c   : > { %4304 = vmatmul.msk.f32.gmra.mxu2 %vm1986_vm12, %v1971_v39 }
 0x36d   : > { %2232 = vst.msk [vmem:[#allocation2 + $0x19] sm:$0xff] %vm257_vm0, %v2200_v46 }
 0x370   : > { %v2107_v38 = vpop.f32.mrf.mxu0 }
 0x371   : > { %v2108_v45 = vadd.f32 %v5675_v32, %v2107_v38 }
 0x373   : > { %v2201_v48 = vmax.f32 %v2108_v45, 0.0 }
 0x374   : > { %4305 = vmatmul.msk.f32.gmra.mxu2 %vm1986_vm12, %v1972_v44  ;;  %v5682_v52 = vld [vmem:[#allocation2 + $0x19] sm:$0xff] }
 0x375   : > { %v5684_v43 = vld [vmem:[#allocation2 + $0x18] sm:$0xff]  ;;  %2233 = vst.msk [vmem:[#allocation2 + $0x21] sm:$0xff] %vm257_vm0, %v2201_v48  ;;  %2396 = vrot.lane.b32.xlu0 %v5682_v52, %s4385_s24 }
 0x376   : > { %2298 = vst.msk [vmem:[#allocation3 + $0x10] sm:$0xff] %vm257_vm0, %v5684_v43 }
 0x379   : > { %v2110_v51 = vpop.f32.mrf.mxu0 }
 0x37a   : > { %v2111_v63 = vadd.f32 %v5675_v32, %v2110_v51 }
 0x37c   : > { %v2202_v37 = vmax.f32 %v2111_v63, 0.0  ;;  %4306 = vmatmul.msk.f32.gmra.mxu2 %vm1986_vm12, %v1973_v35  ;;  %v5693_v30 = vld [vmem:[#allocation2 + $0x21] sm:$0xff] }
 0x37d   : > { %v5695_v50 = vld [vmem:[#allocation2 + $0x20] sm:$0xff]  ;;  %2398 = vrot.lane.b32.xlu1 %v5693_v30, %s4385_s24  ;;  %v2265_v35 = vld [vmem:[#allocation2 + $0x8] sm:$0xff] }
 0x37e   : > { %2299 = vst.msk [vmem:[#allocation3 + $0x18] sm:$0xff] %vm257_vm0, %v5695_v50 }
 0x37f   : > { %2234 = vst.msk [vmem:[#allocation2 + $0x31] sm:$0xff] %vm257_vm0, %v2202_v37 }
 0x380   : > { %2297 = vst.msk [vmem:[#allocation3 + $0x8] sm:$0xff] %vm257_vm0, %v2265_v35 }
 0x381   : > { %v2113_v29 = vpop.f32.mrf.mxu0 }
 0x382   : > { %v2114_v31 = vadd.f32 %v5675_v32, %v2113_v29  ;;  %v2395_v29 = vpop.permute.xlu2 %2394 }
 0x383   : > { %2489 = vst.msk [vmem:[#allocation3 + $0x8] sm:$0xff] %vm560_vm3, %v2395_v29 }
 0x384   : > { %v2203_v60 = vmax.f32 %v2114_v31, 0.0  ;;  %4307 = vmatmul.msk.f32.gmra.mxu2 %vm1986_vm12, %v1974_v54 }
 0x386   : > { %v5704_v23 = vld [vmem:[#allocation2 + $0x31] sm:$0xff]  ;;  %2235 = vst.msk [vmem:[#allocation2 + $0x39] sm:$0xff] %vm257_vm0, %v2203_v60 }
 0x387   : > { %v5706_v3 = vld [vmem:[#allocation2 + $0x30] sm:$0xff]  ;;  %2400 = vrot.lane.b32.xlu2 %v5704_v23, %s4385_s24 }
 0x388   : > { %2300 = vst.msk [vmem:[#allocation3 + $0x20] sm:$0xff] %vm257_vm0, %v5706_v3 }
 0x389   : > { %v2116_v25 = vpop.f32.mrf.mxu0 }
 0x38a   : > { %v2117_v53 = vadd.f32 %v5675_v32, %v2116_v25  ;;  %v1879_v25 = vpop.permute.xlu0 %1878 }
 0x38b   : > { %1944 = vst.msk [vmem:[#allocation3 + $0xf8] sm:$0xff] %vm1912_vm11, %v1879_v25 }
 0x38c   : > { %v2204_v16 = vmax.f32 %v2117_v53, 0.0 }
 0x38d   : > { %v5714_v56 = vld [vmem:[#allocation2 + $0x39] sm:$0xff] }
 0x38e   : > { %v5716_v42 = vld [vmem:[#allocation2 + $0x38] sm:$0xff]  ;;  %2236 = vst.msk [vmem:[#allocation2 + $0x49] sm:$0xff] %vm257_vm0, %v2204_v16  ;;  %2402 = vrot.lane.b32.xlu0 %v5714_v56, %s4385_s24 }
 0x38f   : > { %2301 = vst.msk [vmem:[#allocation3 + $0x28] sm:$0xff] %vm257_vm0, %v5716_v42 }
 0x391   : > { %v2119_v61 = vpop.f32.mrf.mxu0 }
 0x392   : > { %v2120_v11 = vadd.f32 %v5675_v32, %v2119_v61 }
 0x394   : > { %v2205_v9 = vmax.f32 %v2120_v11, 0.0  ;;  %v2152_v10 = vpop.f32.mrf.mxu2 }
 0x395   : > { %v5724_v36 = vld [vmem:[#allocation2 + $0x49] sm:$0xff]  ;;  %v2153_v41 = vadd.f32 %v5675_v32, %v2152_v10 }
 0x396   : > { %v5726_v19 = vld [vmem:[#allocation2 + $0x48] sm:$0xff]  ;;  %2237 = vst.msk [vmem:[#allocation2 + $0x51] sm:$0xff] %vm257_vm0, %v2205_v9  ;;  %2404 = vrot.lane.b32.xlu1 %v5724_v36, %s4385_s24 }
 0x397   : > { %2302 = vst.msk [vmem:[#allocation3 + $0x30] sm:$0xff] %vm257_vm0, %v5726_v19  ;;  %v2216_v8 = vmax.f32 %v2153_v41, 0.0 }
 0x399   : > { %v2122_v14 = vpop.f32.mrf.mxu0  ;;  %2248 = vst.msk [vmem:[#allocation2 + $0xd9] sm:$0xff] %vm257_vm0, %v2216_v8 }
 0x39a   : > { %v2123_v12 = vadd.f32 %v5675_v32, %v2122_v14 }
 0x39c   : > { %v2206_v6 = vmax.f32 %v2123_v12, 0.0 }
 0x39d   : > { %v5735_v1 = vld [vmem:[#allocation2 + $0x51] sm:$0xff] }
 0x39e   : > { %v5737_v15 = vld [vmem:[#allocation2 + $0x50] sm:$0xff]  ;;  %2238 = vst.msk [vmem:[#allocation2 + $0x61] sm:$0xff] %vm257_vm0, %v2206_v6  ;;  %2406 = vrot.lane.b32.xlu2 %v5735_v1, %s4385_s24 }
 0x39f   : > { %2303 = vst.msk [vmem:[#allocation3 + $0x38] sm:$0xff] %vm257_vm0, %v5737_v15 }
 0x3a0   : > { %v5753_v17 = vld [vmem:[#allocation2 + $0xd8] sm:$0xff] }
 0x3a1   : > { %v2125_v7 = vpop.f32.mrf.mxu0  ;;  %2314 = vst.msk [vmem:[#allocation3 + $0x90] sm:$0xff] %vm257_vm0, %v5753_v17 }
 0x3a2   : > { %v2126_v22 = vadd.f32 %v5675_v32, %v2125_v7 }
 0x3a4   : > { %v2207_v59 = vmax.f32 %v2126_v22, 0.0 }
 0x3a5   : > { %v5746_v20 = vld [vmem:[#allocation2 + $0x61] sm:$0xff] }
 0x3a6   : > { %v5748_v55 = vld [vmem:[#allocation2 + $0x60] sm:$0xff]  ;;  %2239 = vst.msk [vmem:[#allocation2 + $0x69] sm:$0xff] %vm257_vm0, %v2207_v59  ;;  %2408 = vrot.lane.b32.xlu0 %v5746_v20, %s4385_s24 }
 0x3a7   : > { %v2155_v28 = vpop.f32.mrf.mxu2  ;;  %2304 = vst.msk [vmem:[#allocation3 + $0x40] sm:$0xff] %vm257_vm0, %v5748_v55  ;;  %v2264_v59 = vld [vmem:[#allocation2] sm:$0xff] }
 0x3a8   : > { %v2156_v57 = vadd.f32 %v5675_v32, %v2155_v28  ;;  %2296 = vst.msk [vmem:[#allocation3] sm:$0xff] %vm257_vm0, %v2264_v59 }
 0x3a9   : > { %v2128_v21 = vpop.f32.mrf.mxu0 }
 0x3aa   : > { %v2217_v2 = vmax.f32 %v2156_v57, 0.0  ;;  %v2129_v47 = vadd.f32 %v5675_v32, %v2128_v21  ;;  %v2393_v21 = vpop.permute.xlu1 %2392 }
 0x3ab   : > { %2488 = vst.msk [vmem:[#allocation3] sm:$0xff] %vm560_vm3, %v2393_v21 }
 0x3ac   : > { %2249 = vst.msk [vmem:[#allocation2 + $0xe1] sm:$0xff] %vm257_vm0, %v2217_v2  ;;  %v2208_v34 = vmax.f32 %v2129_v47, 0.0 }
 0x3ad   : > { %v5762_v18 = vld [vmem:[#allocation2 + $0x69] sm:$0xff] }
 0x3ae   : > { %v5764_v62 = vld [vmem:[#allocation2 + $0x68] sm:$0xff]  ;;  %2240 = vst.msk [vmem:[#allocation2 + $0x79] sm:$0xff] %vm257_vm0, %v2208_v34  ;;  %2410 = vrot.lane.b32.xlu1 %v5762_v18, %s4385_s24 }
 0x3af   : > { %v2158_v27 = vpop.f32.mrf.mxu2  ;;  %2305 = vst.msk [vmem:[#allocation3 + $0x48] sm:$0xff] %vm257_vm0, %v5764_v62 }
 0x3b0   : > { %v2159_v58 = vadd.f32 %v5675_v32, %v2158_v27 }
 0x3b1   : > { %v2131_v26 = vpop.f32.mrf.mxu0 }
 0x3b2   : > { %v2218_v49 = vmax.f32 %v2159_v58, 0.0  ;;  %v2132_v33 = vadd.f32 %v5675_v32, %v2131_v26 }
 0x3b3   : > { %v5775_v4 = vld [vmem:[#allocation2 + $0xe0] sm:$0xff] }
 0x3b4   : > { %2250 = vst.msk [vmem:[#allocation2 + $0xf1] sm:$0xff] %vm257_vm0, %v2218_v49  ;;  %v2209_v40 = vmax.f32 %v2132_v33, 0.0 }
 0x3b5   : > { %v5777_v13 = vld [vmem:[#allocation2 + $0x79] sm:$0xff]  ;;  %2315 = vst.msk [vmem:[#allocation3 + $0x98] sm:$0xff] %vm257_vm0, %v5775_v4 }
 0x3b6   : > { %v5779_v39 = vld [vmem:[#allocation2 + $0x78] sm:$0xff]  ;;  %2241 = vst.msk [vmem:[#allocation2 + $0x81] sm:$0xff] %vm257_vm0, %v2209_v40  ;;  %2412 = vrot.lane.b32.xlu2 %v5777_v13, %s4385_s24 }
 0x3b7   : > { %v2161_v46 = vpop.f32.mrf.mxu2  ;;  %2306 = vst.msk [vmem:[#allocation3 + $0x50] sm:$0xff] %vm257_vm0, %v5779_v39 }
 0x3b8   : > { %v2162_v38 = vadd.f32 %v5675_v32, %v2161_v46 }
 0x3b9   : > { %v2134_v45 = vpop.f32.mrf.mxu0 }
 0x3ba   : > { %v2219_v44 = vmax.f32 %v2162_v38, 0.0  ;;  %v2135_v48 = vadd.f32 %v5675_v32, %v2134_v45 }
 0x3bb   : > { %v5800_v31 = vld [vmem:[#allocation2 + $0xf0] sm:$0xff] }
 0x3bc   : > { %2251 = vst.msk [vmem:[#allocation2 + $0xf9] sm:$0xff] %vm257_vm0, %v2219_v44  ;;  %v2210_v51 = vmax.f32 %v2135_v48, 0.0 }
 0x3bd   : > { %v5791_v63 = vld [vmem:[#allocation2 + $0x81] sm:$0xff]  ;;  %2316 = vst.msk [vmem:[#allocation3 + $0xa0] sm:$0xff] %vm257_vm0, %v5800_v31 }
 0x3be   : > { %v5794_v37 = vld [vmem:[#allocation2 + $0x80] sm:$0xff]  ;;  %2242 = vst.msk [vmem:[#allocation2 + $0x91] sm:$0xff] %vm257_vm0, %v2210_v51  ;;  %2414 = vrot.lane.b32.xlu0 %v5791_v63, %s4385_s24 }
 0x3bf   : > { %v2164_v54 = vpop.f32.mrf.mxu2  ;;  %2307 = vst.msk [vmem:[#allocation3 + $0x58] sm:$0xff] %vm257_vm0, %v5794_v37 }
 0x3c0   : > { %v2165_v60 = vadd.f32 %v5675_v32, %v2164_v54 }
 0x3c1   : > { %v2137_v53 = vpop.f32.mrf.mxu0 }
 0x3c2   : > { %v2220_v16 = vmax.f32 %v2165_v60, 0.0  ;;  %v2138_v61 = vadd.f32 %v5675_v32, %v2137_v53 }
 0x3c3   : > { %v5810_v9 = vld [vmem:[#allocation2 + $0xf8] sm:$0xff] }
 0x3c4   : > { %2252 = vst.msk [vmem:[#allocation2 + $0x109] sm:$0xff] %vm257_vm0, %v2220_v16  ;;  %v2211_v11 = vmax.f32 %v2138_v61, 0.0 }
 0x3c5   : > { %v5812_v14 = vld [vmem:[#allocation2 + $0x91] sm:$0xff]  ;;  %2317 = vst.msk [vmem:[#allocation3 + $0xa8] sm:$0xff] %vm257_vm0, %v5810_v9 }
 0x3c6   : > { %v5814_v12 = vld [vmem:[#allocation2 + $0x90] sm:$0xff]  ;;  %2243 = vst.msk [vmem:[#allocation2 + $0x99] sm:$0xff] %vm257_vm0, %v2211_v11  ;;  %2416 = vrot.lane.b32.xlu1 %v5812_v14, %s4385_s24 }
 0x3c7   : > { %v2167_v10 = vpop.f32.mrf.mxu2  ;;  %2308 = vst.msk [vmem:[#allocation3 + $0x60] sm:$0xff] %vm257_vm0, %v5814_v12 }
 0x3c8   : > { %v2168_v41 = vadd.f32 %v5675_v32, %v2167_v10 }
 0x3c9   : > { %v2140_v6 = vpop.f32.mrf.mxu0 }
 0x3ca   : > { %v2221_v8 = vmax.f32 %v2168_v41, 0.0  ;;  %v2141_v7 = vadd.f32 %v5675_v32, %v2140_v6  ;;  %v5879_v6 = vld [vmem:[#allocation2 + $0xd9] sm:$0xff] }
 0x3cb   : > { %v5834_v2 = vld [vmem:[#allocation2 + $0x108] sm:$0xff] }
 0x3cc   : > { %2253 = vst.msk [vmem:[#allocation2 + $0x111] sm:$0xff] %vm257_vm0, %v2221_v8  ;;  %v2212_v22 = vmax.f32 %v2141_v7, 0.0 }
 0x3cd   : > { %v5826_v28 = vld [vmem:[#allocation2 + $0x99] sm:$0xff]  ;;  %2318 = vst.msk [vmem:[#allocation3 + $0xb0] sm:$0xff] %vm257_vm0, %v5834_v2 }
 0x3ce   : > { %v5829_v57 = vld [vmem:[#allocation2 + $0x98] sm:$0xff]  ;;  %2244 = vst.msk [vmem:[#allocation2 + $0xa9] sm:$0xff] %vm257_vm0, %v2212_v22  ;;  %2418 = vrot.lane.b32.xlu2 %v5826_v28, %s4385_s24 }
 0x3cf   : > { %v2170_v47 = vpop.f32.mrf.mxu2  ;;  %2309 = vst.msk [vmem:[#allocation3 + $0x68] sm:$0xff] %vm257_vm0, %v5829_v57 }
 0x3d0   : > { %v2171_v34 = vadd.f32 %v5675_v32, %v2170_v47 }
 0x3d1   : > { %v2143_v27 = vpop.f32.mrf.mxu0 }
 0x3d2   : > { %v2222_v58 = vmax.f32 %v2171_v34, 0.0  ;;  %v2144_v0 = vadd.f32 %v5675_v32, %v2143_v27  ;;  %v5899_v27 = vld [vmem:[#allocation2 + $0xf9] sm:$0xff] }
 0x3d3   : > { %v5844_v49 = vld [vmem:[#allocation2 + $0x110] sm:$0xff] }
 0x3d4   : > { %2254 = vst.msk [vmem:[#allocation2 + $0x121] sm:$0xff] %vm257_vm0, %v2222_v58  ;;  %v2213_v26 = vmax.f32 %v2144_v0, 0.0  ;;  %v5909_v0 = vld [vmem:[#allocation2 + $0xe1] sm:$0xff] }
 0x3d5   : > { %v5846_v33 = vld [vmem:[#allocation2 + $0xa9] sm:$0xff]  ;;  %2319 = vst.msk [vmem:[#allocation3 + $0xb8] sm:$0xff] %vm257_vm0, %v5844_v49 }
 0x3d6   : > { %v5848_v40 = vld [vmem:[#allocation2 + $0xa8] sm:$0xff]  ;;  %2245 = vst.msk [vmem:[#allocation2 + $0xb1] sm:$0xff] %vm257_vm0, %v2213_v26  ;;  %2420 = vrot.lane.b32.xlu0 %v5846_v33, %s4385_s24 }
 0x3d7   : > { %v2173_v46 = vpop.f32.mrf.mxu2  ;;  %2310 = vst.msk [vmem:[#allocation3 + $0x70] sm:$0xff] %vm257_vm0, %v5848_v40 }
 0x3d8   : > { %v2174_v38 = vadd.f32 %v5675_v32, %v2173_v46 }
 0x3d9   : > { %v2146_v45 = vpop.f32.mrf.mxu0 }
 0x3da   : > { %v2223_v44 = vmax.f32 %v2174_v38, 0.0  ;;  %v2147_v48 = vadd.f32 %v5675_v32, %v2146_v45 }
 0x3db   : > { %v5859_v51 = vld [vmem:[#allocation2 + $0x120] sm:$0xff] }
 0x3dc   : > { %2255 = vst.msk [vmem:[#allocation2 + $0x129] sm:$0xff] %vm257_vm0, %v2223_v44  ;;  %v2214_v35 = vmax.f32 %v2147_v48, 0.0  ;;  %v1975_v44 = vld [vmem:[#allocation3 + $0xf0] sm:$0xff] }
 0x3dd   : > { %v5862_v29 = vld [vmem:[#allocation2 + $0xb1] sm:$0xff]  ;;  %2320 = vst.msk [vmem:[#allocation3 + $0xc0] sm:$0xff] %vm257_vm0, %v5859_v51  ;;  %4308 = vmatmul.msk.f32.gmra.mxu2 %vm1986_vm12, %v1975_v44 }
 0x3de   : > { %2246 = vst.msk [vmem:[#allocation2 + $0xc1] sm:$0xff] %vm257_vm0, %v2214_v35  ;;  %2422 = vrot.lane.b32.xlu1 %v5862_v29, %s4385_s24  ;;  %v5869_v54 = vld [vmem:[#allocation2 + $0xb0] sm:$0xff] }
 0x3df   : > { %v2176_v60 = vpop.f32.mrf.mxu2  ;;  %2311 = vst.msk [vmem:[#allocation3 + $0x78] sm:$0xff] %vm257_vm0, %v5869_v54 }
 0x3e0   : > { %v2177_v25 = vadd.f32 %v5675_v32, %v2176_v60  ;;  %v5923_v60 = vld [vmem:[#allocation2 + $0x121] sm:$0xff] }
 0x3e1   : > { %v2401_v53 = vpop.permute.xlu2 %2400  ;;  %v2149_v16 = vpop.f32.mrf.mxu0 }
 0x3e2   : > { %2492 = vst.msk [vmem:[#allocation3 + $0x20] sm:$0xff] %vm560_vm3, %v2401_v53  ;;  %v2224_v61 = vmax.f32 %v2177_v25, 0.0  ;;  %v2150_v11 = vadd.f32 %v5675_v32, %v2149_v16  ;;  %v5925_v25 = vld [vmem:[#allocation2 + $0xf1] sm:$0xff]  ;;  %v5933_v53 = vld [vmem:[#allocation2 + $0x109] sm:$0xff] }
 0x3e3   : > { %v5877_v41 = vld [vmem:[#allocation2 + $0x128] sm:$0xff] }
 0x3e4   : > { %2256 = vst.msk [vmem:[#allocation2 + $0x139] sm:$0xff] %vm257_vm0, %v2224_v61  ;;  %v2215_v10 = vmax.f32 %v2150_v11, 0.0 }
 0x3e5   : > { %v5881_v8 = vld [vmem:[#allocation2 + $0xc1] sm:$0xff]  ;;  %2321 = vst.msk [vmem:[#allocation3 + $0xc8] sm:$0xff] %vm257_vm0, %v5877_v41 }
 0x3e6   : > { %v5883_v7 = vld [vmem:[#allocation2 + $0xc0] sm:$0xff]  ;;  %2247 = vst.msk [vmem:[#allocation2 + $0xc9] sm:$0xff] %vm257_vm0, %v2215_v10  ;;  %2428 = vrot.lane.b32.xlu1 %v5879_v6, %s4385_s24  ;;  %2424 = vrot.lane.b32.xlu2 %v5881_v8, %s4385_s24  ;;  %v1976_v10 = vld [vmem:[#allocation3 + $0xf8] sm:$0xff] }
 0x3e7   : > { %v2179_v22 = vpop.f32.mrf.mxu2  ;;  %v2397_v59 = vpop.permute.xlu0 %2396  ;;  %2312 = vst.msk [vmem:[#allocation3 + $0x80] sm:$0xff] %vm257_vm0, %v5883_v7  ;;  %4309 = vmatmul.msk.f32.gmra.mxu2 %vm1986_vm12, %v1976_v10 }
 0x3e8   : > { %v2180_v21 = vadd.f32 %v5675_v32, %v2179_v22  ;;  %2490 = vst.msk [vmem:[#allocation3 + $0x10] sm:$0xff] %vm560_vm3, %v2397_v59 }
 0x3ea   : > { %v2225_v47 = vmax.f32 %v2180_v21, 0.0 }
 0x3eb   : > { %v5896_v34 = vld [vmem:[#allocation2 + $0x138] sm:$0xff] }
 0x3ec   : > { %2257 = vst.msk [vmem:[#allocation2 + $0x141] sm:$0xff] %vm257_vm0, %v2225_v47  ;;  %v5945_v47 = vld [vmem:[#allocation2 + $0x111] sm:$0xff] }
 0x3ed   : > { %v5901_v58 = vld [vmem:[#allocation2 + $0xc9] sm:$0xff]  ;;  %2322 = vst.msk [vmem:[#allocation3 + $0xd0] sm:$0xff] %vm257_vm0, %v5896_v34 }
 0x3ee   : > { %2434 = vrot.lane.b32.xlu1 %v5899_v27, %s4385_s24  ;;  %2426 = vrot.lane.b32.xlu0 %v5901_v58, %s4385_s24  ;;  %v5911_v26 = vld [vmem:[#allocation2 + $0xc8] sm:$0xff] }
 0x3ef   : > { %2430 = vrot.lane.b32.xlu2 %v5909_v0, %s4385_s24  ;;  %v2182_v46 = vpop.f32.mrf.mxu2  ;;  %v2399_v38 = vpop.permute.xlu1 %2398  ;;  %2313 = vst.msk [vmem:[#allocation3 + $0x88] sm:$0xff] %vm257_vm0, %v5911_v26 }
 0x3f0   : > { %v2183_v45 = vadd.f32 %v5675_v32, %v2182_v46  ;;  %2491 = vst.msk [vmem:[#allocation3 + $0x18] sm:$0xff] %vm560_vm3, %v2399_v38  ;;  %v5953_v46 = vld [vmem:[#allocation2 + $0x129] sm:$0xff] }
 0x3f2   : > { %v2226_v48 = vmax.f32 %v2183_v45, 0.0 }
 0x3f3   : > { %v5921_v35 = vld [vmem:[#allocation2 + $0x140] sm:$0xff] }
 0x3f4   : > { %2258 = vst.msk [vmem:[#allocation2 + $0x151] sm:$0xff] %vm257_vm0, %v2226_v48  ;;  %v5943_v21 = vld [vmem:[#allocation2 + $0x141] sm:$0xff] }
 0x3f5   : > { %2323 = vst.msk [vmem:[#allocation3 + $0xd8] sm:$0xff] %vm257_vm0, %v5921_v35 }
 0x3f6   : > { %2440 = vrot.lane.b32.xlu1 %v5923_v60, %s4385_s24  ;;  %2432 = vrot.lane.b32.xlu0 %v5925_v25, %s4385_s24  ;;  %7037 = vst [vmem:[#allocation41_spill] sm:$0xff] %v5943_v21 }
 0x3f7   : > { %2436 = vrot.lane.b32.xlu2 %v5933_v53, %s4385_s24  ;;  %v2185_v16 = vpop.f32.mrf.mxu2 }
 0x3f8   : > { %v2186_v61 = vadd.f32 %v5675_v32, %v2185_v16  ;;  %v2407_v11 = vpop.permute.xlu2 %2406 }
 0x3f9   : > { %2495 = vst.msk [vmem:[#allocation3 + $0x38] sm:$0xff] %vm560_vm3, %v2407_v11 }
 0x3fa   : > { %v2227_v22 = vmax.f32 %v2186_v61, 0.0  ;;  %v5962_v61 = vld [vmem:[#allocation2 + $0x139] sm:$0xff] }
 0x3fb   : > { %v5940_v59 = vld [vmem:[#allocation2 + $0x150] sm:$0xff] }
 0x3fc   : > { %2259 = vst.msk [vmem:[#allocation2 + $0x159] sm:$0xff] %vm257_vm0, %v2227_v22  ;;  %v5968_v11 = vld [vmem:[#allocation2 + $0x151] sm:$0xff] }
 0x3fd   : > { %2324 = vst.msk [vmem:[#allocation3 + $0xe0] sm:$0xff] %vm257_vm0, %v5940_v59 }
 0x3fe   : > { %2446 = vrot.lane.b32.xlu1 %v5943_v21, %s4385_s24  ;;  %2438 = vrot.lane.b32.xlu0 %v5945_v47, %s4385_s24  ;;  %7038 = vst [vmem:[#allocation31_spill] sm:$0xff] %v5968_v11  ;;  %v6080_v21 = vld [vmem:[#allocation2 + $0xf2] sm:$0xff] }
 0x3ff   : > { %2442 = vrot.lane.b32.xlu2 %v5953_v46, %s4385_s24  ;;  %v2188_v38 = vpop.f32.mrf.mxu2  ;;  %7061 = vst [vmem:[#allocation57_spill] sm:$0xff] %v6080_v21 }
 0x400   : > { %v2189_v45 = vadd.f32 %v5675_v32, %v2188_v38  ;;  %v2403_v44 = vpop.permute.xlu0 %2402 }
 0x401   : > { %2493 = vst.msk [vmem:[#allocation3 + $0x28] sm:$0xff] %vm560_vm3, %v2403_v44 }
 0x402   : > { %v2228_v48 = vmax.f32 %v2189_v45, 0.0 }
 0x403   : > { %v5960_v16 = vld [vmem:[#allocation2 + $0x158] sm:$0xff] }
 0x404   : > { %2260 = vst.msk [vmem:[#allocation2 + $0x169] sm:$0xff] %vm257_vm0, %v2228_v48  ;;  %v5981_v24 = vld [vmem:[#allocation2 + $0x159] sm:$0xff] }
 0x405   : > { %2325 = vst.msk [vmem:[#allocation3 + $0xe8] sm:$0xff] %vm257_vm0, %v5960_v16 }
 0x406   : > { %2444 = vrot.lane.b32.xlu0 %v5962_v61, %s4385_s24  ;;  %7040 = vst [vmem:[#allocation35_spill] sm:$0xff] %v5981_v24 }
 0x407   : > { %2448 = vrot.lane.b32.xlu2 %v5968_v11, %s4385_s24  ;;  %v2191_v10 = vpop.f32.mrf.mxu2  ;;  %v6001_v11 = vld [vmem:[#allocation2 + $0x1a] sm:$0xff] }
 0x408   : > { %v2192_v22 = vadd.f32 %v5675_v32, %v2191_v10  ;;  %v2405_v38 = vpop.permute.xlu1 %2404  ;;  %7043 = vst [vmem:[#allocation37_spill] sm:$0xff] %v6001_v11 }
 0x409   : > { %2494 = vst.msk [vmem:[#allocation3 + $0x30] sm:$0xff] %vm560_vm3, %v2405_v38 }
 0x40a   : > { %v2229_v45 = vmax.f32 %v2192_v22, 0.0  ;;  %v2521_v22 = vld [vmem:[#allocation2 + $0xa] sm:$0xff] }
 0x40b   : > { %v5974_v44 = vld [vmem:[#allocation2 + $0x169] sm:$0xff] }
 0x40c   : > { %7039 = vst [vmem:[#allocation44_spill] sm:$0xff] %v5974_v44  ;;  %v5976_v48 = vld [vmem:[#allocation2 + $0x168] sm:$0xff]  ;;  %2452 = vrot.lane.b32.xlu1 %v5974_v44, %s4385_s24 }
 0x40d   : > { %2261 = vst.msk [vmem:[#allocation2 + $0x171] sm:$0xff] %vm257_vm0, %v2229_v45 }
 0x40e   : > { %2326 = vst.msk [vmem:[#allocation3 + $0xf0] sm:$0xff] %vm257_vm0, %v5976_v48  ;;  %2450 = vrot.lane.b32.xlu0 %v5981_v24, %s4385_s24  ;;  %v2549_v24 = vld [vmem:[#allocation2 + $0x15a] sm:$0xff] }
 0x410   : > { %v2413_v10 = vpop.permute.xlu2 %2412 }
 0x411   : > { %2498 = vst.msk [vmem:[#allocation3 + $0x50] sm:$0xff] %vm560_vm3, %v2413_v10  ;;  %v5999_v10 = vld [vmem:[#allocation2 + $0x32] sm:$0xff] }
 0x412   : > { %7042 = vst [vmem:[#allocation47_spill] sm:$0xff] %v5999_v10 }
 0x414   : > { %v5988_v38 = vld [vmem:[#allocation2 + $0x171] sm:$0xff]  ;;  %2586 = vrot.lane.b32.xlu1 %v2521_v22, %s4386_s25  ;;  %v6007_v22 = vld [vmem:[#allocation2 + $0x22] sm:$0xff] }
 0x415   : > { %7041 = vst [vmem:[#allocation36_spill] sm:$0xff] %v5988_v38  ;;  %2454 = vrot.lane.b32.xlu2 %v5988_v38, %s4385_s24  ;;  %v5993_v45 = vld [vmem:[#allocation2 + $0x170] sm:$0xff] }
 0x416   : > { %2327 = vst.msk [vmem:[#allocation3 + $0xf8] sm:$0xff] %vm257_vm0, %v5993_v45  ;;  %2584 = vrot.lane.b32.xlu0 %v2520_v5, %s4386_s25  ;;  %v6012_v5 = vld [vmem:[#allocation2 + $0x52] sm:$0xff] }
 0x417   : > { %7044 = vst [vmem:[#allocation38_spill] sm:$0xff] %v6007_v22 }
 0x418   : > { %v2409_v44 = vpop.permute.xlu0 %2408  ;;  %7045 = vst [vmem:[#allocation50_spill] sm:$0xff] %v6012_v5 }
 0x419   : > { %2496 = vst.msk [vmem:[#allocation3 + $0x40] sm:$0xff] %vm560_vm3, %v2409_v44  ;;  %v6014_v44 = vld [vmem:[#allocation2 + $0x3a] sm:$0xff] }
 0x41a   : > { %7046 = vst [vmem:[#allocation39_spill] sm:$0xff] %v6014_v44 }
 0x41c   : > { %2592 = vrot.lane.b32.xlu1 %v5999_v10, %s4386_s25  ;;  %v6020_v10 = vld [vmem:[#allocation2 + $0x4a] sm:$0xff] }
 0x41d   : > { %2588 = vrot.lane.b32.xlu2 %v6001_v11, %s4386_s25  ;;  %7047 = vst [vmem:[#allocation40_spill] sm:$0xff] %v6020_v10 }
 0x41e   : > { %2590 = vrot.lane.b32.xlu0 %v6007_v22, %s4386_s25  ;;  %v6025_v22 = vld [vmem:[#allocation2 + $0x7a] sm:$0xff] }
 0x41f   : > { %7048 = vst [vmem:[#allocation53_spill] sm:$0xff] %v6025_v22 }
 0x420   : > { %v2411_v38 = vpop.permute.xlu1 %2410 }
 0x421   : > { %2497 = vst.msk [vmem:[#allocation3 + $0x48] sm:$0xff] %vm560_vm3, %v2411_v38  ;;  %v6027_v38 = vld [vmem:[#allocation2 + $0x62] sm:$0xff] }
 0x422   : > { %7049 = vst [vmem:[#allocation42_spill] sm:$0xff] %v6027_v38 }
 0x424   : > { %2598 = vrot.lane.b32.xlu1 %v6012_v5, %s4386_s25  ;;  %v6033_v5 = vld [vmem:[#allocation2 + $0x6a] sm:$0xff] }
 0x425   : > { %2594 = vrot.lane.b32.xlu2 %v6014_v44, %s4386_s25  ;;  %7050 = vst [vmem:[#allocation43_spill] sm:$0xff] %v6033_v5 }
 0x426   : > { %2596 = vrot.lane.b32.xlu0 %v6020_v10, %s4386_s25  ;;  %v6038_v10 = vld [vmem:[#allocation2 + $0x9a] sm:$0xff] }
 0x427   : > { %7051 = vst [vmem:[#allocation56_spill] sm:$0xff] %v6038_v10 }
 0x428   : > { %v2419_v11 = vpop.permute.xlu2 %2418 }
 0x429   : > { %2501 = vst.msk [vmem:[#allocation3 + $0x68] sm:$0xff] %vm560_vm3, %v2419_v11  ;;  %v6040_v11 = vld [vmem:[#allocation2 + $0x82] sm:$0xff] }
 0x42a   : > { %7052 = vst [vmem:[#allocation45_spill] sm:$0xff] %v6040_v11 }
 0x42c   : > { %2604 = vrot.lane.b32.xlu1 %v6025_v22, %s4386_s25  ;;  %v6046_v22 = vld [vmem:[#allocation2 + $0x92] sm:$0xff] }
 0x42d   : > { %2600 = vrot.lane.b32.xlu2 %v6027_v38, %s4386_s25  ;;  %7053 = vst [vmem:[#allocation46_spill] sm:$0xff] %v6046_v22 }
 0x42e   : > { %2602 = vrot.lane.b32.xlu0 %v6033_v5, %s4386_s25  ;;  %v6051_v5 = vld [vmem:[#allocation2 + $0xc2] sm:$0xff] }
 0x42f   : > { %7054 = vst [vmem:[#allocation59_spill] sm:$0xff] %v6051_v5 }
 0x430   : > { %v2415_v44 = vpop.permute.xlu0 %2414 }
 0x431   : > { %2499 = vst.msk [vmem:[#allocation3 + $0x58] sm:$0xff] %vm560_vm3, %v2415_v44  ;;  %v6053_v44 = vld [vmem:[#allocation2 + $0xaa] sm:$0xff] }
 0x432   : > { %7055 = vst [vmem:[#allocation48_spill] sm:$0xff] %v6053_v44 }
 0x434   : > { %2610 = vrot.lane.b32.xlu1 %v6038_v10, %s4386_s25  ;;  %v6059_v10 = vld [vmem:[#allocation2 + $0xb2] sm:$0xff] }
 0x435   : > { %2606 = vrot.lane.b32.xlu2 %v6040_v11, %s4386_s25  ;;  %7056 = vst [vmem:[#allocation49_spill] sm:$0xff] %v6059_v10 }
 0x436   : > { %2608 = vrot.lane.b32.xlu0 %v6046_v22, %s4386_s25  ;;  %v6064_v22 = vld [vmem:[#allocation2 + $0xe2] sm:$0xff] }
 0x437   : > { %7057 = vst [vmem:[#allocation51_spill] sm:$0xff] %v6064_v22 }
 0x438   : > { %v2417_v38 = vpop.permute.xlu1 %2416 }
 0x439   : > { %2500 = vst.msk [vmem:[#allocation3 + $0x60] sm:$0xff] %vm560_vm3, %v2417_v38  ;;  %v6066_v38 = vld [vmem:[#allocation2 + $0xca] sm:$0xff] }
 0x43a   : > { %7058 = vst [vmem:[#allocation52_spill] sm:$0xff] %v6066_v38 }
 0x43c   : > { %2616 = vrot.lane.b32.xlu1 %v6051_v5, %s4386_s25  ;;  %v6072_v5 = vld [vmem:[#allocation2 + $0xda] sm:$0xff] }
 0x43d   : > { %2612 = vrot.lane.b32.xlu2 %v6053_v44, %s4386_s25  ;;  %7059 = vst [vmem:[#allocation54_spill] sm:$0xff] %v6072_v5 }
 0x43e   : > { %2614 = vrot.lane.b32.xlu0 %v6059_v10, %s4386_s25 }
 0x440   : > { %v2425_v11 = vpop.permute.xlu2 %2424 }
 0x441   : > { %2504 = vst.msk [vmem:[#allocation3 + $0x80] sm:$0xff] %vm560_vm3, %v2425_v11  ;;  %v6078_v11 = vld [vmem:[#allocation2 + $0x10a] sm:$0xff] }
 0x442   : > { %7060 = vst [vmem:[#allocation55_spill] sm:$0xff] %v6078_v11 }
 0x444   : > { %2622 = vrot.lane.b32.xlu1 %v6064_v22, %s4386_s25  ;;  %v6086_v22 = vld [vmem:[#allocation2 + $0xfa] sm:$0xff] }
 0x445   : > { %2618 = vrot.lane.b32.xlu2 %v6066_v38, %s4386_s25  ;;  %7062 = vst [vmem:[#allocation58_spill] sm:$0xff] %v6086_v22 }
 0x446   : > { %2620 = vrot.lane.b32.xlu0 %v6072_v5, %s4386_s25  ;;  %v6094_v5 = vld [vmem:[#allocation2 + $0x112] sm:$0xff] }
 0x447   : > { %7064 = vst [vmem:[#allocation61_spill] sm:$0xff] %v6094_v5 }
 0x448   : > { %v2421_v44 = vpop.permute.xlu0 %2420 }
 0x449   : > { %2502 = vst.msk [vmem:[#allocation3 + $0x70] sm:$0xff] %vm560_vm3, %v2421_v44  ;;  %v2431_v10 = vpop.permute.xlu2 %2430 }
 0x44a   : > { %2507 = vst.msk [vmem:[#allocation3 + $0x98] sm:$0xff] %vm560_vm3, %v2431_v10  ;;  %v6092_v10 = vld [vmem:[#allocation2 + $0x12a] sm:$0xff] }
 0x44b   : > { %7063 = vst [vmem:[#allocation60_spill] sm:$0xff] %v6092_v10 }
 0x44c   : > { %2628 = vrot.lane.b32.xlu1 %v6078_v11, %s4386_s25  ;;  %v6100_v11 = vld [vmem:[#allocation2 + $0x122] sm:$0xff] }
 0x44d   : > { %2624 = vrot.lane.b32.xlu2 %v6080_v21, %s4386_s25  ;;  %7065 = vst [vmem:[#allocation62_spill] sm:$0xff] %v6100_v11 }
 0x44e   : > { %2626 = vrot.lane.b32.xlu0 %v6086_v22, %s4386_s25  ;;  %v6106_v22 = vld [vmem:[#allocation2 + $0x13a] sm:$0xff] }
 0x44f   : > { %7066 = vst [vmem:[#allocation65_spill] sm:$0xff] %v6106_v22 }
 0x450   : > { %v2423_v38 = vpop.permute.xlu1 %2422 }
 0x451   : > { %2503 = vst.msk [vmem:[#allocation3 + $0x78] sm:$0xff] %vm560_vm3, %v2423_v38  ;;  %v2437_v44 = vpop.permute.xlu2 %2436 }
 0x452   : > { %2510 = vst.msk [vmem:[#allocation3 + $0xb0] sm:$0xff] %vm560_vm3, %v2437_v44  ;;  %v2548_v44 = vld [vmem:[#allocation2 + $0x152] sm:$0xff] }
 0x454   : > { %2634 = vrot.lane.b32.xlu1 %v6092_v10, %s4386_s25  ;;  %v6111_v10 = vld [vmem:[#allocation2 + $0x142] sm:$0xff] }
 0x455   : > { %2630 = vrot.lane.b32.xlu2 %v6094_v5, %s4386_s25  ;;  %7067 = vst [vmem:[#allocation66_spill] sm:$0xff] %v6111_v10 }
 0x456   : > { %2632 = vrot.lane.b32.xlu0 %v6100_v11, %s4386_s25 }
 0x458   : > { %v2429_v21 = vpop.permute.xlu1 %2428 }
 0x459   : > { %2506 = vst.msk [vmem:[#allocation3 + $0x90] sm:$0xff] %vm560_vm3, %v2429_v21  ;;  %v2443_v38 = vpop.permute.xlu2 %2442 }
 0x45a   : > { %2513 = vst.msk [vmem:[#allocation3 + $0xc8] sm:$0xff] %vm560_vm3, %v2443_v38  ;;  %v2551_v38 = vld [vmem:[#allocation2 + $0x172] sm:$0xff] }
 0x45c   : > { %2640 = vrot.lane.b32.xlu1 %v2548_v44, %s4386_s25  ;;  %v2550_v44 = vld [vmem:[#allocation2 + $0x16a] sm:$0xff] }
 0x45d   : > { %2636 = vrot.lane.b32.xlu2 %v6106_v22, %s4386_s25 }
 0x45e   : > { %2638 = vrot.lane.b32.xlu0 %v6111_v10, %s4386_s25 }
 0x460   : > { %v2435_v5 = vpop.permute.xlu1 %2434  ;;  %v2427_v11 = vpop.permute.xlu0 %2426 }
 0x461   : > { %2509 = vst.msk [vmem:[#allocation3 + $0xa8] sm:$0xff] %vm560_vm3, %v2435_v5  ;;  %v2449_v21 = vpop.permute.xlu2 %2448 }
 0x462   : > { %2505 = vst.msk [vmem:[#allocation3 + $0x88] sm:$0xff] %vm560_vm3, %v2427_v11 }
 0x463   : > { %2516 = vst.msk [vmem:[#allocation3 + $0xe0] sm:$0xff] %vm560_vm3, %v2449_v21 }
 0x464   : > { %2646 = vrot.lane.b32.xlu1 %v2551_v38, %s4386_s25 }
 0x465   : > { %2642 = vrot.lane.b32.xlu2 %v2549_v24, %s4386_s25 }
 0x466   : > { %2644 = vrot.lane.b32.xlu0 %v2550_v44, %s4386_s25 }
 0x468   : > { %v2441_v22 = vpop.permute.xlu1 %2440  ;;  %v2433_v10 = vpop.permute.xlu0 %2432 }
 0x469   : > { %2512 = vst.msk [vmem:[#allocation3 + $0xc0] sm:$0xff] %vm560_vm3, %v2441_v22 }
 0x46a   : > { %2508 = vst.msk [vmem:[#allocation3 + $0xa0] sm:$0xff] %vm560_vm3, %v2433_v10 }
 0x46c   : > { %2780 = vrot.lane.b32.xlu1 %v5706_v3, %s4387_s26 }
 0x46d   : > { %2776 = vrot.lane.b32.xlu2 %v5684_v43, %s4387_s26 }
 0x46e   : > { %2778 = vrot.lane.b32.xlu0 %v5695_v50, %s4387_s26 }
 0x46f   : > { %v2455_v5 = vpop.permute.xlu2 %2454 }
 0x470   : > { %2519 = vst.msk [vmem:[#allocation3 + $0xf8] sm:$0xff] %vm560_vm3, %v2455_v5  ;;  %v2447_v24 = vpop.permute.xlu1 %2446  ;;  %v2439_v11 = vpop.permute.xlu0 %2438 }
 0x471   : > { %2515 = vst.msk [vmem:[#allocation3 + $0xd8] sm:$0xff] %vm560_vm3, %v2447_v24 }
 0x472   : > { %2511 = vst.msk [vmem:[#allocation3 + $0xb8] sm:$0xff] %vm560_vm3, %v2439_v11 }
 0x474   : > { %2786 = vrot.lane.b32.xlu1 %v5737_v15, %s4387_s26  ;;  %v2194_v15 = vpop.f32.mrf.mxu2 }
 0x475   : > { %2782 = vrot.lane.b32.xlu2 %v5716_v42, %s4387_s26  ;;  %v2195_v22 = vadd.f32 %v5675_v32, %v2194_v15 }
 0x476   : > { %2784 = vrot.lane.b32.xlu0 %v5726_v19, %s4387_s26 }
 0x477   : > { %v2589_v43 = vpop.permute.xlu2 %2588 }
 0x478   : > { %2682 = vst.msk [vmem:[#allocation3 + $0x10] sm:$0xff] %vm753_vm4, %v2589_v43  ;;  %v2445_v50 = vpop.permute.xlu0 %2444 }
 0x479   : > { %2514 = vst.msk [vmem:[#allocation3 + $0xd0] sm:$0xff] %vm560_vm3, %v2445_v50 }
 0x47c   : > { %2792 = vrot.lane.b32.xlu1 %v5779_v39, %s4387_s26  ;;  %v2197_v21 = vpop.f32.mrf.mxu2 }
 0x47d   : > { %2788 = vrot.lane.b32.xlu2 %v5748_v55, %s4387_s26  ;;  %v2230_v55 = vmax.f32 %v2195_v22, 0.0  ;;  %v7068_v22 = vld [vmem:[#allocation35_spill] sm:$0xff] }
 0x47e   : > { %v2453_v3 = vpop.permute.xlu1 %2452  ;;  %2790 = vrot.lane.b32.xlu0 %v5764_v62, %s4387_s26 }
 0x47f   : > { %v2595_v42 = vpop.permute.xlu2 %2594  ;;  %2518 = vst.msk [vmem:[#allocation3 + $0xf0] sm:$0xff] %vm560_vm3, %v2453_v3 }
 0x480   : > { %2685 = vst.msk [vmem:[#allocation3 + $0x28] sm:$0xff] %vm753_vm4, %v2595_v42  ;;  %v2451_v19 = vpop.permute.xlu0 %2450 }
 0x481   : > { %2517 = vst.msk [vmem:[#allocation3 + $0xe8] sm:$0xff] %vm560_vm3, %v2451_v19 }
 0x482   : > { %2262 = vst.msk [vmem:[#allocation2 + $0x181] sm:$0xff] %vm257_vm0, %v2230_v55 }
 0x484   : > { %2798 = vrot.lane.b32.xlu1 %v5829_v57, %s4387_s26  ;;  %v2198_v57 = vadd.f32 %v5675_v32, %v2197_v21  ;;  %v7072_v21 = vld [vmem:[#allocation36_spill] sm:$0xff] }
 0x485   : > { %2794 = vrot.lane.b32.xlu2 %v5794_v37, %s4387_s26 }
 0x486   : > { %v2587_v39 = vpop.permute.xlu1 %2586  ;;  %2796 = vrot.lane.b32.xlu0 %v5814_v12, %s4387_s26  ;;  %v2231_v37 = vmax.f32 %v2198_v57, 0.0 }
 0x487   : > { %v2601_v62 = vpop.permute.xlu2 %2600  ;;  %2681 = vst.msk [vmem:[#allocation3 + $0x8] sm:$0xff] %vm753_vm4, %v2587_v39 }
 0x488   : > { %2688 = vst.msk [vmem:[#allocation3 + $0x40] sm:$0xff] %vm753_vm4, %v2601_v62  ;;  %v2585_v10 = vpop.permute.xlu0 %2584 }
 0x489   : > { %2680 = vst.msk [vmem:[#allocation3] sm:$0xff] %vm753_vm4, %v2585_v10  ;;  %v2742_v3 = vld [vmem:[#allocation2 + $0x180] sm:$0xff]  ;;  %v7071_v10 = vld [vmem:[#allocation44_spill] sm:$0xff] }
 0x48a   : > { %2263 = vst.msk [vmem:[#allocation2 + $0x189] sm:$0xff] %vm257_vm0, %v2231_v37  ;;  %v6304_v62 = vld [vmem:[#allocation2 + $0x181] sm:$0xff] }
 0x48c   : > { %2804 = vrot.lane.b32.xlu1 %v5883_v7, %s4387_s26 }
 0x48d   : > { %2800 = vrot.lane.b32.xlu2 %v5848_v40, %s4387_s26 }
 0x48e   : > { %2802 = vrot.lane.b32.xlu0 %v5869_v54, %s4387_s26  ;;  %v2593_v12 = vpop.permute.xlu1 %2592 }
 0x48f   : > { %v2607_v38 = vpop.permute.xlu2 %2606  ;;  %2684 = vst.msk [vmem:[#allocation3 + $0x20] sm:$0xff] %vm753_vm4, %v2593_v12 }
 0x490   : > { %2691 = vst.msk [vmem:[#allocation3 + $0x58] sm:$0xff] %vm753_vm4, %v2607_v38  ;;  %v2591_v44 = vpop.permute.xlu0 %2590 }
 0x491   : > { %2683 = vst.msk [vmem:[#allocation3 + $0x18] sm:$0xff] %vm753_vm4, %v2591_v44  ;;  %v6315_v38 = vld [vmem:[#allocation2 + $0x189] sm:$0xff]  ;;  %v7073_v44 = vld [vmem:[#allocation38_spill] sm:$0xff] }
 0x494   : > { %2810 = vrot.lane.b32.xlu1 %v5775_v4, %s4387_s26 }
 0x495   : > { %2806 = vrot.lane.b32.xlu2 %v5911_v26, %s4387_s26 }
 0x496   : > { %2808 = vrot.lane.b32.xlu0 %v5753_v17, %s4387_s26  ;;  %v2599_v32 = vpop.permute.xlu1 %2598 }
 0x497   : > { %v2613_v40 = vpop.permute.xlu2 %2612  ;;  %2687 = vst.msk [vmem:[#allocation3 + $0x38] sm:$0xff] %vm753_vm4, %v2599_v32  ;;  %v7074_v32 = vld [vmem:[#allocation37_spill] sm:$0xff] }
 0x498   : > { %2694 = vst.msk [vmem:[#allocation3 + $0x70] sm:$0xff] %vm753_vm4, %v2613_v40  ;;  %v2597_v54 = vpop.permute.xlu0 %2596 }
 0x499   : > { %2686 = vst.msk [vmem:[#allocation3 + $0x30] sm:$0xff] %vm753_vm4, %v2597_v54 }
 0x49c   : > { %2816 = vrot.lane.b32.xlu1 %v5834_v2, %s4387_s26 }
 0x49d   : > { %2812 = vrot.lane.b32.xlu2 %v5800_v31, %s4387_s26 }
 0x49e   : > { %2814 = vrot.lane.b32.xlu0 %v5810_v9, %s4387_s26  ;;  %v2605_v4 = vpop.permute.xlu1 %2604 }
 0x49f   : > { %v2619_v17 = vpop.permute.xlu2 %2618  ;;  %2690 = vst.msk [vmem:[#allocation3 + $0x50] sm:$0xff] %vm753_vm4, %v2605_v4 }
 0x4a0   : > { %2697 = vst.msk [vmem:[#allocation3 + $0x88] sm:$0xff] %vm753_vm4, %v2619_v17  ;;  %v2603_v7 = vpop.permute.xlu0 %2602  ;;  %v7075_v17 = vld [vmem:[#allocation40_spill] sm:$0xff] }
 0x4a1   : > { %2689 = vst.msk [vmem:[#allocation3 + $0x48] sm:$0xff] %vm753_vm4, %v2603_v7  ;;  %v7076_v7 = vld [vmem:[#allocation47_spill] sm:$0xff] }
 0x4a4   : > { %2822 = vrot.lane.b32.xlu1 %v5877_v41, %s4387_s26 }
 0x4a5   : > { %2818 = vrot.lane.b32.xlu2 %v5844_v49, %s4387_s26 }
 0x4a6   : > { %2820 = vrot.lane.b32.xlu0 %v5859_v51, %s4387_s26  ;;  %v2611_v26 = vpop.permute.xlu1 %2610 }
 0x4a7   : > { %v2625_v5 = vpop.permute.xlu2 %2624  ;;  %2693 = vst.msk [vmem:[#allocation3 + $0x68] sm:$0xff] %vm753_vm4, %v2611_v26  ;;  %v7077_v26 = vld [vmem:[#allocation39_spill] sm:$0xff] }
 0x4a8   : > { %2700 = vst.msk [vmem:[#allocation3 + $0xa0] sm:$0xff] %vm753_vm4, %v2625_v5  ;;  %v2609_v24 = vpop.permute.xlu0 %2608 }
 0x4a9   : > { %2692 = vst.msk [vmem:[#allocation3 + $0x60] sm:$0xff] %vm753_vm4, %v2609_v24 }
 0x4ac   : > { %2828 = vrot.lane.b32.xlu1 %v5940_v59, %s4387_s26 }
 0x4ad   : > { %2824 = vrot.lane.b32.xlu2 %v5896_v34, %s4387_s26 }
 0x4ae   : > { %2826 = vrot.lane.b32.xlu0 %v5921_v35, %s4387_s26  ;;  %v2617_v41 = vpop.permute.xlu1 %2616 }
 0x4af   : > { %v2631_v11 = vpop.permute.xlu2 %2630  ;;  %2696 = vst.msk [vmem:[#allocation3 + $0x80] sm:$0xff] %vm753_vm4, %v2617_v41 }
 0x4b0   : > { %2703 = vst.msk [vmem:[#allocation3 + $0xb8] sm:$0xff] %vm753_vm4, %v2631_v11  ;;  %v2615_v43 = vpop.permute.xlu0 %2614  ;;  %v7078_v11 = vld [vmem:[#allocation43_spill] sm:$0xff] }
 0x4b1   : > { %2695 = vst.msk [vmem:[#allocation3 + $0x78] sm:$0xff] %vm753_vm4, %v2615_v43  ;;  %v7079_v43 = vld [vmem:[#allocation50_spill] sm:$0xff] }
 0x4b4   : > { %2834 = vrot.lane.b32.xlu1 %v5993_v45, %s4387_s26  ;;  %v2743_v45 = vld [vmem:[#allocation2 + $0x188] sm:$0xff] }
 0x4b5   : > { %2830 = vrot.lane.b32.xlu2 %v5960_v16, %s4387_s26 }
 0x4b6   : > { %2832 = vrot.lane.b32.xlu0 %v5976_v48, %s4387_s26  ;;  %v2623_v59 = vpop.permute.xlu1 %2622 }
 0x4b7   : > { %v2637_v35 = vpop.permute.xlu2 %2636  ;;  %2699 = vst.msk [vmem:[#allocation3 + $0x98] sm:$0xff] %vm753_vm4, %v2623_v59  ;;  %v7080_v59 = vld [vmem:[#allocation42_spill] sm:$0xff] }
 0x4b8   : > { %2706 = vst.msk [vmem:[#allocation3 + $0xd0] sm:$0xff] %vm753_vm4, %v2637_v35  ;;  %v2621_v50 = vpop.permute.xlu0 %2620 }
 0x4b9   : > { %2698 = vst.msk [vmem:[#allocation3 + $0x90] sm:$0xff] %vm753_vm4, %v2621_v50 }
 0x4bc   : > { %2968 = vrot.lane.b32.xlu1 %v5682_v52, %s4388_s27 }
 0x4bd   : > { %2836 = vrot.lane.b32.xlu2 %v2742_v3, %s4387_s26 }
 0x4be   : > { %2838 = vrot.lane.b32.xlu0 %v2743_v45, %s4387_s26  ;;  %v2629_v16 = vpop.permute.xlu1 %2628  ;;  %v7081_v45 = vld [vmem:[#allocation46_spill] sm:$0xff] }
 0x4bf   : > { %v2643_v48 = vpop.permute.xlu2 %2642  ;;  %2702 = vst.msk [vmem:[#allocation3 + $0xb0] sm:$0xff] %vm753_vm4, %v2629_v16  ;;  %v7082_v16 = vld [vmem:[#allocation53_spill] sm:$0xff] }
 0x4c0   : > { %2709 = vst.msk [vmem:[#allocation3 + $0xe8] sm:$0xff] %vm753_vm4, %v2643_v48  ;;  %v2627_v42 = vpop.permute.xlu0 %2626  ;;  %v7083_v48 = vld [vmem:[#allocation45_spill] sm:$0xff] }
 0x4c1   : > { %2701 = vst.msk [vmem:[#allocation3 + $0xa8] sm:$0xff] %vm753_vm4, %v2627_v42 }
 0x4c4   : > { %2974 = vrot.lane.b32.xlu1 %v5714_v56, %s4388_s27 }
 0x4c5   : > { %2970 = vrot.lane.b32.xlu2 %v5693_v30, %s4388_s27 }
 0x4c6   : > { %2972 = vrot.lane.b32.xlu0 %v5704_v23, %s4388_s27  ;;  %v2635_v52 = vpop.permute.xlu1 %2634 }
 0x4c7   : > { %v2777_v19 = vpop.permute.xlu2 %2776  ;;  %2705 = vst.msk [vmem:[#allocation3 + $0xc8] sm:$0xff] %vm753_vm4, %v2635_v52 }
 0x4c8   : > { %2872 = vst.msk [vmem:[#allocation3] sm:$0xff] %vm946_vm5, %v2777_v19  ;;  %v2633_v15 = vpop.permute.xlu0 %2632 }
 0x4c9   : > { %2704 = vst.msk [vmem:[#allocation3 + $0xc0] sm:$0xff] %vm753_vm4, %v2633_v15  ;;  %v7084_v15 = vld [vmem:[#allocation49_spill] sm:$0xff] }
 0x4cc   : > { %2980 = vrot.lane.b32.xlu1 %v5746_v20, %s4388_s27 }
 0x4cd   : > { %2976 = vrot.lane.b32.xlu2 %v5724_v36, %s4388_s27 }
 0x4ce   : > { %2978 = vrot.lane.b32.xlu0 %v5735_v1, %s4388_s27  ;;  %v2641_v30 = vpop.permute.xlu1 %2640 }
 0x4cf   : > { %v2783_v23 = vpop.permute.xlu2 %2782  ;;  %2708 = vst.msk [vmem:[#allocation3 + $0xe0] sm:$0xff] %vm753_vm4, %v2641_v30  ;;  %v7085_v30 = vld [vmem:[#allocation56_spill] sm:$0xff] }
 0x4d0   : > { %2875 = vst.msk [vmem:[#allocation3 + $0x18] sm:$0xff] %vm946_vm5, %v2783_v23  ;;  %v2639_v56 = vpop.permute.xlu0 %2638  ;;  %v7086_v23 = vld [vmem:[#allocation48_spill] sm:$0xff] }
 0x4d1   : > { %2707 = vst.msk [vmem:[#allocation3 + $0xd8] sm:$0xff] %vm753_vm4, %v2639_v56 }
 0x4d4   : > { %2986 = vrot.lane.b32.xlu1 %v5791_v63, %s4388_s27 }
 0x4d5   : > { %2982 = vrot.lane.b32.xlu2 %v5762_v18, %s4388_s27 }
 0x4d6   : > { %2984 = vrot.lane.b32.xlu0 %v5777_v13, %s4388_s27  ;;  %v2647_v36 = vpop.permute.xlu1 %2646 }
 0x4d7   : > { %v2789_v1 = vpop.permute.xlu2 %2788  ;;  %2711 = vst.msk [vmem:[#allocation3 + $0xf8] sm:$0xff] %vm753_vm4, %v2647_v36 }
 0x4d8   : > { %2878 = vst.msk [vmem:[#allocation3 + $0x30] sm:$0xff] %vm946_vm5, %v2789_v1  ;;  %v2645_v20 = vpop.permute.xlu0 %2644 }
 0x4d9   : > { %2710 = vst.msk [vmem:[#allocation3 + $0xf0] sm:$0xff] %vm753_vm4, %v2645_v20  ;;  %v7087_v20 = vld [vmem:[#allocation54_spill] sm:$0xff] }
 0x4dc   : > { %2992 = vrot.lane.b32.xlu1 %v5846_v33, %s4388_s27 }
 0x4dd   : > { %2988 = vrot.lane.b32.xlu2 %v5812_v14, %s4388_s27 }
 0x4de   : > { %2990 = vrot.lane.b32.xlu0 %v5826_v28, %s4388_s27  ;;  %v2781_v18 = vpop.permute.xlu1 %2780 }
 0x4df   : > { %v2795_v13 = vpop.permute.xlu2 %2794  ;;  %2874 = vst.msk [vmem:[#allocation3 + $0x10] sm:$0xff] %vm946_vm5, %v2781_v18  ;;  %v7088_v18 = vld [vmem:[#allocation59_spill] sm:$0xff] }
 0x4e0   : > { %2881 = vst.msk [vmem:[#allocation3 + $0x48] sm:$0xff] %vm946_vm5, %v2795_v13  ;;  %v2779_v63 = vpop.permute.xlu0 %2778  ;;  %v7089_v13 = vld [vmem:[#allocation52_spill] sm:$0xff] }
 0x4e1   : > { %2873 = vst.msk [vmem:[#allocation3 + $0x8] sm:$0xff] %vm946_vm5, %v2779_v63 }
 0x4e4   : > { %2998 = vrot.lane.b32.xlu1 %v5901_v58, %s4388_s27 }
 0x4e5   : > { %2994 = vrot.lane.b32.xlu2 %v5862_v29, %s4388_s27 }
 0x4e6   : > { %2996 = vrot.lane.b32.xlu0 %v5881_v8, %s4388_s27  ;;  %v2787_v14 = vpop.permute.xlu1 %2786 }
 0x4e7   : > { %v2801_v28 = vpop.permute.xlu2 %2800  ;;  %2877 = vst.msk [vmem:[#allocation3 + $0x28] sm:$0xff] %vm946_vm5, %v2787_v14 }
 0x4e8   : > { %2884 = vst.msk [vmem:[#allocation3 + $0x60] sm:$0xff] %vm946_vm5, %v2801_v28  ;;  %v2785_v33 = vpop.permute.xlu0 %2784 }
 0x4e9   : > { %2876 = vst.msk [vmem:[#allocation3 + $0x20] sm:$0xff] %vm946_vm5, %v2785_v33  ;;  %v7090_v33 = vld [vmem:[#allocation58_spill] sm:$0xff] }
 0x4ec   : > { %3004 = vrot.lane.b32.xlu1 %v5925_v25, %s4388_s27 }
 0x4ed   : > { %3000 = vrot.lane.b32.xlu2 %v5879_v6, %s4388_s27 }
 0x4ee   : > { %3002 = vrot.lane.b32.xlu0 %v5909_v0, %s4388_s27  ;;  %v2793_v29 = vpop.permute.xlu1 %2792 }
 0x4ef   : > { %v2807_v8 = vpop.permute.xlu2 %2806  ;;  %2880 = vst.msk [vmem:[#allocation3 + $0x40] sm:$0xff] %vm946_vm5, %v2793_v29  ;;  %v7091_v29 = vld [vmem:[#allocation51_spill] sm:$0xff] }
 0x4f0   : > { %2887 = vst.msk [vmem:[#allocation3 + $0x78] sm:$0xff] %vm946_vm5, %v2807_v8  ;;  %v2791_v58 = vpop.permute.xlu0 %2790  ;;  %v7092_v8 = vld [vmem:[#allocation57_spill] sm:$0xff] }
 0x4f1   : > { %2879 = vst.msk [vmem:[#allocation3 + $0x38] sm:$0xff] %vm946_vm5, %v2791_v58 }
 0x4f4   : > { %3010 = vrot.lane.b32.xlu1 %v5945_v47, %s4388_s27 }
 0x4f5   : > { %3006 = vrot.lane.b32.xlu2 %v5899_v27, %s4388_s27 }
 0x4f6   : > { %3008 = vrot.lane.b32.xlu0 %v5933_v53, %s4388_s27  ;;  %v2799_v6 = vpop.permute.xlu1 %2798 }
 0x4f7   : > { %v2813_v0 = vpop.permute.xlu2 %2812  ;;  %2883 = vst.msk [vmem:[#allocation3 + $0x58] sm:$0xff] %vm946_vm5, %v2799_v6 }
 0x4f8   : > { %2890 = vst.msk [vmem:[#allocation3 + $0x90] sm:$0xff] %vm946_vm5, %v2813_v0  ;;  %v2797_v25 = vpop.permute.xlu0 %2796 }
 0x4f9   : > { %2882 = vst.msk [vmem:[#allocation3 + $0x50] sm:$0xff] %vm946_vm5, %v2797_v25  ;;  %v7093_v25 = vld [vmem:[#allocation62_spill] sm:$0xff] }
 0x4fc   : > { %3016 = vrot.lane.b32.xlu1 %v5962_v61, %s4388_s27  ;;  %v7069_v61 = vld [vmem:[#allocation41_spill] sm:$0xff] }
 0x4fd   : > { %3012 = vrot.lane.b32.xlu2 %v5923_v60, %s4388_s27  ;;  %v7070_v60 = vld [vmem:[#allocation31_spill] sm:$0xff] }
 0x4fe   : > { %3014 = vrot.lane.b32.xlu0 %v5953_v46, %s4388_s27  ;;  %v2805_v27 = vpop.permute.xlu1 %2804 }
 0x4ff   : > { %v2819_v53 = vpop.permute.xlu2 %2818  ;;  %2886 = vst.msk [vmem:[#allocation3 + $0x70] sm:$0xff] %vm946_vm5, %v2805_v27  ;;  %v7094_v27 = vld [vmem:[#allocation55_spill] sm:$0xff] }
 0x500   : > { %2893 = vst.msk [vmem:[#allocation3 + $0xa8] sm:$0xff] %vm946_vm5, %v2819_v53  ;;  %v2803_v47 = vpop.permute.xlu0 %2802  ;;  %v7095_v53 = vld [vmem:[#allocation61_spill] sm:$0xff] }
 0x501   : > { %2885 = vst.msk [vmem:[#allocation3 + $0x68] sm:$0xff] %vm946_vm5, %v2803_v47 }
 0x504   : > { %3022 = vrot.lane.b32.xlu1 %v7068_v22, %s4388_s27 }
 0x505   : > { %3018 = vrot.lane.b32.xlu2 %v7069_v61, %s4388_s27 }
 0x506   : > { %3020 = vrot.lane.b32.xlu0 %v7070_v60, %s4388_s27  ;;  %v2811_v55 = vpop.permute.xlu1 %2810  ;;  %v7096_v60 = vld [vmem:[#allocation66_spill] sm:$0xff] }
 0x507   : > { %v2825_v46 = vpop.permute.xlu2 %2824  ;;  %2889 = vst.msk [vmem:[#allocation3 + $0x88] sm:$0xff] %vm946_vm5, %v2811_v55  ;;  %v7097_v55 = vld [vmem:[#allocation60_spill] sm:$0xff] }
 0x508   : > { %2896 = vst.msk [vmem:[#allocation3 + $0xc0] sm:$0xff] %vm946_vm5, %v2825_v46  ;;  %v2809_v39 = vpop.permute.xlu0 %2808  ;;  %v7098_v46 = vld [vmem:[#allocation65_spill] sm:$0xff] }
 0x509   : > { %2888 = vst.msk [vmem:[#allocation3 + $0x80] sm:$0xff] %vm946_vm5, %v2809_v39 }
 0x50c   : > { %3028 = vrot.lane.b32.xlu1 %v6304_v62, %s4388_s27 }
 0x50d   : > { %3024 = vrot.lane.b32.xlu2 %v7071_v10, %s4388_s27 }
 0x50e   : > { %3026 = vrot.lane.b32.xlu0 %v7072_v21, %s4388_s27  ;;  %v2817_v57 = vpop.permute.xlu1 %2816 }
 0x50f   : > { %v2831_v37 = vpop.permute.xlu2 %2830  ;;  %2892 = vst.msk [vmem:[#allocation3 + $0xa0] sm:$0xff] %vm946_vm5, %v2817_v57  ;;  %v3496_v57 = vld [vmem:[#allocation2 + $0xf1] sm:$0xff] }
 0x510   : > { %2899 = vst.msk [vmem:[#allocation3 + $0xd8] sm:$0xff] %vm946_vm5, %v2831_v37  ;;  %v2815_v12 = vpop.permute.xlu0 %2814 }
 0x511   : > { %2891 = vst.msk [vmem:[#allocation3 + $0x98] sm:$0xff] %vm946_vm5, %v2815_v12 }
 0x514   : > { %3162 = vrot.lane.b32.xlu1 %v7073_v44, %s4389_s28 }
 0x515   : > { %3030 = vrot.lane.b32.xlu2 %v6315_v38, %s4388_s27 }
 0x516   : > { %3160 = vrot.lane.b32.xlu0 %v7074_v32, %s4389_s28  ;;  %v2823_v40 = vpop.permute.xlu1 %2822  ;;  %v3288_v32 = vld [vmem:[#allocation2 + $0x30] sm:$0xff] }
 0x517   : > { %v2837_v54 = vpop.permute.xlu2 %2836  ;;  %2895 = vst.msk [vmem:[#allocation3 + $0xb8] sm:$0xff] %vm946_vm5, %v2823_v40  ;;  %v3480_v40 = vld [vmem:[#allocation2 + $0x31] sm:$0xff] }
 0x518   : > { %2902 = vst.msk [vmem:[#allocation3 + $0xf0] sm:$0xff] %vm946_vm5, %v2837_v54  ;;  %v2821_v4 = vpop.permute.xlu0 %2820 }
 0x519   : > { %2894 = vst.msk [vmem:[#allocation3 + $0xb0] sm:$0xff] %vm946_vm5, %v2821_v4 }
 0x51c   : > { %3168 = vrot.lane.b32.xlu1 %v7075_v17, %s4389_s28  ;;  %v3672_v17 = vld [vmem:[#allocation2 + $0x32] sm:$0xff] }
 0x51d   : > { %3164 = vrot.lane.b32.xlu2 %v7076_v7, %s4389_s28 }
 0x51e   : > { %3166 = vrot.lane.b32.xlu0 %v7077_v26, %s4389_s28  ;;  %v2829_v5 = vpop.permute.xlu1 %2828 }
 0x51f   : > { %v2971_v24 = vpop.permute.xlu2 %2970  ;;  %2898 = vst.msk [vmem:[#allocation3 + $0xd0] sm:$0xff] %vm946_vm5, %v2829_v5 }
 0x520   : > { %3065 = vst.msk [vmem:[#allocation3 + $0x8] sm:$0xff] %vm1139_vm6, %v2971_v24  ;;  %v2827_v41 = vpop.permute.xlu0 %2826  ;;  %v3289_v24 = vld [vmem:[#allocation2 + $0x38] sm:$0xff] }
 0x521   : > { %2897 = vst.msk [vmem:[#allocation3 + $0xc8] sm:$0xff] %vm946_vm5, %v2827_v41  ;;  %v3481_v41 = vld [vmem:[#allocation2 + $0x39] sm:$0xff] }
 0x524   : > { %3174 = vrot.lane.b32.xlu1 %v7078_v11, %s4389_s28 }
 0x525   : > { %3170 = vrot.lane.b32.xlu2 %v7079_v43, %s4389_s28 }
 0x526   : > { %3172 = vrot.lane.b32.xlu0 %v7080_v59, %s4389_s28  ;;  %v2835_v35 = vpop.permute.xlu1 %2834 }
 0x527   : > { %v2977_v50 = vpop.permute.xlu2 %2976  ;;  %2901 = vst.msk [vmem:[#allocation3 + $0xe8] sm:$0xff] %vm946_vm5, %v2835_v35  ;;  %v3673_v35 = vld [vmem:[#allocation2 + $0x3a] sm:$0xff] }
 0x528   : > { %3068 = vst.msk [vmem:[#allocation3 + $0x20] sm:$0xff] %vm1139_vm6, %v2977_v50  ;;  %v2833_v3 = vpop.permute.xlu0 %2832 }
 0x529   : > { %2900 = vst.msk [vmem:[#allocation3 + $0xe0] sm:$0xff] %vm946_vm5, %v2833_v3 }
 0x52c   : > { %3180 = vrot.lane.b32.xlu1 %v7081_v45, %s4389_s28 }
 0x52d   : > { %3176 = vrot.lane.b32.xlu2 %v7082_v16, %s4389_s28  ;;  %v3290_v16 = vld [vmem:[#allocation2 + $0x48] sm:$0xff] }
 0x52e   : > { %3178 = vrot.lane.b32.xlu0 %v7083_v48, %s4389_s28  ;;  %v2969_v42 = vpop.permute.xlu1 %2968  ;;  %v3482_v48 = vld [vmem:[#allocation2 + $0x49] sm:$0xff] }
 0x52f   : > { %v2983_v52 = vpop.permute.xlu2 %2982  ;;  %3064 = vst.msk [vmem:[#allocation3] sm:$0xff] %vm1139_vm6, %v2969_v42 }
 0x530   : > { %3071 = vst.msk [vmem:[#allocation3 + $0x38] sm:$0xff] %vm1139_vm6, %v2983_v52  ;;  %v2839_v19 = vpop.permute.xlu0 %2838 }
 0x531   : > { %2903 = vst.msk [vmem:[#allocation3 + $0xf8] sm:$0xff] %vm946_vm5, %v2839_v19 }
 0x534   : > { %3186 = vrot.lane.b32.xlu1 %v7084_v15, %s4389_s28  ;;  %v3674_v15 = vld [vmem:[#allocation2 + $0x4a] sm:$0xff] }
 0x535   : > { %3182 = vrot.lane.b32.xlu2 %v7085_v30, %s4389_s28 }
 0x536   : > { %3184 = vrot.lane.b32.xlu0 %v7086_v23, %s4389_s28  ;;  %v2975_v56 = vpop.permute.xlu1 %2974 }
 0x537   : > { %v2989_v36 = vpop.permute.xlu2 %2988  ;;  %3067 = vst.msk [vmem:[#allocation3 + $0x18] sm:$0xff] %vm1139_vm6, %v2975_v56 }
 0x538   : > { %3074 = vst.msk [vmem:[#allocation3 + $0x50] sm:$0xff] %vm1139_vm6, %v2989_v36  ;;  %v2973_v1 = vpop.permute.xlu0 %2972  ;;  %v3291_v36 = vld [vmem:[#allocation2 + $0x50] sm:$0xff] }
 0x539   : > { %3066 = vst.msk [vmem:[#allocation3 + $0x10] sm:$0xff] %vm1139_vm6, %v2973_v1  ;;  %v3483_v1 = vld [vmem:[#allocation2 + $0x51] sm:$0xff] }
 0x53c   : > { %3192 = vrot.lane.b32.xlu1 %v7087_v20, %s4389_s28 }
 0x53d   : > { %3188 = vrot.lane.b32.xlu2 %v7088_v18, %s4389_s28 }
 0x53e   : > { %3190 = vrot.lane.b32.xlu0 %v7089_v13, %s4389_s28  ;;  %v2981_v63 = vpop.permute.xlu1 %2980 }
 0x53f   : > { %v2995_v14 = vpop.permute.xlu2 %2994  ;;  %3070 = vst.msk [vmem:[#allocation3 + $0x30] sm:$0xff] %vm1139_vm6, %v2981_v63  ;;  %v3692_v63 = vld [vmem:[#allocation2 + $0x122] sm:$0xff] }
 0x540   : > { %3077 = vst.msk [vmem:[#allocation3 + $0x68] sm:$0xff] %vm1139_vm6, %v2995_v14  ;;  %v2979_v28 = vpop.permute.xlu0 %2978  ;;  %v3675_v14 = vld [vmem:[#allocation2 + $0x52] sm:$0xff] }
 0x541   : > { %3069 = vst.msk [vmem:[#allocation3 + $0x28] sm:$0xff] %vm1139_vm6, %v2979_v28 }
 0x544   : > { %3198 = vrot.lane.b32.xlu1 %v7090_v33, %s4389_s28 }
 0x545   : > { %3194 = vrot.lane.b32.xlu2 %v7091_v29, %s4389_s28 }
 0x546   : > { %3196 = vrot.lane.b32.xlu0 %v7092_v8, %s4389_s28  ;;  %v2987_v58 = vpop.permute.xlu1 %2986 }
 0x547   : > { %v3001_v6 = vpop.permute.xlu2 %3000  ;;  %3073 = vst.msk [vmem:[#allocation3 + $0x48] sm:$0xff] %vm1139_vm6, %v2987_v58  ;;  %v3292_v58 = vld [vmem:[#allocation2 + $0x60] sm:$0xff] }
 0x548   : > { %3080 = vst.msk [vmem:[#allocation3 + $0x80] sm:$0xff] %vm1139_vm6, %v3001_v6  ;;  %v2985_v0 = vpop.permute.xlu0 %2984  ;;  %v3484_v6 = vld [vmem:[#allocation2 + $0x61] sm:$0xff] }
 0x549   : > { %3072 = vst.msk [vmem:[#allocation3 + $0x40] sm:$0xff] %vm1139_vm6, %v2985_v0 }
 0x54c   : > { %3204 = vrot.lane.b32.xlu1 %v7093_v25, %s4389_s28 }
 0x54d   : > { %3200 = vrot.lane.b32.xlu2 %v7094_v27, %s4389_s28 }
 0x54e   : > { %3202 = vrot.lane.b32.xlu0 %v7095_v53, %s4389_s28  ;;  %v2993_v47 = vpop.permute.xlu1 %2992 }
 0x54f   : > { %v3007_v22 = vpop.permute.xlu2 %3006  ;;  %3076 = vst.msk [vmem:[#allocation3 + $0x60] sm:$0xff] %vm1139_vm6, %v2993_v47  ;;  %v3676_v47 = vld [vmem:[#allocation2 + $0x62] sm:$0xff] }
 0x550   : > { %3083 = vst.msk [vmem:[#allocation3 + $0x98] sm:$0xff] %vm1139_vm6, %v3007_v22  ;;  %v2991_v61 = vpop.permute.xlu0 %2990  ;;  %v3501_v22 = vld [vmem:[#allocation2 + $0x129] sm:$0xff] }
 0x551   : > { %3075 = vst.msk [vmem:[#allocation3 + $0x58] sm:$0xff] %vm1139_vm6, %v2991_v61 }
 0x554   : > { %3210 = vrot.lane.b32.xlu1 %v7096_v60, %s4389_s28 }
 0x555   : > { %3206 = vrot.lane.b32.xlu2 %v7097_v55, %s4389_s28 }
 0x556   : > { %3208 = vrot.lane.b32.xlu0 %v7098_v46, %s4389_s28  ;;  %v2999_v39 = vpop.permute.xlu1 %2998  ;;  %v3900_v46 = vld [vmem:[%s6848_s3 + $0x20] sm:$0xf] }
 0x557   : > { %v3013_v10 = vpop.permute.xlu2 %3012  ;;  %3079 = vst.msk [vmem:[#allocation3 + $0x78] sm:$0xff] %vm1139_vm6, %v2999_v39  ;;  %v3899_v39 = vld [vmem:[%s6848_s3 + $0x18] sm:$0xff]  ;;  %4352 = vmatpush.msk.msra.mxu3 %vm2083_vm10, %v3900_v46  ;;  %4310 = vmatpush.msk.msra.mxu1 %vm2083_vm10, %v3900_v46  ;;  %v3506_v46 = vld [vmem:[#allocation2 + $0x169] sm:$0xff] }
 0x558   : > { %3086 = vst.msk [vmem:[#allocation3 + $0xb0] sm:$0xff] %vm1139_vm6, %v3013_v10  ;;  %v2997_v21 = vpop.permute.xlu0 %2996  ;;  %v3293_v10 = vld [vmem:[#allocation2 + $0x68] sm:$0xff] }
 0x559   : > { %3078 = vst.msk [vmem:[#allocation3 + $0x70] sm:$0xff] %vm1139_vm6, %v2997_v21  ;;  %v3898_v21 = vld [vmem:[%s6848_s3 + $0x10] sm:$0xff]  ;;  %4353 = vmatpush.msra.mxu3 %v3899_v39  ;;  %4016 = vmatpush.msra.mxu1 %v3899_v39  ;;  %v3314_v39 = vld [vmem:[#allocation2 + $0x168] sm:$0xff] }
 0x55b   : > { %4354 = vmatpush.msra.mxu3 %v3898_v21  ;;  %4017 = vmatpush.msra.mxu1 %v3898_v21 }
 0x55c   : > { %3768 = vrot.lane.b32.xlu1 %v7092_v8, %s4392_s6  ;;  %v3309_v8 = vld [vmem:[#allocation2 + $0x128] sm:$0xff] }
 0x55d   : > { %3384 = vrot.lane.b32.xlu2 %v5800_v31, %s4390_s29 }
 0x55e   : > { %3576 = vrot.lane.b32.xlu0 %v3496_v57, %s4391_s30  ;;  %v3005_v37 = vpop.permute.xlu1 %3004  ;;  %v3485_v57 = vld [vmem:[#allocation2 + $0x69] sm:$0xff] }
 0x55f   : > { %v3019_v12 = vpop.permute.xlu2 %3018  ;;  %3082 = vst.msk [vmem:[#allocation3 + $0x90] sm:$0xff] %vm1139_vm6, %v3005_v37 }
 0x560   : > { %3089 = vst.msk [vmem:[#allocation3 + $0xc8] sm:$0xff] %vm1139_vm6, %v3019_v12  ;;  %v3003_v44 = vpop.permute.xlu0 %3002 }
 0x561   : > { %3081 = vst.msk [vmem:[#allocation3 + $0x88] sm:$0xff] %vm1139_vm6, %v3003_v44 }
 0x564   : > { %3386 = vrot.lane.b32.xlu1 %v5810_v9, %s4390_s29  ;;  %v3497_v9 = vld [vmem:[#allocation2 + $0xf9] sm:$0xff] }
 0x565   : > { %3352 = vrot.lane.b32.xlu2 %v3288_v32, %s4390_s29  ;;  %v3896_v32 = vld [vmem:[%s6848_s3] sm:$0xff] }
 0x566   : > { %3544 = vrot.lane.b32.xlu0 %v3480_v40, %s4391_s30  ;;  %v3011_v31 = vpop.permute.xlu1 %3010  ;;  %v3694_v40 = vld [vmem:[#allocation2 + $0x13a] sm:$0xff] }
 0x567   : > { %v3025_v54 = vpop.permute.xlu2 %3024  ;;  %3085 = vst.msk [vmem:[#allocation3 + $0xa8] sm:$0xff] %vm1139_vm6, %v3011_v31  ;;  %v3677_v31 = vld [vmem:[#allocation2 + $0x6a] sm:$0xff] }
 0x568   : > { %3092 = vst.msk [vmem:[#allocation3 + $0xe0] sm:$0xff] %vm1139_vm6, %v3025_v54  ;;  %v3009_v4 = vpop.permute.xlu0 %3008  ;;  %v3502_v54 = vld [vmem:[#allocation2 + $0x139] sm:$0xff] }
 0x569   : > { %3084 = vst.msk [vmem:[#allocation3 + $0xa0] sm:$0xff] %vm1139_vm6, %v3009_v4 }
 0x56c   : > { %3770 = vrot.lane.b32.xlu1 %v7090_v33, %s4392_s6 }
 0x56d   : > { %3736 = vrot.lane.b32.xlu2 %v3672_v17, %s4392_s6 }
 0x56e   : > { %3578 = vrot.lane.b32.xlu0 %v3497_v9, %s4391_s30  ;;  %v3017_v7 = vpop.permute.xlu1 %3016 }
 0x56f   : > { %v3031_v26 = vpop.permute.xlu2 %3030  ;;  %3088 = vst.msk [vmem:[#allocation3 + $0xc0] sm:$0xff] %vm1139_vm6, %v3017_v7  ;;  %v3311_v7 = vld [vmem:[#allocation2 + $0x140] sm:$0xff] }
 0x570   : > { %3095 = vst.msk [vmem:[#allocation3 + $0xf8] sm:$0xff] %vm1139_vm6, %v3031_v26  ;;  %v3015_v5 = vpop.permute.xlu0 %3014  ;;  %v3294_v26 = vld [vmem:[#allocation2 + $0x78] sm:$0xff] }
 0x571   : > { %3087 = vst.msk [vmem:[#allocation3 + $0xb8] sm:$0xff] %vm1139_vm6, %v3015_v5  ;;  %v3486_v5 = vld [vmem:[#allocation2 + $0x79] sm:$0xff] }
 0x574   : > { %3388 = vrot.lane.b32.xlu1 %v5834_v2, %s4390_s29  ;;  %v3498_v2 = vld [vmem:[#allocation2 + $0x109] sm:$0xff] }
 0x575   : > { %3354 = vrot.lane.b32.xlu2 %v3289_v24, %s4390_s29 }
 0x576   : > { %3546 = vrot.lane.b32.xlu0 %v3481_v41, %s4391_s30  ;;  %v3023_v11 = vpop.permute.xlu1 %3022 }
 0x577   : > { %v3165_v43 = vpop.permute.xlu2 %3164  ;;  %3091 = vst.msk [vmem:[#allocation3 + $0xd8] sm:$0xff] %vm1139_vm6, %v3023_v11 }
 0x578   : > { %3258 = vst.msk [vmem:[#allocation3 + $0x10] sm:$0xff] %vm1332_vm7, %v3165_v43  ;;  %v3021_v59 = vpop.permute.xlu0 %3020  ;;  %v3695_v43 = vld [vmem:[#allocation2 + $0x142] sm:$0xff] }
 0x579   : > { %3090 = vst.msk [vmem:[#allocation3 + $0xd0] sm:$0xff] %vm1139_vm6, %v3021_v59  ;;  %v3678_v59 = vld [vmem:[#allocation2 + $0x7a] sm:$0xff] }
 0x57c   : > { %3772 = vrot.lane.b32.xlu1 %v7094_v27, %s4392_s6 }
 0x57d   : > { %3738 = vrot.lane.b32.xlu2 %v3673_v35, %s4392_s6  ;;  %v3503_v35 = vld [vmem:[#allocation2 + $0x141] sm:$0xff] }
 0x57e   : > { %3580 = vrot.lane.b32.xlu0 %v3498_v2, %s4391_s30  ;;  %v3029_v50 = vpop.permute.xlu1 %3028 }
 0x57f   : > { %v3171_v3 = vpop.permute.xlu2 %3170  ;;  %3094 = vst.msk [vmem:[#allocation3 + $0xf0] sm:$0xff] %vm1139_vm6, %v3029_v50 }
 0x580   : > { %3261 = vst.msk [vmem:[#allocation3 + $0x28] sm:$0xff] %vm1332_vm7, %v3171_v3  ;;  %v3027_v45 = vpop.permute.xlu0 %3026 }
 0x581   : > { %3093 = vst.msk [vmem:[#allocation3 + $0xe8] sm:$0xff] %vm1139_vm6, %v3027_v45  ;;  %v3312_v45 = vld [vmem:[#allocation2 + $0x150] sm:$0xff] }
 0x584   : > { %3390 = vrot.lane.b32.xlu1 %v5844_v49, %s4390_s29  ;;  %v3499_v49 = vld [vmem:[#allocation2 + $0x111] sm:$0xff] }
 0x585   : > { %3356 = vrot.lane.b32.xlu2 %v3290_v16, %s4390_s29  ;;  %v3295_v16 = vld [vmem:[#allocation2 + $0x80] sm:$0xff] }
 0x586   : > { %3548 = vrot.lane.b32.xlu0 %v3482_v48, %s4391_s30  ;;  %v3163_v42 = vpop.permute.xlu1 %3162  ;;  %v3487_v48 = vld [vmem:[#allocation2 + $0x81] sm:$0xff] }
 0x587   : > { %v3177_v52 = vpop.permute.xlu2 %3176  ;;  %3257 = vst.msk [vmem:[#allocation3 + $0x8] sm:$0xff] %vm1332_vm7, %v3163_v42 }
 0x588   : > { %3264 = vst.msk [vmem:[#allocation3 + $0x40] sm:$0xff] %vm1332_vm7, %v3177_v52  ;;  %v3161_v19 = vpop.permute.xlu0 %3160 }
 0x589   : > { %3256 = vst.msk [vmem:[#allocation3] sm:$0xff] %vm1332_vm7, %v3161_v19 }
 0x58c   : > { %3774 = vrot.lane.b32.xlu1 %v7095_v53, %s4392_s6  ;;  %v3693_v53 = vld [vmem:[#allocation2 + $0x12a] sm:$0xff] }
 0x58d   : > { %3740 = vrot.lane.b32.xlu2 %v3674_v15, %s4392_s6 }
 0x58e   : > { %3582 = vrot.lane.b32.xlu0 %v3499_v49, %s4391_s30  ;;  %v3169_v30 = vpop.permute.xlu1 %3168  ;;  %v3696_v49 = vld [vmem:[#allocation2 + $0x152] sm:$0xff] }
 0x58f   : > { %v3183_v23 = vpop.permute.xlu2 %3182  ;;  %3260 = vst.msk [vmem:[#allocation3 + $0x20] sm:$0xff] %vm1332_vm7, %v3169_v30  ;;  %v3679_v30 = vld [vmem:[#allocation2 + $0x82] sm:$0xff] }
 0x590   : > { %3267 = vst.msk [vmem:[#allocation3 + $0x58] sm:$0xff] %vm1332_vm7, %v3183_v23  ;;  %v3167_v56 = vpop.permute.xlu0 %3166  ;;  %v3504_v23 = vld [vmem:[#allocation2 + $0x151] sm:$0xff] }
 0x591   : > { %3259 = vst.msk [vmem:[#allocation3 + $0x18] sm:$0xff] %vm1332_vm7, %v3167_v56 }
 0x594   : > { %3392 = vrot.lane.b32.xlu1 %v5859_v51, %s4390_s29  ;;  %v3500_v51 = vld [vmem:[#allocation2 + $0x121] sm:$0xff] }
 0x595   : > { %3358 = vrot.lane.b32.xlu2 %v3291_v36, %s4390_s29 }
 0x596   : > { %3550 = vrot.lane.b32.xlu0 %v3483_v1, %s4391_s30  ;;  %v3175_v20 = vpop.permute.xlu1 %3174 }
 0x597   : > { %v3189_v18 = vpop.permute.xlu2 %3188  ;;  %3263 = vst.msk [vmem:[#allocation3 + $0x38] sm:$0xff] %vm1332_vm7, %v3175_v20 }
 0x598   : > { %3270 = vst.msk [vmem:[#allocation3 + $0x70] sm:$0xff] %vm1332_vm7, %v3189_v18  ;;  %v3173_v13 = vpop.permute.xlu0 %3172  ;;  %v3313_v18 = vld [vmem:[#allocation2 + $0x158] sm:$0xff] }
 0x599   : > { %3262 = vst.msk [vmem:[#allocation3 + $0x30] sm:$0xff] %vm1332_vm7, %v3173_v13  ;;  %v3296_v13 = vld [vmem:[#allocation2 + $0x90] sm:$0xff] }
 0x59c   : > { %3776 = vrot.lane.b32.xlu1 %v3692_v63, %s4392_s6  ;;  %v3488_v63 = vld [vmem:[#allocation2 + $0x91] sm:$0xff] }
 0x59d   : > { %3742 = vrot.lane.b32.xlu2 %v3675_v14, %s4392_s6 }
 0x59e   : > { %3584 = vrot.lane.b32.xlu0 %v3500_v51, %s4391_s30  ;;  %v3181_v28 = vpop.permute.xlu1 %3180 }
 0x59f   : > { %v3195_v33 = vpop.permute.xlu2 %3194  ;;  %3266 = vst.msk [vmem:[#allocation3 + $0x50] sm:$0xff] %vm1332_vm7, %v3181_v28 }
 0x5a0   : > { %3273 = vst.msk [vmem:[#allocation3 + $0x88] sm:$0xff] %vm1332_vm7, %v3195_v33  ;;  %v3179_v29 = vpop.permute.xlu0 %3178 }
 0x5a1   : > { %3265 = vst.msk [vmem:[#allocation3 + $0x48] sm:$0xff] %vm1332_vm7, %v3179_v29  ;;  %v3697_v29 = vld [vmem:[#allocation2 + $0x15a] sm:$0xff] }
 0x5a4   : > { %3394 = vrot.lane.b32.xlu1 %v3309_v8, %s4390_s29  ;;  %v3680_v8 = vld [vmem:[#allocation2 + $0x92] sm:$0xff] }
 0x5a5   : > { %3360 = vrot.lane.b32.xlu2 %v3292_v58, %s4390_s29  ;;  %v3505_v58 = vld [vmem:[#allocation2 + $0x159] sm:$0xff] }
 0x5a6   : > { %3552 = vrot.lane.b32.xlu0 %v3484_v6, %s4391_s30  ;;  %v3187_v0 = vpop.permute.xlu1 %3186 }
 0x5a7   : > { %v3201_v25 = vpop.permute.xlu2 %3200  ;;  %3269 = vst.msk [vmem:[#allocation3 + $0x68] sm:$0xff] %vm1332_vm7, %v3187_v0 }
 0x5a8   : > { %3276 = vst.msk [vmem:[#allocation3 + $0xa0] sm:$0xff] %vm1332_vm7, %v3201_v25  ;;  %v3185_v27 = vpop.permute.xlu0 %3184 }
 0x5a9   : > { %3268 = vst.msk [vmem:[#allocation3 + $0x60] sm:$0xff] %vm1332_vm7, %v3185_v27 }
 0x5ac   : > { %3778 = vrot.lane.b32.xlu1 %v3693_v53, %s4392_s6  ;;  %v3489_v53 = vld [vmem:[#allocation2 + $0x99] sm:$0xff] }
 0x5ad   : > { %3744 = vrot.lane.b32.xlu2 %v3676_v47, %s4392_s6  ;;  %v3297_v47 = vld [vmem:[#allocation2 + $0x98] sm:$0xff] }
 0x5ae   : > { %3586 = vrot.lane.b32.xlu0 %v3501_v22, %s4391_s30  ;;  %v3193_v61 = vpop.permute.xlu1 %3192 }
 0x5af   : > { %v3207_v60 = vpop.permute.xlu2 %3206  ;;  %3272 = vst.msk [vmem:[#allocation3 + $0x80] sm:$0xff] %vm1332_vm7, %v3193_v61 }
 0x5b0   : > { %3279 = vst.msk [vmem:[#allocation3 + $0xb8] sm:$0xff] %vm1332_vm7, %v3207_v60  ;;  %v3191_v55 = vpop.permute.xlu0 %3190 }
 0x5b1   : > { %3271 = vst.msk [vmem:[#allocation3 + $0x78] sm:$0xff] %vm1332_vm7, %v3191_v55 }
 0x5b4   : > { %3396 = vrot.lane.b32.xlu1 %v5896_v34, %s4390_s29  ;;  %v3897_v34 = vld [vmem:[%s6848_s3 + $0x8] sm:$0xff] }
 0x5b5   : > { %3362 = vrot.lane.b32.xlu2 %v3293_v10, %s4390_s29  ;;  %4355 = vmatpush.msra.mxu3 %v3897_v34  ;;  %v3681_v10 = vld [vmem:[#allocation2 + $0x9a] sm:$0xff] }
 0x5b6   : > { %3554 = vrot.lane.b32.xlu0 %v3485_v57, %s4391_s30  ;;  %v3199_v37 = vpop.permute.xlu1 %3198  ;;  %4018 = vmatpush.msra.mxu1 %v3897_v34  ;;  %v3698_v34 = vld [vmem:[#allocation2 + $0x16a] sm:$0xff] }
 0x5b7   : > { %v3385_v12 = vpop.permute.xlu2 %3384  ;;  %3275 = vst.msk [vmem:[#allocation3 + $0x98] sm:$0xff] %vm1332_vm7, %v3199_v37  ;;  %4356 = vmatpush.msra.mxu3 %v3896_v32 }
 0x5b8   : > { %3464 = vst.msk [vmem:[#allocation3 + $0x80] sm:$0xff] %vm1526_vm8, %v3385_v12  ;;  %v3197_v44 = vpop.permute.xlu0 %3196  ;;  %4019 = vmatpush.msra.mxu1 %v3896_v32 }
 0x5b9   : > { %3274 = vst.msk [vmem:[#allocation3 + $0x90] sm:$0xff] %vm1332_vm7, %v3197_v44  ;;  %v3298_v44 = vld [vmem:[#allocation2 + $0xa8] sm:$0xff] }
 0x5bc   : > { %3780 = vrot.lane.b32.xlu1 %v3694_v40, %s4392_s6 }
 0x5bd   : > { %3746 = vrot.lane.b32.xlu2 %v3677_v31, %s4392_s6 }
 0x5be   : > { %3588 = vrot.lane.b32.xlu0 %v3502_v54, %s4391_s30  ;;  %v3205_v4 = vpop.permute.xlu1 %3204 }
 0x5bf   : > { %v3353_v17 = vpop.permute.xlu2 %3352  ;;  %3278 = vst.msk [vmem:[#allocation3 + $0xb0] sm:$0xff] %vm1332_vm7, %v3205_v4  ;;  %v3682_v4 = vld [vmem:[#allocation2 + $0xaa] sm:$0xff] }
 0x5c0   : > { %3448 = vst.msk [vmem:[#allocation3] sm:$0xff] %vm1526_vm8, %v3353_v17  ;;  %v3203_v9 = vpop.permute.xlu0 %3202  ;;  %v3490_v17 = vld [vmem:[#allocation2 + $0xa9] sm:$0xff] }
 0x5c1   : > { %3277 = vst.msk [vmem:[#allocation3 + $0xa8] sm:$0xff] %vm1332_vm7, %v3203_v9  ;;  %v3315_v9 = vld [vmem:[#allocation2 + $0x170] sm:$0xff] }
 0x5c4   : > { %3398 = vrot.lane.b32.xlu1 %v3311_v7, %s4390_s29 }
 0x5c5   : > { %3364 = vrot.lane.b32.xlu2 %v3294_v26, %s4390_s29 }
 0x5c6   : > { %3556 = vrot.lane.b32.xlu0 %v3486_v5, %s4391_s30  ;;  %v3211_v24 = vpop.permute.xlu1 %3210 }
 0x5c7   : > { %v3737_v41 = vpop.permute.xlu2 %3736  ;;  %3281 = vst.msk [vmem:[#allocation3 + $0xc8] sm:$0xff] %vm1332_vm7, %v3211_v24 }
 0x5c8   : > { %v3209_v11 = vpop.permute.xlu0 %3208 }
 0x5c9   : > { %3280 = vst.msk [vmem:[#allocation3 + $0xc0] sm:$0xff] %vm1332_vm7, %v3209_v11  ;;  %v3507_v11 = vld [vmem:[#allocation2 + $0x171] sm:$0xff] }
 0x5cc   : > { %3782 = vrot.lane.b32.xlu1 %v3695_v43, %s4392_s6  ;;  %v3699_v43 = vld [vmem:[#allocation2 + $0x172] sm:$0xff] }
 0x5cd   : > { %3748 = vrot.lane.b32.xlu2 %v3678_v59, %s4392_s6 }
 0x5ce   : > { %3590 = vrot.lane.b32.xlu0 %v3503_v35, %s4391_s30  ;;  %v3769_v2 = vpop.permute.xlu1 %3768 }
 0x5cf   : > { %v3355_v50 = vpop.permute.xlu2 %3354 }
 0x5d0   : > { %3449 = vst.msk [vmem:[#allocation3 + $0x8] sm:$0xff] %vm1526_vm8, %v3355_v50  ;;  %v3577_v3 = vpop.permute.xlu0 %3576 }
 0x5d1   : > { %3656 = vst.msk [vmem:[#allocation3 + $0x80] sm:$0xff] %vm1719_vm9, %v3577_v3  ;;  %v3316_v3 = vld [vmem:[#allocation2 + $0x180] sm:$0xff] }
 0x5d2   : > { %3848 = vst.msk [vmem:[#allocation3 + $0x80] sm:$0xff] %vm1912_vm11, %v3769_v2 }
 0x5d4   : > { %3400 = vrot.lane.b32.xlu1 %v3312_v45, %s4390_s29  ;;  %v3491_v45 = vld [vmem:[#allocation2 + $0xb1] sm:$0xff] }
 0x5d5   : > { %3366 = vrot.lane.b32.xlu2 %v3295_v16, %s4390_s29 }
 0x5d6   : > { %3558 = vrot.lane.b32.xlu0 %v3487_v48, %s4391_s30  ;;  %v3387_v42 = vpop.permute.xlu1 %3386 }
 0x5d7   : > { %v3739_v52 = vpop.permute.xlu2 %3738  ;;  %3465 = vst.msk [vmem:[#allocation3 + $0x88] sm:$0xff] %vm1526_vm8, %v3387_v42 }
 0x5d8   : > { %v3545_v19 = vpop.permute.xlu0 %3544 }
 0x5d9   : > { %3640 = vst.msk [vmem:[#allocation3] sm:$0xff] %vm1719_vm9, %v3545_v19  ;;  %v3880_v15 = vld [vmem:[#allocation3 + $0x80] sm:$0xff]  ;;  %v3700_v19 = vld [vmem:[#allocation2 + $0x182] sm:$0xff] }
 0x5da   : > { %3832 = vst.msk [vmem:[#allocation3] sm:$0xff] %vm1912_vm11, %v3737_v41  ;;  %4327 = vmatmul.msk.f32.vlgmr.msra.gmra.mxu3 %vm1986_vm12, %v3880_v15  ;;  %v3299_v41 = vld [vmem:[#allocation2 + $0xb0] sm:$0xff] }
 0x5db   : > { %v3683_v15 = vld [vmem:[#allocation2 + $0xb2] sm:$0xff] }
 0x5dc   : > { %3784 = vrot.lane.b32.xlu1 %v3696_v49, %s4392_s6 }
 0x5dd   : > { %3750 = vrot.lane.b32.xlu2 %v3679_v30, %s4392_s6 }
 0x5de   : > { %3592 = vrot.lane.b32.xlu0 %v3504_v23, %s4391_s30  ;;  %v3771_v56 = vpop.permute.xlu1 %3770 }
 0x5df   : > { %v3357_v36 = vpop.permute.xlu2 %3356 }
 0x5e0   : > { %3450 = vst.msk [vmem:[#allocation3 + $0x10] sm:$0xff] %vm1526_vm8, %v3357_v36  ;;  %v3579_v1 = vpop.permute.xlu0 %3578  ;;  %v3492_v36 = vld [vmem:[#allocation2 + $0xc1] sm:$0xff] }
 0x5e1   : > { %3657 = vst.msk [vmem:[#allocation3 + $0x88] sm:$0xff] %vm1719_vm9, %v3579_v1  ;;  %v3864_v20 = vld [vmem:[#allocation3] sm:$0xff]  ;;  %v3300_v1 = vld [vmem:[#allocation2 + $0xc0] sm:$0xff] }
 0x5e2   : > { %3849 = vst.msk [vmem:[#allocation3 + $0x88] sm:$0xff] %vm1912_vm11, %v3771_v56  ;;  %4311 = vmatmul.msk.f32.vlgmr.msra.gmra.mxu1 %vm1986_vm12, %v3864_v20 }
 0x5e4   : > { %3402 = vrot.lane.b32.xlu1 %v3313_v18, %s4390_s29 }
 0x5e5   : > { %3368 = vrot.lane.b32.xlu2 %v3296_v13, %s4390_s29 }
 0x5e6   : > { %3560 = vrot.lane.b32.xlu0 %v3488_v63, %s4391_s30  ;;  %v3389_v14 = vpop.permute.xlu1 %3388  ;;  %v3317_v63 = vld [vmem:[#allocation2 + $0x188] sm:$0xff] }
 0x5e7   : > { %v3741_v51 = vpop.permute.xlu2 %3740  ;;  %3466 = vst.msk [vmem:[#allocation3 + $0x90] sm:$0xff] %vm1526_vm8, %v3389_v14  ;;  %v3684_v14 = vld [vmem:[#allocation2 + $0xc2] sm:$0xff] }
 0x5e8   : > { %v3547_v28 = vpop.permute.xlu0 %3546 }
 0x5e9   : > { %3641 = vst.msk [vmem:[#allocation3 + $0x8] sm:$0xff] %vm1719_vm9, %v3547_v28  ;;  %v3881_v33 = vld [vmem:[#allocation3 + $0x88] sm:$0xff] }
 0x5ea   : > { %3833 = vst.msk [vmem:[#allocation3 + $0x8] sm:$0xff] %vm1912_vm11, %v3739_v52  ;;  %4328 = vmatmul.msk.f32.gmra.mxu3 %vm1986_vm12, %v3881_v33 }
 0x5ec   : > { %3786 = vrot.lane.b32.xlu1 %v3697_v29, %s4392_s6 }
 0x5ed   : > { %3752 = vrot.lane.b32.xlu2 %v3680_v8, %s4392_s6  ;;  %v3701_v8 = vld [vmem:[#allocation2 + $0x18a] sm:$0xff] }
 0x5ee   : > { %3594 = vrot.lane.b32.xlu0 %v3505_v58, %s4391_s30  ;;  %v3773_v6 = vpop.permute.xlu1 %3772 }
 0x5ef   : > { %v3359_v0 = vpop.permute.xlu2 %3358 }
 0x5f0   : > { %3451 = vst.msk [vmem:[#allocation3 + $0x18] sm:$0xff] %vm1526_vm8, %v3359_v0  ;;  %v3581_v25 = vpop.permute.xlu0 %3580 }
 0x5f1   : > { %3658 = vst.msk [vmem:[#allocation3 + $0x90] sm:$0xff] %vm1719_vm9, %v3581_v25  ;;  %v3865_v27 = vld [vmem:[#allocation3 + $0x8] sm:$0xff] }
 0x5f2   : > { %3850 = vst.msk [vmem:[#allocation3 + $0x90] sm:$0xff] %vm1912_vm11, %v3773_v6  ;;  %4312 = vmatmul.msk.f32.gmra.mxu1 %vm1986_vm12, %v3865_v27  ;;  %v3685_v27 = vld [vmem:[#allocation2 + $0xca] sm:$0xff] }
 0x5f4   : > { %3562 = vrot.lane.b32.xlu1 %v3489_v53, %s4391_s30  ;;  %v3493_v53 = vld [vmem:[#allocation2 + $0xc9] sm:$0xff] }
 0x5f5   : > { %3370 = vrot.lane.b32.xlu2 %v3297_v47, %s4390_s29  ;;  %v3318_v47 = vld [vmem:[#allocation2 + $0x198] sm:$0xff] }
 0x5f6   : > { %3212 = vrot.lane.b32.xlu0 %v3696_v49, %s4389_s28  ;;  %v3391_v22 = vpop.permute.xlu1 %3390 }
 0x5f7   : > { %v3743_v61 = vpop.permute.xlu2 %3742  ;;  %3467 = vst.msk [vmem:[#allocation3 + $0x98] sm:$0xff] %vm1526_vm8, %v3391_v22 }
 0x5f8   : > { %v3549_v60 = vpop.permute.xlu0 %3548 }
 0x5f9   : > { %3642 = vst.msk [vmem:[#allocation3 + $0x10] sm:$0xff] %vm1719_vm9, %v3549_v60  ;;  %v3882_v55 = vld [vmem:[#allocation3 + $0x90] sm:$0xff] }
 0x5fa   : > { %3834 = vst.msk [vmem:[#allocation3 + $0x10] sm:$0xff] %vm1912_vm11, %v3741_v51  ;;  %4329 = vmatmul.msk.f32.gmra.mxu3 %vm1986_vm12, %v3882_v55 }
 0x5fc   : > { %3596 = vrot.lane.b32.xlu1 %v3506_v46, %s4391_s30  ;;  %v3510_v46 = vld [vmem:[#allocation2 + $0x199] sm:$0xff] }
 0x5fd   : > { %3404 = vrot.lane.b32.xlu2 %v3314_v39, %s4390_s29  ;;  %v3302_v39 = vld [vmem:[#allocation2 + $0xd8] sm:$0xff] }
 0x5fe   : > { %3754 = vrot.lane.b32.xlu0 %v3681_v10, %s4392_s6  ;;  %v3775_v21 = vpop.permute.xlu1 %3774  ;;  %v3702_v10 = vld [vmem:[#allocation2 + $0x19a] sm:$0xff] }
 0x5ff   : > { %v3361_v57 = vpop.permute.xlu2 %3360 }
 0x600   : > { %3452 = vst.msk [vmem:[#allocation3 + $0x20] sm:$0xff] %vm1526_vm8, %v3361_v57  ;;  %v3583_v37 = vpop.permute.xlu0 %3582 }
 0x601   : > { %3659 = vst.msk [vmem:[#allocation3 + $0x98] sm:$0xff] %vm1719_vm9, %v3583_v37  ;;  %v3866_v12 = vld [vmem:[#allocation3 + $0x10] sm:$0xff] }
 0x602   : > { %3851 = vst.msk [vmem:[#allocation3 + $0x98] sm:$0xff] %vm1912_vm11, %v3775_v21  ;;  %4313 = vmatmul.msk.f32.gmra.mxu1 %vm1986_vm12, %v3866_v12 }
 0x604   : > { %3214 = vrot.lane.b32.xlu1 %v3697_v29, %s4389_s28 }
 0x605   : > { %3788 = vrot.lane.b32.xlu2 %v3698_v34, %s4392_s6 }
 0x606   : > { %3372 = vrot.lane.b32.xlu0 %v3298_v44, %s4390_s29  ;;  %v3393_v32 = vpop.permute.xlu1 %3392  ;;  %v3494_v44 = vld [vmem:[#allocation2 + $0xd9] sm:$0xff] }
 0x607   : > { %v3745_v40 = vpop.permute.xlu2 %3744  ;;  %3468 = vst.msk [vmem:[#allocation3 + $0xa0] sm:$0xff] %vm1526_vm8, %v3393_v32 }
 0x608   : > { %v3551_v31 = vpop.permute.xlu0 %3550 }
 0x609   : > { %3643 = vst.msk [vmem:[#allocation3 + $0x18] sm:$0xff] %vm1719_vm9, %v3551_v31  ;;  %v3883_v54 = vld [vmem:[#allocation3 + $0x98] sm:$0xff] }
 0x60a   : > { %3835 = vst.msk [vmem:[#allocation3 + $0x18] sm:$0xff] %vm1912_vm11, %v3743_v61  ;;  %4330 = vmatmul.msk.f32.gmra.mxu3 %vm1986_vm12, %v3883_v54 }
 0x60c   : > { %3756 = vrot.lane.b32.xlu1 %v3682_v4, %s4392_s6  ;;  %v3703_v4 = vld [vmem:[#allocation2 + $0x1a2] sm:$0xff] }
 0x60d   : > { %3564 = vrot.lane.b32.xlu2 %v3490_v17, %s4391_s30  ;;  %v6638_v17 = vld [vmem:[%s6849_s4] ss:$0 sm:$0xff] }
 0x60e   : > { %3406 = vrot.lane.b32.xlu0 %v3315_v9, %s4390_s29  ;;  %v3777_v7 = vpop.permute.xlu1 %3776  ;;  %v3686_v9 = vld [vmem:[#allocation2 + $0xda] sm:$0xff] }
 0x60f   : > { %v3363_v26 = vpop.permute.xlu2 %3362 }
 0x610   : > { %3453 = vst.msk [vmem:[#allocation3 + $0x28] sm:$0xff] %vm1526_vm8, %v3363_v26  ;;  %v3585_v5 = vpop.permute.xlu0 %3584 }
 0x611   : > { %3660 = vst.msk [vmem:[#allocation3 + $0xa0] sm:$0xff] %vm1719_vm9, %v3585_v5  ;;  %v3867_v24 = vld [vmem:[#allocation3 + $0x18] sm:$0xff] }
 0x612   : > { %3852 = vst.msk [vmem:[#allocation3 + $0xa0] sm:$0xff] %vm1912_vm11, %v3777_v7  ;;  %4314 = vmatmul.msk.f32.gmra.mxu1 %vm1986_vm12, %v3867_v24  ;;  %v3511_v7 = vld [vmem:[#allocation2 + $0x1a1] sm:$0xff] }
 0x614   : > { %3374 = vrot.lane.b32.xlu1 %v3299_v41, %s4390_s29 }
 0x615   : > { %3598 = vrot.lane.b32.xlu2 %v3507_v11, %s4391_s30 }
 0x616   : > { %3790 = vrot.lane.b32.xlu0 %v3699_v43, %s4392_s6  ;;  %v3395_v59 = vpop.permute.xlu1 %3394 }
 0x617   : > { %v3747_v35 = vpop.permute.xlu2 %3746  ;;  %3469 = vst.msk [vmem:[#allocation3 + $0xa8] sm:$0xff] %vm1526_vm8, %v3395_v59 }
 0x618   : > { %v3553_v2 = vpop.permute.xlu0 %3552 }
 0x619   : > { %3644 = vst.msk [vmem:[#allocation3 + $0x20] sm:$0xff] %vm1719_vm9, %v3553_v2  ;;  %v3884_v50 = vld [vmem:[#allocation3 + $0xa0] sm:$0xff] }
 0x61a   : > { %3836 = vst.msk [vmem:[#allocation3 + $0x20] sm:$0xff] %vm1912_vm11, %v3745_v40  ;;  %4331 = vmatmul.msk.f32.gmra.mxu3 %vm1986_vm12, %v3884_v50 }
 0x61c   : > { %3408 = vrot.lane.b32.xlu1 %v3316_v3, %s4390_s29 }
 0x61d   : > { %3216 = vrot.lane.b32.xlu2 %v3698_v34, %s4389_s28  ;;  %v3319_v34 = vld [vmem:[#allocation2 + $0x1a0] sm:$0xff] }
 0x61e   : > { %3566 = vrot.lane.b32.xlu0 %v3491_v45, %s4391_s30  ;;  %v3779_v16 = vpop.permute.xlu1 %3778  ;;  %v7100_v45 = vld [vmem:[#allocation4_spill] sm:$0xff] }
 0x61f   : > { %v3365_v48 = vpop.permute.xlu2 %3364 }
 0x620   : > { %3454 = vst.msk [vmem:[#allocation3 + $0x30] sm:$0xff] %vm1526_vm8, %v3365_v48  ;;  %v3587_v42 = vpop.permute.xlu0 %3586  ;;  %v3687_v48 = vld [vmem:[#allocation2 + $0xe2] sm:$0xff] }
 0x621   : > { %3661 = vst.msk [vmem:[#allocation3 + $0xa8] sm:$0xff] %vm1719_vm9, %v3587_v42  ;;  %v3868_v52 = vld [vmem:[#allocation3 + $0x20] sm:$0xff]  ;;  %v3303_v42 = vld [vmem:[#allocation2 + $0xe0] sm:$0xff] }
 0x622   : > { %3853 = vst.msk [vmem:[#allocation3 + $0xa8] sm:$0xff] %vm1912_vm11, %v3779_v16  ;;  %4315 = vmatmul.msk.f32.gmra.mxu1 %vm1986_vm12, %v3868_v52 }
 0x624   : > { %3792 = vrot.lane.b32.xlu1 %v3700_v19, %s4392_s6 }
 0x625   : > { %3758 = vrot.lane.b32.xlu2 %v3683_v15, %s4392_s6 }
 0x626   : > { %3600 = vrot.lane.b32.xlu0 %v6304_v62, %s4391_s30  ;;  %v3397_v49 = vpop.permute.xlu1 %3396 }
 0x627   : > { %v3749_v30 = vpop.permute.xlu2 %3748  ;;  %3470 = vst.msk [vmem:[#allocation3 + $0xb0] sm:$0xff] %vm1526_vm8, %v3397_v49 }
 0x628   : > { %v3555_v23 = vpop.permute.xlu0 %3554 }
 0x629   : > { %3645 = vst.msk [vmem:[#allocation3 + $0x28] sm:$0xff] %vm1719_vm9, %v3555_v23  ;;  %v3885_v56 = vld [vmem:[#allocation3 + $0xa8] sm:$0xff] }
 0x62a   : > { %3837 = vst.msk [vmem:[#allocation3 + $0x28] sm:$0xff] %vm1912_vm11, %v3747_v35  ;;  %4332 = vmatmul.msk.f32.gmra.mxu3 %vm1986_vm12, %v3885_v56 }
 0x62c   : > { %3568 = vrot.lane.b32.xlu1 %v3492_v36, %s4391_s30 }
 0x62d   : > { %3376 = vrot.lane.b32.xlu2 %v3300_v1, %s4390_s29 }
 0x62e   : > { %3218 = vrot.lane.b32.xlu0 %v3699_v43, %s4389_s28  ;;  %v3781_v62 = vpop.permute.xlu1 %3780  ;;  %v7099_v43 = vld [vmem:[#allocation16_spill] sm:$0xff] }
 0x62f   : > { %v3367_v20 = vpop.permute.xlu2 %3366 }
 0x630   : > { %3455 = vst.msk [vmem:[#allocation3 + $0x38] sm:$0xff] %vm1526_vm8, %v3367_v20  ;;  %v3589_v18 = vpop.permute.xlu0 %3588 }
 0x631   : > { %3662 = vst.msk [vmem:[#allocation3 + $0xb0] sm:$0xff] %vm1719_vm9, %v3589_v18  ;;  %v3869_v13 = vld [vmem:[#allocation3 + $0x28] sm:$0xff] }
 0x632   : > { %3854 = vst.msk [vmem:[#allocation3 + $0xb0] sm:$0xff] %vm1912_vm11, %v3781_v62  ;;  %4316 = vmatmul.msk.f32.gmra.mxu1 %vm1986_vm12, %v3869_v13  ;;  %v7101_v18 = vld [vmem:[#allocation21_spill] sm:$0xff] }
 0x634   : > { %3602 = vrot.lane.b32.xlu1 %v6315_v38, %s4391_s30  ;;  %v3301_v38 = vld [vmem:[#allocation2 + $0xc8] sm:$0xff] }
 0x635   : > { %3410 = vrot.lane.b32.xlu2 %v3317_v63, %s4390_s29 }
 0x636   : > { %3760 = vrot.lane.b32.xlu0 %v3684_v14, %s4392_s6  ;;  %v3399_v51 = vpop.permute.xlu1 %3398 }
 0x637   : > { %v3751_v28 = vpop.permute.xlu2 %3750  ;;  %3471 = vst.msk [vmem:[#allocation3 + $0xb8] sm:$0xff] %vm1526_vm8, %v3399_v51 }
 0x638   : > { %v3557_v33 = vpop.permute.xlu0 %3556 }
 0x639   : > { %3646 = vst.msk [vmem:[#allocation3 + $0x30] sm:$0xff] %vm1719_vm9, %v3557_v33  ;;  %v3886_v29 = vld [vmem:[#allocation3 + $0xb0] sm:$0xff] }
 0x63a   : > { %3838 = vst.msk [vmem:[#allocation3 + $0x30] sm:$0xff] %vm1912_vm11, %v3749_v30  ;;  %4333 = vmatmul.msk.f32.gmra.mxu3 %vm1986_vm12, %v3886_v29 }
 0x63c   : > { %3220 = vrot.lane.b32.xlu1 %v3700_v19, %s4389_s28  ;;  %v3495_v19 = vld [vmem:[#allocation2 + $0xe1] sm:$0xff] }
 0x63d   : > { %3794 = vrot.lane.b32.xlu2 %v3701_v8, %s4392_s6 }
 0x63e   : > { %3378 = vrot.lane.b32.xlu0 %v3301_v38, %s4390_s29  ;;  %v3783_v58 = vpop.permute.xlu1 %3782 }
 0x63f   : > { %v3369_v6 = vpop.permute.xlu2 %3368 }
 0x640   : > { %3456 = vst.msk [vmem:[#allocation3 + $0x40] sm:$0xff] %vm1526_vm8, %v3369_v6  ;;  %v3591_v0 = vpop.permute.xlu0 %3590 }
 0x641   : > { %3663 = vst.msk [vmem:[#allocation3 + $0xb8] sm:$0xff] %vm1719_vm9, %v3591_v0  ;;  %v3870_v25 = vld [vmem:[#allocation3 + $0x30] sm:$0xff] }
 0x642   : > { %3855 = vst.msk [vmem:[#allocation3 + $0xb8] sm:$0xff] %vm1912_vm11, %v3783_v58  ;;  %4317 = vmatmul.msk.f32.gmra.mxu1 %vm1986_vm12, %v3870_v25 }
 0x644   : > { %3762 = vrot.lane.b32.xlu1 %v3685_v27, %s4392_s6 }
 0x645   : > { %3570 = vrot.lane.b32.xlu2 %v3493_v53, %s4391_s30 }
 0x646   : > { %3412 = vrot.lane.b32.xlu0 %v3318_v47, %s4390_s29  ;;  %v3401_v22 = vpop.permute.xlu1 %3400 }
 0x647   : > { %v3753_v61 = vpop.permute.xlu2 %3752  ;;  %3472 = vst.msk [vmem:[#allocation3 + $0xc0] sm:$0xff] %vm1526_vm8, %v3401_v22 }
 0x648   : > { %v3559_v60 = vpop.permute.xlu0 %3558 }
 0x649   : > { %3647 = vst.msk [vmem:[#allocation3 + $0x38] sm:$0xff] %vm1719_vm9, %v3559_v60  ;;  %v3887_v55 = vld [vmem:[#allocation3 + $0xb8] sm:$0xff] }
 0x64a   : > { %3839 = vst.msk [vmem:[#allocation3 + $0x38] sm:$0xff] %vm1912_vm11, %v3751_v28  ;;  %4334 = vmatmul.msk.f32.gmra.mxu3 %vm1986_vm12, %v3887_v55  ;;  %v7102_v28 = vld [vmem:[#allocation6_spill] sm:$0xff] }
 0x64c   : > { %3380 = vrot.lane.b32.xlu1 %v3302_v39, %s4390_s29 }
 0x64d   : > { %3604 = vrot.lane.b32.xlu2 %v3510_v46, %s4391_s30 }
 0x64e   : > { %3796 = vrot.lane.b32.xlu0 %v3702_v10, %s4392_s6  ;;  %v3785_v21 = vpop.permute.xlu1 %3784  ;;  %v7104_v10 = vld [vmem:[#allocation8_spill] sm:$0xff] }
 0x64f   : > { %v3371_v57 = vpop.permute.xlu2 %3370 }
 0x650   : > { %3457 = vst.msk [vmem:[#allocation3 + $0x48] sm:$0xff] %vm1526_vm8, %v3371_v57  ;;  %v3593_v37 = vpop.permute.xlu0 %3592 }
 0x651   : > { %3664 = vst.msk [vmem:[#allocation3 + $0xc0] sm:$0xff] %vm1719_vm9, %v3593_v37  ;;  %v3871_v12 = vld [vmem:[#allocation3 + $0x38] sm:$0xff] }
 0x652   : > { %3856 = vst.msk [vmem:[#allocation3 + $0xc0] sm:$0xff] %vm1912_vm11, %v3785_v21  ;;  %4318 = vmatmul.msk.f32.gmra.mxu1 %vm1986_vm12, %v3871_v12 }
 0x654   : > { %3414 = vrot.lane.b32.xlu1 %v3319_v34, %s4390_s29 }
 0x655   : > { %3222 = vrot.lane.b32.xlu2 %v3701_v8, %s4389_s28 }
 0x656   : > { %3572 = vrot.lane.b32.xlu0 %v3494_v44, %s4391_s30  ;;  %v3403_v32 = vpop.permute.xlu1 %3402 }
 0x657   : > { %v3405_v40 = vpop.permute.xlu2 %3404  ;;  %3473 = vst.msk [vmem:[#allocation3 + $0xc8] sm:$0xff] %vm1526_vm8, %v3403_v32 }
 0x658   : > { %v3561_v31 = vpop.permute.xlu0 %3560 }
 0x659   : > { %3648 = vst.msk [vmem:[#allocation3 + $0x40] sm:$0xff] %vm1719_vm9, %v3561_v31  ;;  %v3888_v54 = vld [vmem:[#allocation3 + $0xc0] sm:$0xff] }
 0x65a   : > { %3840 = vst.msk [vmem:[#allocation3 + $0x40] sm:$0xff] %vm1912_vm11, %v3753_v61  ;;  %4335 = vmatmul.msk.f32.gmra.mxu3 %vm1986_vm12, %v3888_v54  ;;  %v7103_v61 = vld [vmem:[#allocation26_spill] sm:$0xff] }
 0x65c   : > { %3798 = vrot.lane.b32.xlu1 %v3703_v4, %s4392_s6 }
 0x65d   : > { %3764 = vrot.lane.b32.xlu2 %v3686_v9, %s4392_s6  ;;  %v4069_v26 = vpop.f32.mrf.mxu3  ;;  %v7105_v9 = vld [vmem:[#allocation19_spill] sm:$0xff] }
 0x65e   : > { %v4070_v5 = vadd.f32 %v6638_v17, %v4069_v26  ;;  %3606 = vrot.lane.b32.xlu0 %v3511_v7, %s4391_s30  ;;  %v3787_v24 = vpop.permute.xlu1 %3786 }
 0x65f   : > { %v3789_v41 = vpop.permute.xlu2 %3788  ;;  %v4021_v11 = vpop.f32.mrf.mxu1 }
 0x660   : > { %v4133_v59 = vadd.f32 %v4070_v5, %v7099_v43  ;;  %v4022_v35 = vadd.f32 %v6638_v17, %v4021_v11  ;;  %v3595_v2 = vpop.permute.xlu0 %3594  ;;  %v7106_v11 = vld [vmem:[#allocation11_spill] sm:$0xff] }
 0x661   : > { %3665 = vst.msk [vmem:[#allocation3 + $0xc8] sm:$0xff] %vm1719_vm9, %v3595_v2  ;;  %v3872_v50 = vld [vmem:[#allocation3 + $0x40] sm:$0xff] }
 0x662   : > { %v4165_v3 = vmax.f32 %v4133_v59, 0.0  ;;  %v4117_v16 = vadd.f32 %v4022_v35, %v7100_v45  ;;  %3857 = vst.msk [vmem:[#allocation3 + $0xc8] sm:$0xff] %vm1912_vm11, %v3787_v24  ;;  %4319 = vmatmul.msk.f32.gmra.mxu1 %vm1986_vm12, %v3872_v50 }
 0x664   : > { %4197 = vst.msk [vmem:[%s6651_s14 + $0x80] sm:$0xff] %vm257_vm0, %v4165_v3  ;;  %v4149_v52 = vmax.f32 %v4117_v16, 0.0  ;;  %3766 = vrot.lane.b32.xlu1 %v3687_v48, %s4392_s6 }
 0x665   : > { %3382 = vrot.lane.b32.xlu2 %v3303_v42, %s4390_s29 }
 0x666   : > { %4181 = vst.msk [vmem:[%s6651_s14] sm:$0xff] %vm257_vm0, %v4149_v52  ;;  %3574 = vrot.lane.b32.xlu0 %v3495_v19, %s4391_s30  ;;  %v3563_v15 = vpop.permute.xlu1 %3562  ;;  %v7107_v19 = vld [vmem:[#allocation24_spill] sm:$0xff] }
 0x667   : > { %v3565_v49 = vpop.permute.xlu2 %3564  ;;  %3649 = vst.msk [vmem:[#allocation3 + $0x48] sm:$0xff] %vm1719_vm9, %v3563_v15 }
 0x668   : > { %v3213_v30 = vpop.permute.xlu0 %3212 }
 0x669   : > { %3282 = vst.msk [vmem:[#allocation3 + $0xd0] sm:$0xff] %vm1332_vm7, %v3213_v30  ;;  %v3889_v23 = vld [vmem:[#allocation3 + $0xc8] sm:$0xff] }
 0x66a   : > { %3474 = vst.msk [vmem:[#allocation3 + $0xd0] sm:$0xff] %vm1526_vm8, %v3405_v40  ;;  %4336 = vmatmul.msk.f32.gmra.mxu3 %vm1986_vm12, %v3889_v23 }
 0x66d   : > { %v4072_v56 = vpop.f32.mrf.mxu3 }
 0x66e   : > { %v4073_v36 = vadd.f32 %v6638_v17, %v4072_v56  ;;  %v3597_v1 = vpop.permute.xlu1 %3596 }
 0x66f   : > { %v3599_v62 = vpop.permute.xlu2 %3598  ;;  %3666 = vst.msk [vmem:[#allocation3 + $0xd0] sm:$0xff] %vm1719_vm9, %v3597_v1  ;;  %v4024_v20 = vpop.f32.mrf.mxu1 }
 0x670   : > { %v4134_v13 = vadd.f32 %v4073_v36, %v7101_v18  ;;  %3858 = vst.msk [vmem:[#allocation3 + $0xd0] sm:$0xff] %vm1912_vm11, %v3789_v41  ;;  %v4025_v63 = vadd.f32 %v6638_v17, %v4024_v20  ;;  %v3755_v14 = vpop.permute.xlu0 %3754  ;;  %v7108_v36 = vld [vmem:[#allocation5_spill] sm:$0xff] }
 0x671   : > { %3841 = vst.msk [vmem:[#allocation3 + $0x48] sm:$0xff] %vm1912_vm11, %v3755_v14 }
 0x672   : > { %v4166_v51 = vmax.f32 %v4134_v13, 0.0  ;;  %v4118_v33 = vadd.f32 %v4025_v63, %v7102_v28 }
 0x674   : > { %4198 = vst.msk [vmem:[%s6651_s14 + $0x88] sm:$0xff] %vm257_vm0, %v4166_v51  ;;  %v4150_v29 = vmax.f32 %v4118_v33, 0.0 }
 0x676   : > { %4182 = vst.msk [vmem:[%s6651_s14 + $0x8] sm:$0xff] %vm257_vm0, %v4150_v29  ;;  %v3215_v8 = vpop.permute.xlu1 %3214 }
 0x677   : > { %v3217_v38 = vpop.permute.xlu2 %3216  ;;  %3283 = vst.msk [vmem:[#allocation3 + $0xd8] sm:$0xff] %vm1332_vm7, %v3215_v8  ;;  %v3890_v58 = vld [vmem:[#allocation3 + $0xd0] sm:$0xff]  ;;  %v7109_v8 = vld [vmem:[#allocation29_spill] sm:$0xff] }
 0x678   : > { %3284 = vst.msk [vmem:[#allocation3 + $0xe0] sm:$0xff] %vm1332_vm7, %v3217_v38  ;;  %v3373_v6 = vpop.permute.xlu0 %3372  ;;  %4337 = vmatmul.msk.f32.gmra.mxu3 %vm1986_vm12, %v3890_v58  ;;  %v3873_v0 = vld [vmem:[#allocation3 + $0x48] sm:$0xff] }
 0x679   : > { %3458 = vst.msk [vmem:[#allocation3 + $0x50] sm:$0xff] %vm1526_vm8, %v3373_v6  ;;  %4320 = vmatmul.msk.f32.gmra.mxu1 %vm1986_vm12, %v3873_v0 }
 0x67a   : > { %3650 = vst.msk [vmem:[#allocation3 + $0x50] sm:$0xff] %vm1719_vm9, %v3565_v49 }
 0x67d   : > { %v4075_v25 = vpop.f32.mrf.mxu3 }
 0x67e   : > { %v4076_v27 = vadd.f32 %v6638_v17, %v4075_v25  ;;  %v3757_v53 = vpop.permute.xlu1 %3756 }
 0x67f   : > { %v3759_v47 = vpop.permute.xlu2 %3758  ;;  %3842 = vst.msk [vmem:[#allocation3 + $0x50] sm:$0xff] %vm1912_vm11, %v3757_v53  ;;  %v4027_v22 = vpop.f32.mrf.mxu1 }
 0x680   : > { %v4135_v60 = vadd.f32 %v4076_v27, %v7103_v61  ;;  %v4028_v55 = vadd.f32 %v6638_v17, %v4027_v22  ;;  %v3407_v46 = vpop.permute.xlu0 %3406  ;;  %v7110_v27 = vld [vmem:[#allocation9_spill] sm:$0xff] }
 0x681   : > { %3475 = vst.msk [vmem:[#allocation3 + $0xd8] sm:$0xff] %vm1526_vm8, %v3407_v46 }
 0x682   : > { %v4167_v39 = vmax.f32 %v4135_v60, 0.0  ;;  %v4119_v21 = vadd.f32 %v4028_v55, %v7104_v10  ;;  %3667 = vst.msk [vmem:[#allocation3 + $0xd8] sm:$0xff] %vm1719_vm9, %v3599_v62 }
 0x684   : > { %4199 = vst.msk [vmem:[%s6651_s14 + $0x90] sm:$0xff] %vm257_vm0, %v4167_v39  ;;  %v4151_v57 = vmax.f32 %v4119_v21, 0.0 }
 0x686   : > { %4183 = vst.msk [vmem:[%s6651_s14 + $0x10] sm:$0xff] %vm257_vm0, %v4151_v57  ;;  %v3375_v37 = vpop.permute.xlu1 %3374  ;;  %v3874_v34 = vld [vmem:[#allocation3 + $0x50] sm:$0xff] }
 0x687   : > { %v3377_v12 = vpop.permute.xlu2 %3376  ;;  %3459 = vst.msk [vmem:[#allocation3 + $0x58] sm:$0xff] %vm1526_vm8, %v3375_v37  ;;  %4321 = vmatmul.msk.f32.gmra.mxu1 %vm1986_vm12, %v3874_v34  ;;  %v7111_v37 = vld [vmem:[#allocation22_spill] sm:$0xff] }
 0x688   : > { %3460 = vst.msk [vmem:[#allocation3 + $0x60] sm:$0xff] %vm1526_vm8, %v3377_v12  ;;  %v3791_v44 = vpop.permute.xlu0 %3790 }
 0x689   : > { %3859 = vst.msk [vmem:[#allocation3 + $0xd8] sm:$0xff] %vm1912_vm11, %v3791_v44 }
 0x68d   : > { %v4078_v32 = vpop.f32.mrf.mxu3 }
 0x68e   : > { %v4079_v40 = vadd.f32 %v6638_v17, %v4078_v32  ;;  %v3409_v31 = vpop.permute.xlu1 %3408 }
 0x68f   : > { %v3411_v54 = vpop.permute.xlu2 %3410  ;;  %3476 = vst.msk [vmem:[#allocation3 + $0xe0] sm:$0xff] %vm1526_vm8, %v3409_v31  ;;  %v4030_v4 = vpop.f32.mrf.mxu1 }
 0x690   : > { %v4136_v7 = vadd.f32 %v4079_v40, %v7105_v9  ;;  %v4031_v26 = vadd.f32 %v6638_v17, %v4030_v4  ;;  %v3567_v5 = vpop.permute.xlu0 %3566  ;;  %v3891_v24 = vld [vmem:[#allocation3 + $0xd8] sm:$0xff]  ;;  %v7112_v40 = vld [vmem:[#allocation14_spill] sm:$0xff] }
 0x691   : > { %3651 = vst.msk [vmem:[#allocation3 + $0x58] sm:$0xff] %vm1719_vm9, %v3567_v5  ;;  %4338 = vmatmul.msk.f32.gmra.mxu3 %vm1986_vm12, %v3891_v24 }
 0x692   : > { %v4168_v41 = vmax.f32 %v4136_v7, 0.0  ;;  %v4120_v43 = vadd.f32 %v4031_v26, %v7106_v11  ;;  %3843 = vst.msk [vmem:[#allocation3 + $0x58] sm:$0xff] %vm1912_vm11, %v3759_v47  ;;  %v7113_v11 = vld [vmem:[#allocation27_spill] sm:$0xff] }
 0x694   : > { %4200 = vst.msk [vmem:[%s6651_s14 + $0x98] sm:$0xff] %vm257_vm0, %v4168_v41  ;;  %v4152_v59 = vmax.f32 %v4120_v43, 0.0 }
 0x696   : > { %4184 = vst.msk [vmem:[%s6651_s14 + $0x18] sm:$0xff] %vm257_vm0, %v4152_v59  ;;  %v3793_v35 = vpop.permute.xlu1 %3792 }
 0x697   : > { %v3795_v2 = vpop.permute.xlu2 %3794 }
 0x698   : > { %v3601_v50 = vpop.permute.xlu0 %3600 }
 0x699   : > { %3668 = vst.msk [vmem:[#allocation3 + $0xe0] sm:$0xff] %vm1719_vm9, %v3601_v50  ;;  %v3875_v3 = vld [vmem:[#allocation3 + $0x58] sm:$0xff] }
 0x69a   : > { %3860 = vst.msk [vmem:[#allocation3 + $0xe0] sm:$0xff] %vm1912_vm11, %v3793_v35  ;;  %4322 = vmatmul.msk.f32.gmra.mxu1 %vm1986_vm12, %v3875_v3  ;;  %v7114_v3 = vld [vmem:[#allocation7_spill] sm:$0xff] }
 0x69d   : > { %v4081_v45 = vpop.f32.mrf.mxu3 }
 0x69e   : > { %v4082_v16 = vadd.f32 %v6638_v17, %v4081_v45  ;;  %v3569_v48 = vpop.permute.xlu1 %3568 }
 0x69f   : > { %v3571_v42 = vpop.permute.xlu2 %3570  ;;  %3652 = vst.msk [vmem:[#allocation3 + $0x60] sm:$0xff] %vm1719_vm9, %v3569_v48  ;;  %v4033_v52 = vpop.f32.mrf.mxu1 }
 0x6a0   : > { %v4137_v15 = vadd.f32 %v4082_v16, %v7107_v19  ;;  %v4034_v49 = vadd.f32 %v6638_v17, %v4033_v52  ;;  %v3219_v30 = vpop.permute.xlu0 %3218 }
 0x6a1   : > { %3285 = vst.msk [vmem:[#allocation3 + $0xe8] sm:$0xff] %vm1332_vm7, %v3219_v30  ;;  %v3892_v23 = vld [vmem:[#allocation3 + $0xe0] sm:$0xff] }
 0x6a2   : > { %v4169_v56 = vmax.f32 %v4137_v15, 0.0  ;;  %v4121_v1 = vadd.f32 %v4034_v49, %v7108_v36  ;;  %3477 = vst.msk [vmem:[#allocation3 + $0xe8] sm:$0xff] %vm1526_vm8, %v3411_v54  ;;  %4339 = vmatmul.msk.f32.gmra.mxu3 %vm1986_vm12, %v3892_v23  ;;  %v7115_v30 = vld [vmem:[#allocation32_spill] sm:$0xff] }
 0x6a4   : > { %4201 = vst.msk [vmem:[%s6651_s14 + $0xa0] sm:$0xff] %vm257_vm0, %v4169_v56  ;;  %v4153_v62 = vmax.f32 %v4121_v1, 0.0 }
 0x6a6   : > { %4185 = vst.msk [vmem:[%s6651_s14 + $0x20] sm:$0xff] %vm257_vm0, %v4153_v62  ;;  %v3603_v20 = vpop.permute.xlu1 %3602  ;;  %v7116_v62 = vld [vmem:[#allocation12_spill] sm:$0xff] }
 0x6a7   : > { %v3605_v18 = vpop.permute.xlu2 %3604  ;;  %3669 = vst.msk [vmem:[#allocation3 + $0xe8] sm:$0xff] %vm1719_vm9, %v3603_v20 }
 0x6a8   : > { %3861 = vst.msk [vmem:[#allocation3 + $0xe8] sm:$0xff] %vm1912_vm11, %v3795_v2  ;;  %v3761_v13 = vpop.permute.xlu0 %3760 }
 0x6a9   : > { %3844 = vst.msk [vmem:[#allocation3 + $0x60] sm:$0xff] %vm1912_vm11, %v3761_v13 }
 0x6ad   : > { %v4084_v63 = vpop.f32.mrf.mxu3 }
 0x6ae   : > { %v4085_v14 = vadd.f32 %v6638_v17, %v4084_v63  ;;  %v3221_v51 = vpop.permute.xlu1 %3220 }
 0x6af   : > { %v3223_v28 = vpop.permute.xlu2 %3222  ;;  %3286 = vst.msk [vmem:[#allocation3 + $0xf0] sm:$0xff] %vm1332_vm7, %v3221_v51  ;;  %v4036_v33 = vpop.f32.mrf.mxu1  ;;  %v3893_v29 = vld [vmem:[#allocation3 + $0xe8] sm:$0xff] }
 0x6b0   : > { %v4138_v38 = vadd.f32 %v4085_v14, %v7109_v8  ;;  %3287 = vst.msk [vmem:[#allocation3 + $0xf8] sm:$0xff] %vm1332_vm7, %v3223_v28  ;;  %v4037_v58 = vadd.f32 %v6638_v17, %v4036_v33  ;;  %v3379_v6 = vpop.permute.xlu0 %3378  ;;  %4340 = vmatmul.msk.f32.gmra.mxu3 %vm1986_vm12, %v3893_v29  ;;  %v3876_v0 = vld [vmem:[#allocation3 + $0x60] sm:$0xff]  ;;  %v7117_v14 = vld [vmem:[#allocation25_spill] sm:$0xff] }
 0x6b1   : > { %3461 = vst.msk [vmem:[#allocation3 + $0x68] sm:$0xff] %vm1526_vm8, %v3379_v6  ;;  %4323 = vmatmul.msk.f32.gmra.mxu1 %vm1986_vm12, %v3876_v0  ;;  %v7118_v8 = vld [vmem:[#allocation17_spill] sm:$0xff] }
 0x6b2   : > { %v4170_v25 = vmax.f32 %v4138_v38, 0.0  ;;  %v4122_v53 = vadd.f32 %v4037_v58, %v7110_v27  ;;  %3653 = vst.msk [vmem:[#allocation3 + $0x68] sm:$0xff] %vm1719_vm9, %v3571_v42 }
 0x6b4   : > { %4202 = vst.msk [vmem:[%s6651_s14 + $0xa8] sm:$0xff] %vm257_vm0, %v4170_v25  ;;  %v4154_v47 = vmax.f32 %v4122_v53, 0.0  ;;  %v7119_v25 = vld [vmem:[#allocation30_spill] sm:$0xff] }
 0x6b6   : > { %4186 = vst.msk [vmem:[%s6651_s14 + $0x28] sm:$0xff] %vm257_vm0, %v4154_v47  ;;  %v3763_v22 = vpop.permute.xlu1 %3762 }
 0x6b7   : > { %v3765_v61 = vpop.permute.xlu2 %3764  ;;  %3845 = vst.msk [vmem:[#allocation3 + $0x68] sm:$0xff] %vm1912_vm11, %v3763_v22 }
 0x6b8   : > { %v3413_v60 = vpop.permute.xlu0 %3412 }
 0x6b9   : > { %3478 = vst.msk [vmem:[#allocation3 + $0xf0] sm:$0xff] %vm1526_vm8, %v3413_v60 }
 0x6ba   : > { %3670 = vst.msk [vmem:[#allocation3 + $0xf0] sm:$0xff] %vm1719_vm9, %v3605_v18 }
 0x6bd   : > { %v4087_v55 = vpop.f32.mrf.mxu3 }
 0x6be   : > { %v4088_v46 = vadd.f32 %v6638_v17, %v4087_v55  ;;  %v3381_v39 = vpop.permute.xlu1 %3380  ;;  %v3877_v21 = vld [vmem:[#allocation3 + $0x68] sm:$0xff] }
 0x6bf   : > { %v3383_v10 = vpop.permute.xlu2 %3382  ;;  %3462 = vst.msk [vmem:[#allocation3 + $0x70] sm:$0xff] %vm1526_vm8, %v3381_v39  ;;  %v4039_v57 = vpop.f32.mrf.mxu1  ;;  %4324 = vmatmul.msk.f32.gmra.mxu1 %vm1986_vm12, %v3877_v21 }
 0x6c0   : > { %v4139_v12 = vadd.f32 %v4088_v46, %v7111_v37  ;;  %3463 = vst.msk [vmem:[#allocation3 + $0x78] sm:$0xff] %vm1526_vm8, %v3383_v10  ;;  %v4040_v34 = vadd.f32 %v6638_v17, %v4039_v57  ;;  %v3797_v44 = vpop.permute.xlu0 %3796  ;;  %v7121_v10 = vld [vmem:[#allocation34_spill] sm:$0xff] }
 0x6c1   : > { %3862 = vst.msk [vmem:[#allocation3 + $0xf0] sm:$0xff] %vm1912_vm11, %v3797_v44 }
 0x6c2   : > { %v4171_v32 = vmax.f32 %v4139_v12, 0.0  ;;  %v4123_v31 = vadd.f32 %v4040_v34, %v7112_v40  ;;  %v7122_v34 = vld [vmem:[#allocation15_spill] sm:$0xff] }
 0x6c4   : > { %4203 = vst.msk [vmem:[%s6651_s14 + $0xb0] sm:$0xff] %vm257_vm0, %v4171_v32  ;;  %v4155_v54 = vmax.f32 %v4123_v31, 0.0 }
 0x6c6   : > { %4187 = vst.msk [vmem:[%s6651_s14 + $0x30] sm:$0xff] %vm257_vm0, %v4155_v54  ;;  %v3415_v4 = vpop.permute.xlu1 %3414  ;;  %v7123_v54 = vld [vmem:[#allocation28_spill] sm:$0xff] }
 0x6c7   : > { %3479 = vst.msk [vmem:[#allocation3 + $0xf8] sm:$0xff] %vm1526_vm8, %v3415_v4 }
 0x6c8   : > { %v3573_v9 = vpop.permute.xlu0 %3572  ;;  %v3894_v7 = vld [vmem:[#allocation3 + $0xf0] sm:$0xff] }
 0x6c9   : > { %3654 = vst.msk [vmem:[#allocation3 + $0x70] sm:$0xff] %vm1719_vm9, %v3573_v9  ;;  %4341 = vmatmul.msk.f32.gmra.mxu3 %vm1986_vm12, %v3894_v7 }
 0x6ca   : > { %3846 = vst.msk [vmem:[#allocation3 + $0x70] sm:$0xff] %vm1912_vm11, %v3765_v61  ;;  %v7120_v61 = vld [vmem:[#allocation10_spill] sm:$0xff] }
 0x6cd   : > { %v4090_v26 = vpop.f32.mrf.mxu3 }
 0x6ce   : > { %v4091_v5 = vadd.f32 %v6638_v17, %v4090_v26  ;;  %v3799_v24 = vpop.permute.xlu1 %3798 }
 0x6cf   : > { %v4042_v41 = vpop.f32.mrf.mxu1 }
 0x6d0   : > { %v4140_v43 = vadd.f32 %v4091_v5, %v7113_v11  ;;  %v4043_v59 = vadd.f32 %v6638_v17, %v4042_v41  ;;  %v3607_v35 = vpop.permute.xlu0 %3606  ;;  %v7124_v5 = vld [vmem:[#allocation20_spill] sm:$0xff] }
 0x6d1   : > { %3671 = vst.msk [vmem:[#allocation3 + $0xf8] sm:$0xff] %vm1719_vm9, %v3607_v35  ;;  %v3878_v2 = vld [vmem:[#allocation3 + $0x70] sm:$0xff] }
 0x6d2   : > { %v4172_v50 = vmax.f32 %v4140_v43, 0.0  ;;  %v4124_v45 = vadd.f32 %v4043_v59, %v7114_v3  ;;  %3863 = vst.msk [vmem:[#allocation3 + $0xf8] sm:$0xff] %vm1912_vm11, %v3799_v24  ;;  %4325 = vmatmul.msk.f32.gmra.mxu1 %vm1986_vm12, %v3878_v2  ;;  %v7125_v59 = vld [vmem:[#allocation33_spill] sm:$0xff] }
 0x6d4   : > { %4204 = vst.msk [vmem:[%s6651_s14 + $0xb8] sm:$0xff] %vm257_vm0, %v4172_v50  ;;  %v4156_v16 = vmax.f32 %v4124_v45, 0.0  ;;  %v7126_v45 = vld [vmem:[#allocation13_spill] sm:$0xff] }
 0x6d6   : > { %4188 = vst.msk [vmem:[%s6651_s14 + $0x38] sm:$0xff] %vm257_vm0, %v4156_v16  ;;  %v3767_v42 = vpop.permute.xlu1 %3766 }
 0x6d8   : > { %v3575_v48 = vpop.permute.xlu0 %3574 }
 0x6d9   : > { %3655 = vst.msk [vmem:[#allocation3 + $0x78] sm:$0xff] %vm1719_vm9, %v3575_v48  ;;  %v3895_v52 = vld [vmem:[#allocation3 + $0xf8] sm:$0xff] }
 0x6da   : > { %3847 = vst.msk [vmem:[#allocation3 + $0x78] sm:$0xff] %vm1912_vm11, %v3767_v42  ;;  %4342 = vmatmul.msk.f32.gmra.mxu3 %vm1986_vm12, %v3895_v52 }
 0x6dd   : > { %v4093_v19 = vpop.f32.mrf.mxu3 }
 0x6de   : > { %v4094_v15 = vadd.f32 %v6638_v17, %v4093_v19  ;;  %v7127_v19 = vld [vmem:[#allocation63_spill] sm:$0xff] }
 0x6df   : > { %v4045_v49 = vpop.f32.mrf.mxu1 }
 0x6e0   : > { %v4141_v23 = vadd.f32 %v4094_v15, %v7115_v30  ;;  %v4046_v56 = vadd.f32 %v6638_v17, %v4045_v49 }
 0x6e1   : > { %v3879_v36 = vld [vmem:[#allocation3 + $0x78] sm:$0xff] }
 0x6e2   : > { %v4173_v1 = vmax.f32 %v4141_v23, 0.0  ;;  %v4125_v20 = vadd.f32 %v4046_v56, %v7116_v62  ;;  %4326 = vmatmul.msk.f32.gmra.mxu1 %vm1986_vm12, %v3879_v36  ;;  %v7128_v56 = vld [vmem:[#allocation18_spill] sm:$0xff] }
 0x6e4   : > { %4205 = vst.msk [vmem:[%s6651_s14 + $0xc0] sm:$0xff] %vm257_vm0, %v4173_v1  ;;  %v4157_v18 = vmax.f32 %v4125_v20, 0.0 }
 0x6e6   : > { %4189 = vst.msk [vmem:[%s6651_s14 + $0x40] sm:$0xff] %vm257_vm0, %v4157_v18 }
 0x6ed   : > { %v4096_v13 = vpop.f32.mrf.mxu3 }
 0x6ee   : > { %v4097_v63 = vadd.f32 %v6638_v17, %v4096_v13  ;;  %v7129_v13 = vld [vmem:[#allocation64_spill] sm:$0xff] }
 0x6f0   : > { %v4142_v51 = vadd.f32 %v4097_v63, %v7117_v14 }
 0x6f2   : > { %v4174_v28 = vmax.f32 %v4142_v51, 0.0 }
 0x6f4   : > { %4206 = vst.msk [vmem:[%s6651_s14 + $0xc8] sm:$0xff] %vm257_vm0, %v4174_v28  ;;  %v7130_v28 = vld [vmem:[#allocation23_spill] sm:$0xff] }
 0x6f6   : > { %v4048_v33 = vpop.f32.mrf.mxu1 }
 0x6f7   : > { %v4049_v29 = vadd.f32 %v6638_v17, %v4048_v33 }
 0x6f9   : > { %v4126_v38 = vadd.f32 %v4049_v29, %v7118_v8 }
 0x6fb   : > { %v4158_v58 = vmax.f32 %v4126_v38, 0.0  ;;  %v4099_v6 = vpop.f32.mrf.mxu3 }
 0x6fc   : > { %v4100_v0 = vadd.f32 %v6638_v17, %v4099_v6 }
 0x6fd   : > { %4190 = vst.msk [vmem:[%s6651_s14 + $0x48] sm:$0xff] %vm257_vm0, %v4158_v58 }
 0x6fe   : > { %v4143_v27 = vadd.f32 %v4100_v0, %v7119_v25 }
 0x700   : > { %v4175_v53 = vmax.f32 %v4143_v27, 0.0 }
 0x702   : > { %4207 = vst.msk [vmem:[%s6651_s14 + $0xd0] sm:$0xff] %vm257_vm0, %v4175_v53 }
 0x704   : > { %v4051_v47 = vpop.f32.mrf.mxu1 }
 0x705   : > { %v4052_v22 = vadd.f32 %v6638_v17, %v4051_v47 }
 0x707   : > { %v4127_v60 = vadd.f32 %v4052_v22, %v7120_v61 }
 0x709   : > { %v4159_v55 = vmax.f32 %v4127_v60, 0.0 }
 0x70b   : > { %4191 = vst.msk [vmem:[%s6651_s14 + $0x50] sm:$0xff] %vm257_vm0, %v4159_v55 }
 0x714   : > { %v4102_v46 = vpop.f32.mrf.mxu3 }
 0x715   : > { %v4103_v39 = vadd.f32 %v6638_v17, %v4102_v46 }
 0x717   : > { %v4144_v21 = vadd.f32 %v4103_v39, %v7121_v10  ;;  %v4054_v57 = vpop.f32.mrf.mxu1 }
 0x718   : > { %v4055_v37 = vadd.f32 %v6638_v17, %v4054_v57 }
 0x719   : > { %v4176_v12 = vmax.f32 %v4144_v21, 0.0 }
 0x71a   : > { %v4128_v44 = vadd.f32 %v4055_v37, %v7122_v34 }
 0x71b   : > { %4208 = vst.msk [vmem:[%s6651_s14 + $0xd8] sm:$0xff] %vm257_vm0, %v4176_v12 }
 0x71c   : > { %v4160_v32 = vmax.f32 %v4128_v44, 0.0 }
 0x71e   : > { %4192 = vst.msk [vmem:[%s6651_s14 + $0x58] sm:$0xff] %vm257_vm0, %v4160_v32 }
 0x725   : > { %v4105_v40 = vpop.f32.mrf.mxu3 }
 0x726   : > { %v4106_v31 = vadd.f32 %v6638_v17, %v4105_v40 }
 0x728   : > { %v4145_v4 = vadd.f32 %v4106_v31, %v7123_v54 }
 0x72a   : > { %v4177_v9 = vmax.f32 %v4145_v4, 0.0 }
 0x72c   : > { %4209 = vst.msk [vmem:[%s6651_s14 + $0xe0] sm:$0xff] %vm257_vm0, %v4177_v9 }
 0x72e   : > { %v4057_v7 = vpop.f32.mrf.mxu1 }
 0x72f   : > { %v4058_v26 = vadd.f32 %v6638_v17, %v4057_v7 }
 0x731   : > { %v4129_v24 = vadd.f32 %v4058_v26, %v7124_v5 }
 0x733   : > { %v4161_v41 = vmax.f32 %v4129_v24, 0.0  ;;  %v4108_v11 = vpop.f32.mrf.mxu3 }
 0x734   : > { %v4109_v43 = vadd.f32 %v6638_v17, %v4108_v11 }
 0x735   : > { %4193 = vst.msk [vmem:[%s6651_s14 + $0x60] sm:$0xff] %vm257_vm0, %v4161_v41 }
 0x736   : > { %v4146_v35 = vadd.f32 %v4109_v43, %v7125_v59 }
 0x738   : > { %v4178_v2 = vmax.f32 %v4146_v35, 0.0 }
 0x73a   : > { %4210 = vst.msk [vmem:[%s6651_s14 + $0xe8] sm:$0xff] %vm257_vm0, %v4178_v2 }
 0x73c   : > { %v4060_v50 = vpop.f32.mrf.mxu1 }
 0x73d   : > { %v4061_v3 = vadd.f32 %v6638_v17, %v4060_v50 }
 0x73f   : > { %v4130_v16 = vadd.f32 %v4061_v3, %v7126_v45 }
 0x741   : > { %v4162_v48 = vmax.f32 %v4130_v16, 0.0 }
 0x743   : > { %4194 = vst.msk [vmem:[%s6651_s14 + $0x68] sm:$0xff] %vm257_vm0, %v4162_v48 }
 0x74c   : > { %v4111_v42 = vpop.f32.mrf.mxu3 }
 0x74d   : > { %v4112_v52 = vadd.f32 %v6638_v17, %v4111_v42 }
 0x74f   : > { %v4147_v15 = vadd.f32 %v4112_v52, %v7127_v19  ;;  %v4063_v49 = vpop.f32.mrf.mxu1 }
 0x750   : > { %v4064_v30 = vadd.f32 %v6638_v17, %v4063_v49 }
 0x751   : > { %v4179_v23 = vmax.f32 %v4147_v15, 0.0 }
 0x752   : > { %v4131_v36 = vadd.f32 %v4064_v30, %v7128_v56 }
 0x753   : > { %4211 = vst.msk [vmem:[%s6651_s14 + $0xf0] sm:$0xff] %vm257_vm0, %v4179_v23 }
 0x754   : > { %v4163_v1 = vmax.f32 %v4131_v36, 0.0 }
 0x756   : > { %4195 = vst.msk [vmem:[%s6651_s14 + $0x70] sm:$0xff] %vm257_vm0, %v4163_v1 }
 0x75d   : > { %v4114_v62 = vpop.f32.mrf.mxu3 }
 0x75e   : > { %v4115_v20 = vadd.f32 %v6638_v17, %v4114_v62 }
 0x75f   : > { %v4066_v18 = vpop.f32.mrf.mxu1 }
 0x760   : > { %v4148_v63 = vadd.f32 %v4115_v20, %v7129_v13  ;;  %v4067_v14 = vadd.f32 %v6638_v17, %v4066_v18 }
 0x762   : > { %v4180_v51 = vmax.f32 %v4148_v63, 0.0  ;;  %v4132_v33 = vadd.f32 %v4067_v14, %v7130_v28 }
 0x764   : > { %4212 = vst.msk [vmem:[%s6651_s14 + $0xf8] sm:$0xff] %vm257_vm0, %v4180_v51  ;;  %v4164_v29 = vmax.f32 %v4132_v33, 0.0 }
 0x766   : > { %4196 = vst.msk [vmem:[%s6651_s14 + $0x78] sm:$0xff] %vm257_vm0, %v4164_v29 }
 0x767 PF: > { %s15_s18 = sadd.s32 1, %s4382_s18  }
 0x768   : > { %p12_p4 = scmp.ge.s32.totalorder %s15_s18, 4  }
 0x76a   :  { %14 = sbr.rel (!%p12_p4) target bundleno = 1 (0x1), region = 73 }

</bundles_post_ra>
